<compile_context>
chip_gen: v7x
topology: tpu7x:2x2x1
jax: 0.10.0
libtpu: 0.0.40
codegen_flags: <defaults>
</compile_context>

<pallas_src>
import math

import jax
import jax.numpy as jnp
from jax import lax
from jax.experimental import pallas as pl
from jax.experimental.pallas import tpu as pltpu


def _make_attention_kernel(m_views: int, d_in: int):
    """Builds the fused kernel for a static number of views / feature width."""

    def kernel(z_ref, w1_ref, b1_ref, w2_ref, out_ref, beta_ref):
        # z_ref   : (tm, M*D)  flattened row tile of the input (view m -> lanes [m*D, (m+1)*D))
        # w1_ref  : (D, H)     first projection weight (resident, full block)
        # b1_ref  : (1, H)     first projection bias
        # w2_ref  : (H, 1)     second projection weight (Linear(H, 1, bias=False))
        # out_ref : (tm, D)    pooled features              (lane-dense store)
        # beta_ref: (M, tm)    attention weights, transposed (lane-dense store)
        tm = z_ref.shape[0]
        f32 = jnp.float32

        w1 = w1_ref[...].astype(f32)      # (D, H)
        bias1 = b1_ref[...].astype(f32)   # (1, H)
        w2c = w2_ref[...].astype(f32)     # (H, 1)

        # --- Scores: one fused MXU pass over all M views ------------------------
        # View slices are 128-lane aligned blocks of the flattened z tile.
        # NOTE: M is a small static constant for this module (graph views), so the
        # Python unrolling over M stays tiny.
        z_views = [z_ref[:, v * d_in:(v + 1) * d_in].astype(f32) for v in range(m_views)]
        if m_views > 1:
            z_stacked = jnp.concatenate(z_views, axis=0)          # (M*tm, D)
        else:
            z_stacked = z_views[0]

        proj = jnp.tanh(
            jnp.dot(z_stacked, w1, preferred_element_type=f32) + bias1)   # (M*tm, H)
        scores = jnp.dot(proj, w2c, preferred_element_type=f32)           # (M*tm, 1)
        s_cols = [scores[v * tm:(v + 1) * tm, :] for v in range(m_views)]  # M x (tm, 1)

        # --- Softmax over the view dimension ------------------------------------
        if m_views == 2:
            # softmax([s0, s1]) == [1 - sigmoid(s1 - s0), sigmoid(s1 - s0)] exactly.
            hi = 1.0 / (1.0 + jnp.exp(s_cols[0] - s_cols[1]))     # (tm, 1)
            beta_cols = [1.0 - hi, hi]
        else:
            s = jnp.concatenate(s_cols, axis=-1)                  # (tm, M)
            s_max = jnp.max(s, axis=-1, keepdims=True)
            e = jnp.exp(s - s_max)
            inv = pl.reciprocal(jnp.sum(e, axis=-1, keepdims=True), approx=True)
            beta_full = e * inv
            beta_cols = [beta_full[:, v:v + 1] for v in range(m_views)]

        # --- Weighted sum over views (lane-dense (tm, D) store) -----------------
        acc = beta_cols[0] * z_views[0]
        for v in range(1, m_views):
            acc = acc + beta_cols[v] * z_views[v]
        out_ref[...] = acc.astype(out_ref.dtype)

        # --- beta output, (tm, M) -> (M, tm) via an exact identity matmul -------
        # (keeps the returned beta bit-identical to the beta used for `out` and
        #  avoids a generic transpose; the MXU is otherwise idle here)
        beta_mat = jnp.concatenate(beta_cols, axis=-1)            # (tm, M)
        eye = (lax.broadcasted_iota(jnp.int32, (m_views, m_views), 0)
               == lax.broadcasted_iota(jnp.int32, (m_views, m_views), 1)).astype(f32)
        beta_t = lax.dot_general(eye, beta_mat,
                                 (((1,), (1,)), ((), ())),
                                 preferred_element_type=f32)      # (M, tm)
        beta_ref[...] = beta_t.astype(beta_ref.dtype)

    return kernel


def _pick_row_tile(n: int, tm_max: int) -> int:
    """Largest legal row tile <= tm_max.

    A tile is legal if it divides N and is either a multiple of 128 (so the
    (M, tm) beta block stays lane-aligned) or covers all N rows.  When possible,
    prefer a tile that leaves >= 2 grid steps so v7x's two TensorCores both get work.
    """
    cands = [d for d in range(128, min(tm_max, n) + 1, 128) if n % d == 0]
    multi = [d for d in cands if n // d >= 2]
    if multi:
        return max(multi)
    if cands:
        return max(cands)
    return n  # single full-height block (always a legal block shape)


def attention_forward(z, w1, b1, w2, *, tm_max=512,
                      vmem_limit_bytes=32 * 1024 * 1024,
                      z_pipeline_buffers=None):
    """Fused attention pooling: returns ((beta * z).sum(1), beta) like the nn.Module."""
    n, m, d = z.shape
    h = w1.shape[1]

    # Free row-major flatten: view m of row i occupies lanes [m*d, (m+1)*d).
    z2 = z.reshape(n, m * d)
    tm = _pick_row_tile(n, tm_max)

    # Optional deeper pipelining on the z input (v6e suggestion); default double-buffer.
    z_spec_kwargs = {}
    if z_pipeline_buffers is not None:
        z_spec_kwargs["pipeline_mode"] = pl.Buffered(z_pipeline_buffers)
    z_spec = pl.BlockSpec((tm, m * d), lambda i: (i, 0), **z_spec_kwargs)

    out, beta_t = pl.pallas_call(
        _make_attention_kernel(m, d),
        out_shape=(
            jax.ShapeDtypeStruct((n, d), z.dtype),   # pooled features
            jax.ShapeDtypeStruct((m, n), z.dtype),   # attention weights, transposed
        ),
        grid_spec=pltpu.PrefetchScalarGridSpec(
            num_scalar_prefetch=0,
            grid=(n // tm,),
            in_specs=[
                z_spec,                                         # z row tile (flattened)
                pl.BlockSpec((d, h), lambda i: (0, 0)),         # W1 (full, resident)
                pl.BlockSpec((1, h), lambda i: (0, 0)),         # b1 (full, resident)
                pl.BlockSpec((h, 1), lambda i: (0, 0)),         # w2 (full, resident)
            ],
            out_specs=[
                pl.BlockSpec((tm, d), lambda i: (i, 0)),        # out: lane-dense
                pl.BlockSpec((m, tm), lambda i: (0, i)),        # beta^T: lane-dense
            ],
        ),
        compiler_params=pltpu.CompilerParams(
            dimension_semantics=("parallel",),
            vmem_limit_bytes=vmem_limit_bytes,
        ),
    )(z2, w1, b1.reshape(1, h), w2.reshape(h, 1))

    # PyTorch returns beta with a trailing singleton dim: (N, M, 1).
    beta = jnp.transpose(beta_t).reshape(n, m, 1)
    return out, beta


def init_attention_params(key, n_input, n_hidden=16):
    """Mimics nn.Linear default init: U(-1/sqrt(fan_in), 1/sqrt(fan_in))."""
    k1, k2, k3 = jax.random.split(key, 3)
    s1 = 1.0 / math.sqrt(n_input)
    s2 = 1.0 / math.sqrt(n_hidden)
    w1 = jax.random.uniform(k1, (n_input, n_hidden), jnp.float32, -s1, s1)
    b1 = jax.random.uniform(k2, (n_hidden,), jnp.float32, -s1, s1)
    w2 = jax.random.uniform(k3, (n_hidden,), jnp.float32, -s2, s2)
    return w1, b1, w2


if __name__ == "__main__":
    # z: (N nodes, M=2 views, D=128 features); n_hidden=16 as in the module default.
    # N=1024 keeps the grid at 2 steps with the default tm=512 (exercises both
    # TensorCores on v7x) while staying a small, fast test case.
    N, M, D, H = 1024, 2, 128, 16

    key = jax.random.PRNGKey(0)
    kz, kp = jax.random.split(key)
    z = jax.random.normal(kz, (N, M, D), jnp.float32)
    w1, b1, w2 = init_attention_params(kp, D, H)

    out, beta = attention_forward(z, w1, b1, w2)
    jax.block_until_ready((out, beta))

    # Plain-JAX reference (matches the PyTorch forward).
    proj = jnp.tanh(jnp.einsum("nmd,dh->nmh", z, w1) + b1)
    logits = jnp.einsum("nmh,h->nm", proj, w2)[..., None]      # (N, M, 1)
    beta_ref = jax.nn.softmax(logits, axis=1)
    out_ref = jnp.sum(beta_ref * z, axis=1)

    assert out.shape == (N, D)
    assert beta.shape == (N, M, 1)
    assert jnp.allclose(out, out_ref, atol=1e-4, rtol=1e-4)
    assert jnp.allclose(beta, beta_ref, atol=1e-5, rtol=1e-5)

    print("KERNEL_OK")
</pallas_src>

<mosaic_0001>
module attributes {stable_mosaic.version = 11 : i64} {
  func.func @kernel(%arg0: i32, %arg1: memref<512x256xf32, #tpu.memory_space<vmem>>, %arg2: memref<128x16xf32, #tpu.memory_space<vmem>>, %arg3: memref<1x16xf32, #tpu.memory_space<vmem>>, %arg4: memref<16x1xf32, #tpu.memory_space<vmem>>, %arg5: memref<512x128xf32, #tpu.memory_space<vmem>>, %arg6: memref<2x512xf32, #tpu.memory_space<vmem>>) attributes {dimension_semantics = [#tpu.dimension_semantics<parallel>], iteration_bounds = array<i64: 2>, scalar_prefetch = 0 : i64, scratch_operands = 0 : i64, tpu.core_type = #tpu.core_type<tc>, window_params = [{transform_indices = @transform_0, window_bounds = array<i64: 512, 256>}, {pipeline_mode = #tpu.pipeline_mode<synchronous>, transform_indices = @transform_1, window_bounds = array<i64: 128, 16>}, {pipeline_mode = #tpu.pipeline_mode<synchronous>, transform_indices = @transform_2, window_bounds = array<i64: 1, 16>}, {pipeline_mode = #tpu.pipeline_mode<synchronous>, transform_indices = @transform_3, window_bounds = array<i64: 16, 1>}, {transform_indices = @transform_4, window_bounds = array<i64: 512, 128>}, {transform_indices = @transform_5, window_bounds = array<i64: 2, 512>}]} {
    %c0 = arith.constant 0 : index
    %c0_0 = arith.constant 0 : index
    %0 = vector.load %arg2[%c0, %c0_0] : memref<128x16xf32, #tpu.memory_space<vmem>>, vector<128x16xf32>
    %c0_1 = arith.constant 0 : index
    %c0_2 = arith.constant 0 : index
    %1 = vector.load %arg3[%c0_1, %c0_2] : memref<1x16xf32, #tpu.memory_space<vmem>>, vector<1x16xf32>
    %c0_3 = arith.constant 0 : index
    %c0_4 = arith.constant 0 : index
    %2 = vector.load %arg4[%c0_3, %c0_4] : memref<16x1xf32, #tpu.memory_space<vmem>>, vector<16x1xf32>
    %c0_5 = arith.constant 0 : index
    %c0_6 = arith.constant 0 : index
    %3 = vector.load %arg1[%c0_5, %c0_6] : memref<512x256xf32, #tpu.memory_space<vmem>>, vector<512x128xf32>
    %c0_7 = arith.constant 0 : index
    %c128 = arith.constant 128 : index
    %4 = vector.load %arg1[%c0_7, %c128] : memref<512x256xf32, #tpu.memory_space<vmem>>, vector<512x128xf32>
    %5 = tpu.concatenate %3, %4 in 0 : vector<512x128xf32>, vector<512x128xf32> -> vector<1024x128xf32>
    %cst = arith.constant dense<0.000000e+00> : vector<1024x16xf32>
    %6 = tpu.matmul %5, %0, %cst {dimension_numbers = #tpu.dot_dimension_numbers<[1], [0], [0], [1], [0, 0, 1, 1], [], []>} : vector<1024x128xf32>, vector<128x16xf32>, vector<1024x16xf32> -> vector<1024x16xf32>
    %7 = vector.broadcast %1 : vector<1x16xf32> to vector<1024x16xf32>
    %8 = arith.addf %6, %7 : vector<1024x16xf32>
    %9 = math.tanh %8 : vector<1024x16xf32>
    %cst_8 = arith.constant dense<0.000000e+00> : vector<1024x1xf32>
    %10 = tpu.matmul %9, %2, %cst_8 {dimension_numbers = #tpu.dot_dimension_numbers<[1], [0], [0], [1], [0, 0, 1, 1], [], []>} : vector<1024x16xf32>, vector<16x1xf32>, vector<1024x1xf32> -> vector<1024x1xf32>
    %11 = vector.extract_strided_slice %10 {offsets = [0, 0], sizes = [512, 1], strides = [1, 1]} : vector<1024x1xf32> to vector<512x1xf32>
    %12 = vector.extract_strided_slice %10 {offsets = [512, 0], sizes = [512, 1], strides = [1, 1]} : vector<1024x1xf32> to vector<512x1xf32>
    %13 = arith.subf %11, %12 : vector<512x1xf32>
    %14 = math.exp %13 : vector<512x1xf32>
    %cst_9 = arith.constant 1.000000e+00 : f32
    %15 = vector.broadcast %cst_9 : f32 to vector<512x1xf32>
    %16 = arith.addf %15, %14 : vector<512x1xf32>
    %cst_10 = arith.constant 1.000000e+00 : f32
    %17 = vector.broadcast %cst_10 : f32 to vector<512x1xf32>
    %18 = arith.divf %17, %16 : vector<512x1xf32>
    %cst_11 = arith.constant 1.000000e+00 : f32
    %19 = vector.broadcast %cst_11 : f32 to vector<512x1xf32>
    %20 = arith.subf %19, %18 : vector<512x1xf32>
    %21 = vector.broadcast %20 : vector<512x1xf32> to vector<512x128xf32>
    %22 = arith.mulf %21, %3 : vector<512x128xf32>
    %23 = vector.broadcast %18 : vector<512x1xf32> to vector<512x128xf32>
    %24 = arith.mulf %23, %4 : vector<512x128xf32>
    %25 = arith.addf %22, %24 : vector<512x128xf32>
    %c0_12 = arith.constant 0 : index
    %c0_13 = arith.constant 0 : index
    %26 = vector.load %arg5[%c0_12, %c0_13] : memref<512x128xf32, #tpu.memory_space<vmem>>, vector<512x128xf32>
    tpu.vector_store %arg5[%c0_12, %c0_13], %25 {strides = array<i32>} : memref<512x128xf32, #tpu.memory_space<vmem>>, vector<512x128xf32>,
    %27 = tpu.concatenate %20, %18 in 1 : vector<512x1xf32>, vector<512x1xf32> -> vector<512x2xf32>
    %28 = tpu.iota {dimensions = array<i32: 0>} : vector<2x2xi32>
    %29 = tpu.iota {dimensions = array<i32: 1>} : vector<2x2xi32>
    %30 = arith.cmpi eq, %28, %29 : vector<2x2xi32>
    %31 = arith.extui %30 : vector<2x2xi1> to vector<2x2xi32>
    %32 = arith.sitofp %31 : vector<2x2xi32> to vector<2x2xf32>
    %cst_14 = arith.constant dense<0.000000e+00> : vector<2x512xf32>
    %33 = tpu.matmul %32, %27, %cst_14 {dimension_numbers = #tpu.dot_dimension_numbers<[1], [1], [0], [0], [0, 0, 1, 0], [], []>} : vector<2x2xf32>, vector<512x2xf32>, vector<2x512xf32> -> vector<2x512xf32>
    %c0_15 = arith.constant 0 : index
    %c0_16 = arith.constant 0 : index
    %34 = vector.load %arg6[%c0_15, %c0_16] : memref<2x512xf32, #tpu.memory_space<vmem>>, vector<2x512xf32>
    tpu.vector_store %arg6[%c0_15, %c0_16], %33 {strides = array<i32>} : memref<2x512xf32, #tpu.memory_space<vmem>>, vector<2x512xf32>,
    return
  }
  func.func @transform_0(%arg0: i32) -> (i32, i32) {
    %c0_i32 = arith.constant 0 : i32
    %c0_i32_0 = arith.constant 0 : i32
    return %arg0, %c0_i32 : i32, i32
  }
  func.func @transform_1(%arg0: i32) -> (i32, i32) {
    %c0_i32 = arith.constant 0 : i32
    %c0_i32_0 = arith.constant 0 : i32
    %c0_i32_1 = arith.constant 0 : i32
    return %c0_i32, %c0_i32_0 : i32, i32
  }
  func.func @transform_2(%arg0: i32) -> (i32, i32) {
    %c0_i32 = arith.constant 0 : i32
    %c0_i32_0 = arith.constant 0 : i32
    %c0_i32_1 = arith.constant 0 : i32
    return %c0_i32, %c0_i32_0 : i32, i32
  }
  func.func @transform_3(%arg0: i32) -> (i32, i32) {
    %c0_i32 = arith.constant 0 : i32
    %c0_i32_0 = arith.constant 0 : i32
    %c0_i32_1 = arith.constant 0 : i32
    return %c0_i32, %c0_i32_0 : i32, i32
  }
  func.func @transform_4(%arg0: i32) -> (i32, i32) {
    %c0_i32 = arith.constant 0 : i32
    %c0_i32_0 = arith.constant 0 : i32
    return %arg0, %c0_i32 : i32, i32
  }
  func.func @transform_5(%arg0: i32) -> (i32, i32) {
    %c0_i32 = arith.constant 0 : i32
    %c0_i32_0 = arith.constant 0 : i32
    return %c0_i32, %arg0 : i32, i32
  }
}

</mosaic_0001>

<bundles_post_ra>
// kernel: tpu_custom_call.1
= control target key start
LH: loop header
LB: loop body
LE: loop exit
PB: predicated region body
PF: predicated region fallthrough
CT: control target
= control target key end

     0   :  { %11 = vsyncpa [#allocation3], 0  ;;  %s8826_s0 = inlined_call_operand.hbm [shape: f32[1024,256], index: 0, kind: input, shape index: {}]   ;;  %s8827_s1 = inlined_call_operand.vmem [shape: f32[128,16], index: 1, kind: input, shape index: {}]   ;;  %s8828_s2 = inlined_call_operand.vmem [shape: f32[1,16], index: 2, kind: input, shape index: {}]   ;;  %s8829_s3 = inlined_call_operand.vmem [shape: f32[16,1], index: 3, kind: input, shape index: {}]   ;;  %s8830_s4 = inlined_call_operand.hbm [shape: f32[1024,128], index: 4, kind: output, shape index: {0}]   ;;  %s8831_s5 = inlined_call_operand.hbm [shape: f32[2,1024], index: 5, kind: output, shape index: {1}]  }
   0x1   :  { %13 = vsyncpa [#allocation3 + $0x1], 0 }
   0x2   :  { %14 = vsyncpa [#allocation4], 0 }
   0x3   :  { %16 = vsyncpa [#allocation4 + $0x1], 0 }
   0x4   :  { %17 = vsyncpa [#allocation7], 0 }
   0x5   :  { %19 = vsyncpa [#allocation7 + $0x1], 0  ;;  %s6587_s18 = smov 0   ;;  %s6589_s19 = smov 0  }
   0x6   :  { %s6591_s20 = smov 0   ;;  %s6593_s21 = smov 0  }
   0x7 LB: > { %s6608_s22 = sadd.s32 4294967295, %s6544_s21   ;;  %s4441_s23 = sadd.s32 4294967294, %s6544_s21   ;;  %s6544_s21 = sphi %s6593_s21, %s9210_s21   ;;  %s6540_s20 = sphi %s6591_s20, %s9209_s20   ;;  %s6536_s19 = sphi %s6589_s19, %s9208_s19   ;;  %s6532_s18 = sphi %s6587_s18, %s9207_s18  }
   0x8   : > { %s6612_s24 = sadd.s32 1, %s6544_s21   ;;  %s32_s25 = sadd.s32 1, %s6540_s20 }
   0x9   : > { %s29_s26 = ssub.s32 %s6544_s21, %s6612_s24  ;;  %p39_p0 = scmp.ne.s32.totalorder %s6540_s20, %s6536_s19 }
   0xa   : > { %p30_p1 = scmp.eq.s32.totalorder %s29_s26, 0  ;;  %p40_p2 = scmp.eq.s32.totalorder %s6544_s21, 0 }
   0xb   : > { %p45_p3 = scmp.ne.s32.totalorder %s6536_s19, %s6532_s18  ;;  %p46_p4 = scmp.eq.s32.totalorder %s6608_s22, 0 }
   0xc   : > { %s6624_s27 = scalar_select %p30_p1, %s6540_s20, %s32_s25  }
   0xd   : > { %p6626_p5 = por %p40_p2, %p39_p0  ;;  %p6630_p6 = por %p46_p4, %p45_p3 }
   0xe   : > { %p132_p7 = scmp.eq.s32.totalorder %s6608_s22, 1  ;;  %p138_p8 = scmp.eq.s32.totalorder %s4441_s23, 1 }
   0xf   : > { %p5571_p10 = scmp.lt.s32.totalorder %s6544_s21, 2  ;;  %s193_s7 = sand.u32 1, %s6540_s20  }
  0x10   : > { %p6637_p11 = por %p132_p7, %p39_p0  ;;  %p6641_p12 = por %p138_p8, %p45_p3 }
  0x11   : > { %s4657_s8 = sshll.u32 %s6544_s21, 14  ;;  %s4444_s9 = sshll.u32 %s193_s7, 10 }
  0x12   : > { %s8967_s30 = scalar_select %p6637_p11, 1, 0 }
  0x13   : > { %s8968_s6 = scalar_select %p6641_p12, 1, 0 }
  0x14   : > { %s6650_s12 = scalar_lea.hbm %s8826_s0, %s4657_s8  ;;  %s197_s13 = scalar_lea.vmem [#allocation2], %s4444_s9 }
  0x15   : > { %s205_s14 = sshll.u32 %s197_s13, 4  ;;  %p6654_p13 = pnand %p5571_p10, %p6626_p5  ;;  %s6658_s14 = int_to_ptr.vmem [resolvable:$true] %s205_s14 }
  0x16   : > { %s6660_s16 = scalar_lea.sflag [#allocation3], %s193_s7  ;;  %s6416_s17 = scalar_lea.hbm %s6650_s12, 16384 }
  0x17   : > { %p6417_p0 = scmp.ne.s32.totalorder %s6650_s12, %s6416_s17  ;;  %p6418_p1 = pneg %p6654_p13 }
  0x18   : > { %s6421_s26 = scalar_lea.hbm %s8826_s0, 32768  ;;  %p6422_p4 = scmp.lt.u32.totalorder %s6650_s12, %s8826_s0 }
  0x19   : > { %p6419_p2 = pnand %p6418_p1, %p6417_p0  ;;  %p6423_p5 = scmp.lt.u32.totalorder %s6421_s26, %s6416_s17 }
  0x1a   : > { %p6425_p8 = scmp.lt.u32.totalorder %s6416_s17, %s6650_s12 }
  0x1b   : > { %p6420_p3 = pneg %p6419_p2  ;;  %p6424_p7 = por %p6423_p5, %p6422_p4 }
  0x1d   : > { %p6426_p10 = por %p6425_p8, %p6424_p7 }
  0x1f   : > { %p6427_p9 = pnand %p6426_p10, %p6420_p3 }
  0x21   : > { %6430 = shalt.err (!%p6427_p9)
}
  0x22   : > { %s6431_s7 = scalar_lea.vmem %s6658_s14, 16384  ;;  %s6546_s9 = smov [#allocation2]  }
  0x23   : > { %p6432_p0 = scmp.ne.s32.totalorder %s6658_s14, %s6431_s7  ;;  %s6436_s10 = sshll.u32 %s6546_s9, 4  ;;  %s6437_s10 = int_to_ptr.vmem [resolvable:$false] %s6436_s10 }
  0x24   : > { %s6438_s11 = scalar_lea.vmem %s6437_s10, 32768  ;;  %p6439_p11 = scmp.lt.s32.totalorder %s6658_s14, %s6437_s10 }
  0x25   : > { %p6434_p2 = pnand %p6432_p0, %p6418_p1  ;;  %p6440_p4 = scmp.lt.s32.totalorder %s6438_s11, %s6431_s7 }
  0x27   : > { %p6435_p12 = pneg %p6434_p2  ;;  %p6441_p5 = por %p6440_p4, %p6439_p11 }
  0x29   : > { %p6442_p7 = pnand %p6441_p5, %p6435_p12 }
  0x2b   : > { %6445 = shalt.err (!%p6442_p7)
}
  0x2c   : > { %s6547_s13 = smov 256   ;;  %s6548_s17 = smov 16  }
  0x2d   : > { %5563 = dma.hbm_to_vmem [thread:$0]  (!%p6654_p13), %s6650_s12, 16384, %s6658_s14, %s6660_s16, %s6547_s13, %s6547_s13, %s6548_s17  }
  0x2e   : > { %p4448_p9 = scmp.ge.s32.totalorder %s6544_s21, 1  ;;  %p213_p1 = scmp.lt.s32.totalorder %s6544_s21, 3 }
  0x30   : > { %p214_p3 = pnand %p4448_p9, %p213_p1 }
  0x32   : > { %217 = sbr.rel (%p214_p3) target bundleno = 1268 (0x4f4), region = 36 }
  0x39   : > { %s6691_s23 = sand.u32 1, %s6536_s19  }
  0x3a   : > { %s4449_s25 = sshll.u32 %s6691_s23, 10  ;;  %s220_s26 = scalar_lea.sflag [#allocation3], %s6691_s23 }
  0x3b   : > { %s6695_s28 = scalar_lea.vmem [#allocation2], %s4449_s25 }
  0x3c   : > { %6519 = dma.done.wait (%p6630_p6), %s220_s26, 16384  }
  0x3d   : > { %6521 = vsyncadd (%p6630_p6), %s220_s26, 4294950912  ;;  %v258_v0 = vld [vmem:[%s8827_s1] sm:$0xff]  ;;  %v259_v1 = vld [vmem:[%s8827_s1 + $0x8] sm:$0xff]  ;;  %vm1244_vm0 = vcmask 130048   ;;  %s6550_s25 = smov 1   ;;  %s4450_s26 = sshll.u32 %s6691_s23, 9 }
  0x3e   : > { %v260_v2 = vld [vmem:[%s8827_s1 + $0x10] sm:$0xff]  ;;  %v5422_v3 = vpack.c.bf16 %v259_v1, %v258_v0  ;;  %v261_v4 = vld [vmem:[%s8827_s1 + $0x18] sm:$0xff]  ;;  %v262_v6 = vld [vmem:[%s8827_s1 + $0x20] sm:$0xff]  ;;  %s7869_s12 = scalar_lea.vmem [#allocation5], %s4450_s26  ;;  %vm3870_vm1 = vcmask 7168   ;;  %vm3942_vm2 = vcmask 15360  }
  0x3f   : > { %v5426_v5 = vpack.c.bf16 %v261_v4, %v260_v2  ;;  %v263_v7 = vld [vmem:[%s8827_s1 + $0x28] sm:$0xff]  ;;  %v277_v9 = vld [vmem:[%s6695_s28] sm:$0xff]  ;;  %v264_v10 = vld [vmem:[%s8827_s1 + $0x30] sm:$0xff]  ;;  %s4658_s14 = sshll.u32 %s6608_s22, 13  ;;  %s4322_s15 = sshll.u32 %s7869_s12, 4  ;;  %s8748_s15 = int_to_ptr.vmem [resolvable:$true] %s4322_s15 }
  0x40   : > { %5423 = vmatprep.subr.bf16.mxu0 %v5422_v3  ;;  %v5430_v8 = vpack.c.bf16 %v263_v7, %v262_v6  ;;  %v265_v11 = vld [vmem:[%s8827_s1 + $0x38] sm:$0xff]  ;;  %5034 = vmatprep.mubr.f32.mxu0 %v277_v9  ;;  %v266_v13 = vld [vmem:[%s8827_s1 + $0x40] sm:$0xff]  ;;  %v267_v14 = vld [vmem:[%s8827_s1 + $0x48] sm:$0xff]  ;;  %s8746_s7 = scalar_lea.hbm %s8830_s4, %s4658_s14  ;;  %s4304_s9 = scalar_lea.sflag [#allocation4], %s6691_s23 }
  0x41   : > { %5425 = vmatpush3.bf16.msra.mxu0 %v5422_v3  ;;  %v5434_v12 = vpack.c.bf16 %v265_v11, %v264_v10  ;;  %v5438_v15 = vpack.c.bf16 %v267_v14, %v266_v13  ;;  %v268_v16 = vld [vmem:[%s8827_s1 + $0x50] sm:$0xff]  ;;  %v269_v17 = vld [vmem:[%s8827_s1 + $0x58] sm:$0xff]  ;;  %v270_v19 = vld [vmem:[%s8827_s1 + $0x60] sm:$0xff]  ;;  %s6446_s10 = scalar_lea.vmem %s8748_s15, 8192  ;;  %p9203_p11 = scmp.ne.s32.totalorder %s8967_s30, 0 }
  0x42   : > { %5427 = vmatprep.subr.bf16.mxu0 %v5426_v5  ;;  %v5442_v18 = vpack.c.bf16 %v269_v17, %v268_v16  ;;  %v271_v20 = vld [vmem:[%s8827_s1 + $0x68] sm:$0xff]  ;;  %v272_v22 = vld [vmem:[%s8827_s1 + $0x70] sm:$0xff]  ;;  %v273_v23 = vld [vmem:[%s8827_s1 + $0x78] sm:$0xff]  ;;  %p6447_p6 = scmp.ne.s32.totalorder %s8748_s15, %s6446_s10 }
  0x43   : > { %v5446_v21 = vpack.c.bf16 %v271_v20, %v270_v19  ;;  %v5450_v24 = vpack.c.bf16 %v273_v23, %v272_v22  ;;  %v278_v25 = vld [vmem:[%s6695_s28 + $0x10] sm:$0xff]  ;;  %v279_v26 = vld [vmem:[%s6695_s28 + $0x20] sm:$0xff]  ;;  %v276_v10 = vld [vmem:[%s8829_s3 + $0x8] sm:$0xff] }
  0x44   : > { %v280_v27 = vld [vmem:[%s6695_s28 + $0x30] sm:$0xff]  ;;  %v281_v28 = vld [vmem:[%s6695_s28 + $0x40] sm:$0xff]  ;;  %vm8104_vm3 = vmpackc.low %vm3942_vm2, %vm3942_vm2  ;;  %p6448_p12 = pnand %p6447_p6, %p9203_p11 }
  0x45   : > { %5429 = vmatpush3.bf16.msra.mxu0 %v5426_v5  ;;  %v282_v29 = vld [vmem:[%s6695_s28 + $0x50] sm:$0xff]  ;;  %v283_v30 = vld [vmem:[%s6695_s28 + $0x60] sm:$0xff] }
  0x46   : > { %5431 = vmatprep.subr.bf16.mxu0 %v5430_v8  ;;  %v284_v31 = vld [vmem:[%s6695_s28 + $0x70] sm:$0xff]  ;;  %v285_v32 = vld [vmem:[%s6695_s28 + $0x80] sm:$0xff]  ;;  %p6449_p13 = pneg %p6448_p12 }
  0x47   : > { %v286_v33 = vld [vmem:[%s6695_s28 + $0x90] sm:$0xff]  ;;  %v287_v34 = vld [vmem:[%s6695_s28 + $0xa0] sm:$0xff] }
  0x48   : > { %v288_v35 = vld [vmem:[%s6695_s28 + $0xb0] sm:$0xff]  ;;  %v289_v36 = vld [vmem:[%s6695_s28 + $0xc0] sm:$0xff] }
  0x49   : > { %5433 = vmatpush3.bf16.msra.mxu0 %v5430_v8  ;;  %v290_v37 = vld [vmem:[%s6695_s28 + $0xd0] sm:$0xff]  ;;  %v291_v38 = vld [vmem:[%s6695_s28 + $0xe0] sm:$0xff] }
  0x4a   : > { %5435 = vmatprep.subr.bf16.mxu0 %v5434_v12  ;;  %v292_v39 = vld [vmem:[%s6695_s28 + $0xf0] sm:$0xff]  ;;  %v293_v40 = vld [vmem:[%s6695_s28 + $0x100] sm:$0xff] }
  0x4b   : > { %v294_v41 = vld [vmem:[%s6695_s28 + $0x110] sm:$0xff]  ;;  %v295_v42 = vld [vmem:[%s6695_s28 + $0x120] sm:$0xff] }
  0x4c   : > { %v296_v43 = vld [vmem:[%s6695_s28 + $0x130] sm:$0xff]  ;;  %v297_v44 = vld [vmem:[%s6695_s28 + $0x140] sm:$0xff] }
  0x4d   : > { %5437 = vmatpush3.bf16.msra.mxu0 %v5434_v12  ;;  %v298_v45 = vld [vmem:[%s6695_s28 + $0x150] sm:$0xff]  ;;  %v299_v46 = vld [vmem:[%s6695_s28 + $0x160] sm:$0xff] }
  0x4e   : > { %5439 = vmatprep.subr.bf16.mxu0 %v5438_v15  ;;  %v300_v47 = vld [vmem:[%s6695_s28 + $0x170] sm:$0xff]  ;;  %v301_v48 = vld [vmem:[%s6695_s28 + $0x180] sm:$0xff] }
  0x4f   : > { %v302_v49 = vld [vmem:[%s6695_s28 + $0x190] sm:$0xff]  ;;  %v303_v50 = vld [vmem:[%s6695_s28 + $0x1a0] sm:$0xff] }
  0x50   : > { %v304_v51 = vld [vmem:[%s6695_s28 + $0x1b0] sm:$0xff]  ;;  %v305_v52 = vld [vmem:[%s6695_s28 + $0x1c0] sm:$0xff] }
  0x51   : > { %5441 = vmatpush3.bf16.msra.mxu0 %v5438_v15  ;;  %v306_v53 = vld [vmem:[%s6695_s28 + $0x1d0] sm:$0xff]  ;;  %v307_v54 = vld [vmem:[%s6695_s28 + $0x1e0] sm:$0xff] }
  0x52   : > { %5443 = vmatprep.subr.bf16.mxu0 %v5442_v18  ;;  %v308_v55 = vld [vmem:[%s6695_s28 + $0x1f0] sm:$0xff]  ;;  %v309_v56 = vld [vmem:[%s6695_s28 + $0x200] sm:$0xff] }
  0x53   : > { %v310_v57 = vld [vmem:[%s6695_s28 + $0x210] sm:$0xff]  ;;  %v311_v58 = vld [vmem:[%s6695_s28 + $0x220] sm:$0xff] }
  0x54   : > { %v312_v59 = vld [vmem:[%s6695_s28 + $0x230] sm:$0xff]  ;;  %v313_v60 = vld [vmem:[%s6695_s28 + $0x240] sm:$0xff] }
  0x55   : > { %5445 = vmatpush3.bf16.msra.mxu0 %v5442_v18  ;;  %v314_v61 = vld [vmem:[%s6695_s28 + $0x250] sm:$0xff]  ;;  %v315_v62 = vld [vmem:[%s6695_s28 + $0x260] sm:$0xff] }
  0x56   : > { %5447 = vmatprep.subr.bf16.mxu0 %v5446_v21  ;;  %v316_v63 = vld [vmem:[%s6695_s28 + $0x270] sm:$0xff]  ;;  %v317_v0 = vld [vmem:[%s6695_s28 + $0x280] sm:$0xff] }
  0x57   : > { %v318_v1 = vld [vmem:[%s6695_s28 + $0x290] sm:$0xff]  ;;  %v319_v2 = vld [vmem:[%s6695_s28 + $0x2a0] sm:$0xff] }
  0x58   : > { %v320_v3 = vld [vmem:[%s6695_s28 + $0x2b0] sm:$0xff]  ;;  %v321_v4 = vld [vmem:[%s6695_s28 + $0x2c0] sm:$0xff] }
  0x59   : > { %5449 = vmatpush3.bf16.msra.mxu0 %v5446_v21  ;;  %v322_v5 = vld [vmem:[%s6695_s28 + $0x2d0] sm:$0xff]  ;;  %v323_v6 = vld [vmem:[%s6695_s28 + $0x2e0] sm:$0xff] }
  0x5a   : > { %5451 = vmatprep.subr.bf16.mxu0 %v5450_v24  ;;  %v324_v7 = vld [vmem:[%s6695_s28 + $0x2f0] sm:$0xff]  ;;  %v325_v8 = vld [vmem:[%s6695_s28 + $0x300] sm:$0xff] }
  0x5b   : > { %v275_v9 = vld [vmem:[%s8829_s3] sm:$0xff]  ;;  %v326_v11 = vld [vmem:[%s6695_s28 + $0x310] sm:$0xff] }
  0x5c   : > { %v5454_v12 = vpack.c.bf16 %v276_v10, %v275_v9  ;;  %v327_v13 = vld [vmem:[%s6695_s28 + $0x320] sm:$0xff]  ;;  %v328_v14 = vld [vmem:[%s6695_s28 + $0x330] sm:$0xff] }
  0x5d   : > { %5453 = vmatpush3.bf16.msra.mxu0 %v5450_v24  ;;  %v329_v15 = vld [vmem:[%s6695_s28 + $0x340] sm:$0xff]  ;;  %v330_v16 = vld [vmem:[%s6695_s28 + $0x350] sm:$0xff] }
  0x5e   : > { %5455 = vmatprep.subr.bf16.mxu1 %v5454_v12  ;;  %v331_v17 = vld [vmem:[%s6695_s28 + $0x360] sm:$0xff]  ;;  %v332_v18 = vld [vmem:[%s6695_s28 + $0x370] sm:$0xff] }
  0x5f   : > { %5457 = vmatpush3.bf16.msra.mxu1 %v5454_v12  ;;  %v333_v19 = vld [vmem:[%s6695_s28 + $0x380] sm:$0xff]  ;;  %v334_v20 = vld [vmem:[%s6695_s28 + $0x390] sm:$0xff] }
  0x60   : > { %5035 = vmatmul.mubr.f32.vlgmr.msra.gmra.mrb[0].mxu0 %v278_v25  ;;  %v335_v21 = vld [vmem:[%s6695_s28 + $0x3a0] sm:$0xff]  ;;  %v336_v22 = vld [vmem:[%s6695_s28 + $0x3b0] sm:$0xff] }
  0x61   : > { %5037 = vmatprep.mubr.f32.mxu0 %v279_v26  ;;  %v337_v23 = vld [vmem:[%s6695_s28 + $0x3c0] sm:$0xff]  ;;  %v338_v24 = vld [vmem:[%s6695_s28 + $0x3d0] sm:$0xff] }
  0x62   : > { %v339_v25 = vld [vmem:[%s6695_s28 + $0x3e0] sm:$0xff]  ;;  %v340_v26 = vld [vmem:[%s6695_s28 + $0x3f0] sm:$0xff] }
  0x64   : > { %5038 = vmatmul.mubr.f32.gmra.mrb[2].mxu0 %v280_v27  ;;  %v341_v27 = vld [vmem:[%s6695_s28 + $0x8] sm:$0xff] }
  0x65   : > { %5040 = vmatprep.mubr.f32.mxu0 %v281_v28  ;;  %v342_v28 = vld [vmem:[%s6695_s28 + $0x18] sm:$0xff] }
  0x68   : > { %5041 = vmatmul.mubr.f32.gmra.mrb[4].mxu0 %v282_v29  ;;  %v343_v29 = vld [vmem:[%s6695_s28 + $0x28] sm:$0xff] }
  0x69   : > { %5043 = vmatprep.mubr.f32.mxu0 %v283_v30  ;;  %v344_v30 = vld [vmem:[%s6695_s28 + $0x38] sm:$0xff] }
  0x6c   : > { %5044 = vmatmul.mubr.f32.gmra.mrb[6].mxu0 %v284_v31  ;;  %v345_v31 = vld [vmem:[%s6695_s28 + $0x48] sm:$0xff] }
  0x6d   : > { %5046 = vmatprep.mubr.f32.mxu0 %v285_v32  ;;  %v346_v32 = vld [vmem:[%s6695_s28 + $0x58] sm:$0xff] }
  0x70   : > { %5047 = vmatmul.mubr.f32.gmra.mrb[8].mxu0 %v286_v33  ;;  %v347_v33 = vld [vmem:[%s6695_s28 + $0x68] sm:$0xff] }
  0x71   : > { %5049 = vmatprep.mubr.f32.mxu0 %v287_v34  ;;  %v348_v34 = vld [vmem:[%s6695_s28 + $0x78] sm:$0xff] }
  0x74   : > { %5050 = vmatmul.mubr.f32.gmra.mrb[10].mxu0 %v288_v35  ;;  %v349_v35 = vld [vmem:[%s6695_s28 + $0x88] sm:$0xff] }
  0x75   : > { %5052 = vmatprep.mubr.f32.mxu0 %v289_v36  ;;  %v350_v36 = vld [vmem:[%s6695_s28 + $0x98] sm:$0xff] }
  0x78   : > { %5053 = vmatmul.mubr.f32.gmra.mrb[12].mxu0 %v290_v37  ;;  %v351_v37 = vld [vmem:[%s6695_s28 + $0xa8] sm:$0xff] }
  0x79   : > { %5055 = vmatprep.mubr.f32.mxu0 %v291_v38  ;;  %v352_v38 = vld [vmem:[%s6695_s28 + $0xb8] sm:$0xff] }
  0x7c   : > { %5056 = vmatmul.mubr.f32.gmra.mrb[14].mxu0 %v292_v39  ;;  %v353_v39 = vld [vmem:[%s6695_s28 + $0xc8] sm:$0xff] }
  0x7d   : > { %5058 = vmatprep.mubr.f32.mxu0 %v293_v40  ;;  %v354_v40 = vld [vmem:[%s6695_s28 + $0xd8] sm:$0xff] }
  0x80   : > { %5059 = vmatmul.mubr.f32.gmra.mrb[16].mxu0 %v294_v41  ;;  %v355_v41 = vld [vmem:[%s6695_s28 + $0xe8] sm:$0xff] }
  0x81   : > { %5061 = vmatprep.mubr.f32.mxu0 %v295_v42  ;;  %v356_v42 = vld [vmem:[%s6695_s28 + $0xf8] sm:$0xff] }
  0x84   : > { %5062 = vmatmul.mubr.f32.gmra.mrb[18].mxu0 %v296_v43  ;;  %v357_v43 = vld [vmem:[%s6695_s28 + $0x108] sm:$0xff] }
  0x85   : > { %5064 = vmatprep.mubr.f32.mxu0 %v297_v44  ;;  %v358_v44 = vld [vmem:[%s6695_s28 + $0x118] sm:$0xff] }
  0x88   : > { %5065 = vmatmul.mubr.f32.gmra.mrb[20].mxu0 %v298_v45  ;;  %v359_v45 = vld [vmem:[%s6695_s28 + $0x128] sm:$0xff] }
  0x89   : > { %5067 = vmatprep.mubr.f32.mxu0 %v299_v46  ;;  %v360_v46 = vld [vmem:[%s6695_s28 + $0x138] sm:$0xff] }
  0x8c   : > { %5068 = vmatmul.mubr.f32.gmra.mrb[22].mxu0 %v300_v47  ;;  %v361_v47 = vld [vmem:[%s6695_s28 + $0x148] sm:$0xff] }
  0x8d   : > { %5070 = vmatprep.mubr.f32.mxu0 %v301_v48  ;;  %v362_v48 = vld [vmem:[%s6695_s28 + $0x158] sm:$0xff] }
  0x90   : > { %5071 = vmatmul.mubr.f32.gmra.mrb[24].mxu0 %v302_v49  ;;  %v363_v49 = vld [vmem:[%s6695_s28 + $0x168] sm:$0xff] }
  0x91   : > { %5073 = vmatprep.mubr.f32.mxu0 %v303_v50  ;;  %v364_v50 = vld [vmem:[%s6695_s28 + $0x178] sm:$0xff] }
  0x94   : > { %5074 = vmatmul.mubr.f32.gmra.mrb[26].mxu0 %v304_v51  ;;  %v365_v51 = vld [vmem:[%s6695_s28 + $0x188] sm:$0xff] }
  0x95   : > { %5076 = vmatprep.mubr.f32.mxu0 %v305_v52  ;;  %v366_v52 = vld [vmem:[%s6695_s28 + $0x198] sm:$0xff] }
  0x98   : > { %5077 = vmatmul.mubr.f32.gmra.mrb[28].mxu0 %v306_v53  ;;  %v367_v53 = vld [vmem:[%s6695_s28 + $0x1a8] sm:$0xff] }
  0x99   : > { %5079 = vmatprep.mubr.f32.mxu0 %v307_v54  ;;  %v368_v54 = vld [vmem:[%s6695_s28 + $0x1b8] sm:$0xff] }
  0x9c   : > { %5080 = vmatmul.mubr.f32.gmra.mrb[30].mxu0 %v308_v55  ;;  %v369_v55 = vld [vmem:[%s6695_s28 + $0x1c8] sm:$0xff] }
  0x9d   : > { %5082 = vmatprep.mubr.f32.mxu0 %v309_v56  ;;  %v370_v56 = vld [vmem:[%s6695_s28 + $0x1d8] sm:$0xff] }
  0xa0   : > { %5083 = vmatmul.mubr.f32.gmra.mrb[32].mxu0 %v310_v57  ;;  %v371_v57 = vld [vmem:[%s6695_s28 + $0x1e8] sm:$0xff] }
  0xa1   : > { %5085 = vmatprep.mubr.f32.mxu0 %v311_v58  ;;  %v372_v58 = vld [vmem:[%s6695_s28 + $0x1f8] sm:$0xff] }
  0xa4   : > { %5086 = vmatmul.mubr.f32.gmra.mrb[34].mxu0 %v312_v59  ;;  %v373_v59 = vld [vmem:[%s6695_s28 + $0x208] sm:$0xff] }
  0xa5   : > { %5088 = vmatprep.mubr.f32.mxu0 %v313_v60  ;;  %v374_v60 = vld [vmem:[%s6695_s28 + $0x218] sm:$0xff] }
  0xa8   : > { %5089 = vmatmul.mubr.f32.gmra.mrb[36].mxu0 %v314_v61  ;;  %v375_v61 = vld [vmem:[%s6695_s28 + $0x228] sm:$0xff] }
  0xa9   : > { %5091 = vmatprep.mubr.f32.mxu0 %v315_v62  ;;  %v376_v62 = vld [vmem:[%s6695_s28 + $0x238] sm:$0xff] }
  0xac   : > { %5092 = vmatmul.mubr.f32.gmra.mrb[38].mxu0 %v316_v63  ;;  %v377_v63 = vld [vmem:[%s6695_s28 + $0x248] sm:$0xff] }
  0xad   : > { %5094 = vmatprep.mubr.f32.mxu0 %v317_v0  ;;  %v378_v0 = vld [vmem:[%s6695_s28 + $0x258] sm:$0xff] }
  0xb0   : > { %5095 = vmatmul.mubr.f32.gmra.mrb[40].mxu0 %v318_v1  ;;  %v379_v1 = vld [vmem:[%s6695_s28 + $0x268] sm:$0xff] }
  0xb1   : > { %5097 = vmatprep.mubr.f32.mxu0 %v319_v2  ;;  %v380_v2 = vld [vmem:[%s6695_s28 + $0x278] sm:$0xff] }
  0xb4   : > { %5098 = vmatmul.mubr.f32.gmra.mrb[42].mxu0 %v320_v3  ;;  %v381_v3 = vld [vmem:[%s6695_s28 + $0x288] sm:$0xff] }
  0xb5   : > { %5100 = vmatprep.mubr.f32.mxu0 %v321_v4  ;;  %v382_v4 = vld [vmem:[%s6695_s28 + $0x298] sm:$0xff] }
  0xb8   : > { %5101 = vmatmul.mubr.f32.gmra.mrb[44].mxu0 %v322_v5  ;;  %v383_v5 = vld [vmem:[%s6695_s28 + $0x2a8] sm:$0xff] }
  0xb9   : > { %5103 = vmatprep.mubr.f32.mxu0 %v323_v6  ;;  %v6865_v6 = vld [vmem:[%s8828_s2] ss:$0 sm:$0xff] }
  0xbc   : > { %5104 = vmatmul.mubr.f32.gmra.mrb[46].mxu0 %v324_v7  ;;  %v384_v7 = vld [vmem:[%s6695_s28 + $0x2b8] sm:$0xff] }
  0xbd   : > { %5106 = vmatprep.mubr.f32.mxu0 %v325_v8  ;;  %v385_v8 = vld [vmem:[%s6695_s28 + $0x2c8] sm:$0xff] }
  0xc0   : > { %5107 = vmatmul.mubr.f32.gmra.mrb[48].mxu0 %v326_v11 }
  0xc1   : > { %5109 = vmatprep.mubr.f32.mxu0 %v327_v13  ;;  %v386_v13 = vld [vmem:[%s6695_s28 + $0x2d8] sm:$0xff] }
  0xc4   : > { %5110 = vmatmul.mubr.f32.gmra.mrb[50].mxu0 %v328_v14  ;;  %v387_v14 = vld [vmem:[%s6695_s28 + $0x2e8] sm:$0xff] }
  0xc5   : > { %5112 = vmatprep.mubr.f32.mxu0 %v329_v15 }
  0xc8   : > { %5113 = vmatmul.mubr.f32.gmra.mrb[52].mxu0 %v330_v16 }
  0xc9   : > { %5115 = vmatprep.mubr.f32.mxu0 %v331_v17 }
  0xcc   : > { %5116 = vmatmul.mubr.f32.gmra.mrb[54].mxu0 %v332_v18 }
  0xcd   : > { %5118 = vmatprep.mubr.f32.mxu0 %v333_v19  ;;  %v388_v19 = vld [vmem:[%s6695_s28 + $0x2f8] sm:$0xff] }
  0xd0   : > { %5119 = vmatmul.mubr.f32.gmra.mrb[56].mxu0 %v334_v20  ;;  %v389_v20 = vld [vmem:[%s6695_s28 + $0x308] sm:$0xff] }
  0xd1   : > { %5121 = vmatprep.mubr.f32.mxu0 %v335_v21 }
  0xd4   : > { %5122 = vmatmul.mubr.f32.gmra.mrb[58].mxu0 %v336_v22 }
  0xd5   : > { %5124 = vmatprep.mubr.f32.mxu0 %v337_v23 }
  0xd8   : > { %5125 = vmatmul.mubr.f32.gmra.mrb[60].mxu0 %v338_v24 }
  0xd9   : > { %5127 = vmatprep.mubr.f32.mxu0 %v339_v25  ;;  %v390_v25 = vld [vmem:[%s6695_s28 + $0x318] sm:$0xff] }
  0xdc   : > { %5128 = vmatmul.mubr.f32.gmra.mrb[62].mxu0 %v340_v26  ;;  %v391_v26 = vld [vmem:[%s6695_s28 + $0x328] sm:$0xff] }
  0xdd   : > { %5130 = vmatprep.mubr.f32.mxu0 %v341_v27 }
  0xe0   : > { %5131 = vmatmul.mubr.f32.gmra.mrb[64].mxu0 %v342_v28 }
  0xe1   : > { %5133 = vmatprep.mubr.f32.mxu0 %v343_v29 }
  0xe4   : > { %5134 = vmatmul.mubr.f32.gmra.mrb[66].mxu0 %v344_v30 }
  0xe5   : > { %5136 = vmatprep.mubr.f32.mxu0 %v345_v31 }
  0xe8   : > { %5137 = vmatmul.mubr.f32.gmra.mrb[68].mxu0 %v346_v32  ;;  %v392_v32 = vld [vmem:[%s6695_s28 + $0x338] sm:$0xff] }
  0xe9   : > { %5139 = vmatprep.mubr.f32.mxu0 %v347_v33 }
  0xec   : > { %5140 = vmatmul.mubr.f32.gmra.mrb[70].mxu0 %v348_v34  ;;  %v393_v34 = vld [vmem:[%s6695_s28 + $0x348] sm:$0xff] }
  0xed   : > { %5142 = vmatprep.mubr.f32.mxu0 %v349_v35 }
  0xf0   : > { %5143 = vmatmul.mubr.f32.gmra.mrb[72].mxu0 %v350_v36 }
  0xf1   : > { %5145 = vmatprep.mubr.f32.mxu0 %v351_v37 }
  0xf4   : > { %5146 = vmatmul.mubr.f32.gmra.mrb[74].mxu0 %v352_v38 }
  0xf5   : > { %5148 = vmatprep.mubr.f32.mxu0 %v353_v39 }
  0xf8   : > { %5149 = vmatmul.mubr.f32.gmra.mrb[76].mxu0 %v354_v40  ;;  %v394_v40 = vld [vmem:[%s6695_s28 + $0x358] sm:$0xff] }
  0xf9   : > { %5151 = vmatprep.mubr.f32.mxu0 %v355_v41 }
  0xfc   : > { %5152 = vmatmul.mubr.f32.gmra.mrb[78].mxu0 %v356_v42  ;;  %v395_v42 = vld [vmem:[%s6695_s28 + $0x368] sm:$0xff] }
  0xfd   : > { %5154 = vmatprep.mubr.f32.mxu0 %v357_v43 }
 0x100   : > { %5155 = vmatmul.mubr.f32.gmra.mrb[80].mxu0 %v358_v44 }
 0x101   : > { %5157 = vmatprep.mubr.f32.mxu0 %v359_v45 }
 0x104   : > { %5158 = vmatmul.mubr.f32.gmra.mrb[82].mxu0 %v360_v46 }
 0x105   : > { %5160 = vmatprep.mubr.f32.mxu0 %v361_v47 }
 0x108   : > { %5161 = vmatmul.mubr.f32.gmra.mrb[84].mxu0 %v362_v48  ;;  %v396_v48 = vld [vmem:[%s6695_s28 + $0x378] sm:$0xff] }
 0x109   : > { %5163 = vmatprep.mubr.f32.mxu0 %v363_v49 }
 0x10c   : > { %5164 = vmatmul.mubr.f32.gmra.mrb[86].mxu0 %v364_v50  ;;  %v397_v50 = vld [vmem:[%s6695_s28 + $0x388] sm:$0xff] }
 0x10d   : > { %5166 = vmatprep.mubr.f32.mxu0 %v365_v51 }
 0x110   : > { %5167 = vmatmul.mubr.f32.gmra.mrb[88].mxu0 %v366_v52 }
 0x111   : > { %5169 = vmatprep.mubr.f32.mxu0 %v367_v53 }
 0x114   : > { %5170 = vmatmul.mubr.f32.gmra.mrb[90].mxu0 %v368_v54 }
 0x115   : > { %5172 = vmatprep.mubr.f32.mxu0 %v369_v55 }
 0x118   : > { %5173 = vmatmul.mubr.f32.gmra.mrb[92].mxu0 %v370_v56  ;;  %v398_v56 = vld [vmem:[%s6695_s28 + $0x398] sm:$0xff] }
 0x119   : > { %5175 = vmatprep.mubr.f32.mxu0 %v371_v57 }
 0x11c   : > { %5176 = vmatmul.mubr.f32.gmra.mrb[94].mxu0 %v372_v58  ;;  %v399_v58 = vld [vmem:[%s6695_s28 + $0x3a8] sm:$0xff] }
 0x11d   : > { %5178 = vmatprep.mubr.f32.mxu0 %v373_v59 }
 0x120   : > { %5179 = vmatmul.mubr.f32.gmra.mrb[96].mxu0 %v374_v60 }
 0x121   : > { %5181 = vmatprep.mubr.f32.mxu0 %v375_v61 }
 0x124   : > { %5182 = vmatmul.mubr.f32.gmra.mrb[98].mxu0 %v376_v62 }
 0x125   : > { %5184 = vmatprep.mubr.f32.mxu0 %v377_v63 }
 0x128   : > { %5185 = vmatmul.mubr.f32.gmra.mrb[100].mxu0 %v378_v0  ;;  %v400_v0 = vld [vmem:[%s6695_s28 + $0x3b8] sm:$0xff] }
 0x129   : > { %5187 = vmatprep.mubr.f32.mxu0 %v379_v1 }
 0x12c   : > { %5188 = vmatmul.mubr.f32.gmra.mrb[102].mxu0 %v380_v2  ;;  %v401_v2 = vld [vmem:[%s6695_s28 + $0x3c8] sm:$0xff] }
 0x12d   : > { %5190 = vmatprep.mubr.f32.mxu0 %v381_v3 }
 0x130   : > { %5191 = vmatmul.mubr.f32.gmra.mrb[104].mxu0 %v382_v4 }
 0x131   : > { %5193 = vmatprep.mubr.f32.mxu0 %v383_v5 }
 0x133   : > { %v5036_v9 = vpop.f32.mrb[0].mxu0 }
 0x134   : > { %v483_v10 = vadd.f32 %v5036_v9, %v6865_v6  ;;  %v477_v11 = vpop.f32.mrb[1].mxu0  ;;  %5194 = vmatmul.mubr.f32.gmra.mrb[106].mxu0 %v384_v7  ;;  %v402_v9 = vld [vmem:[%s6695_s28 + $0x3d8] sm:$0xff] }
 0x135   : > { %v478_v12 = vadd.f32 %v6865_v6, %v477_v11  ;;  %5196 = vmatprep.mubr.f32.mxu0 %v385_v8  ;;  %v403_v11 = vld [vmem:[%s6695_s28 + $0x3e8] sm:$0xff] }
 0x137   : > { %5775 = vtanh.f32 %v478_v12  ;;  %v5039_v15 = vpop.f32.mrb[2].mxu0 }
 0x138   : > { %5777 = vtanh.f32 %v483_v10  ;;  %v493_v16 = vadd.f32 %v5039_v15, %v6865_v6  ;;  %v487_v17 = vpop.f32.mrb[3].mxu0  ;;  %5197 = vmatmul.mubr.f32.gmra.mrb[108].mxu0 %v386_v13 }
 0x139   : > { %v488_v18 = vadd.f32 %v6865_v6, %v487_v17  ;;  %5199 = vmatprep.mubr.f32.mxu0 %v387_v14  ;;  %v404_v17 = vld [vmem:[%s6695_s28 + $0x3f8] sm:$0xff] }
 0x13b   : > { %5779 = vtanh.f32 %v488_v18  ;;  %v5042_v21 = vpop.f32.mrb[4].mxu0 }
 0x13c   : > { %5781 = vtanh.f32 %v493_v16  ;;  %v503_v22 = vadd.f32 %v5042_v21, %v6865_v6  ;;  %v497_v23 = vpop.f32.mrb[5].mxu0  ;;  %5200 = vmatmul.mubr.f32.gmra.mrb[110].mxu0 %v388_v19 }
 0x13d   : > { %v498_v24 = vadd.f32 %v6865_v6, %v497_v23  ;;  %5202 = vmatprep.mubr.f32.mxu0 %v389_v20 }
 0x13f   : > { %5783 = vtanh.f32 %v498_v24  ;;  %v5045_v27 = vpop.f32.mrb[6].mxu0 }
 0x140   : > { %5785 = vtanh.f32 %v503_v22  ;;  %v513_v28 = vadd.f32 %v5045_v27, %v6865_v6  ;;  %v507_v29 = vpop.f32.mrb[7].mxu0  ;;  %5203 = vmatmul.mubr.f32.gmra.mrb[112].mxu0 %v390_v25 }
 0x141   : > { %v5776_v30 = vpop.eup %5775  ;;  %v508_v31 = vadd.f32 %v6865_v6, %v507_v29  ;;  %5205 = vmatprep.mubr.f32.mxu0 %v391_v26 }
 0x142   : > { %v5778_v33 = vpop.eup %5777  ;;  %5230 = vmatprep.mubr.msk.f32.mxu1 %vm1244_vm0, %v5776_v30 }
 0x143   : > { %5787 = vtanh.f32 %v508_v31  ;;  %v5048_v35 = vpop.f32.mrb[8].mxu0  ;;  %5231 = vmatmul.mubr.msk.f32.vlgmr.msra.gmra.mrb[0].mxu1 %vm1244_vm0, %v5778_v33 }
 0x144   : > { %5789 = vtanh.f32 %v513_v28  ;;  %v523_v36 = vadd.f32 %v5048_v35, %v6865_v6  ;;  %v517_v37 = vpop.f32.mrb[9].mxu0  ;;  %5206 = vmatmul.mubr.f32.gmra.mrb[114].mxu0 %v392_v32 }
 0x145   : > { %v5780_v38 = vpop.eup %5779  ;;  %v518_v39 = vadd.f32 %v6865_v6, %v517_v37  ;;  %5208 = vmatprep.mubr.f32.mxu0 %v393_v34 }
 0x146   : > { %v5782_v41 = vpop.eup %5781  ;;  %5233 = vmatprep.mubr.msk.f32.mxu1 %vm1244_vm0, %v5780_v38 }
 0x147   : > { %5791 = vtanh.f32 %v518_v39  ;;  %v5051_v43 = vpop.f32.mrb[10].mxu0  ;;  %5234 = vmatmul.mubr.msk.f32.gmra.mrb[2].mxu1 %vm1244_vm0, %v5782_v41 }
 0x148   : > { %5793 = vtanh.f32 %v523_v36  ;;  %v533_v44 = vadd.f32 %v5051_v43, %v6865_v6  ;;  %v527_v45 = vpop.f32.mrb[11].mxu0  ;;  %5209 = vmatmul.mubr.f32.gmra.mrb[116].mxu0 %v394_v40 }
 0x149   : > { %v5784_v46 = vpop.eup %5783  ;;  %v528_v47 = vadd.f32 %v6865_v6, %v527_v45  ;;  %5211 = vmatprep.mubr.f32.mxu0 %v395_v42 }
 0x14a   : > { %v5786_v49 = vpop.eup %5785  ;;  %5236 = vmatprep.mubr.msk.f32.mxu1 %vm1244_vm0, %v5784_v46 }
 0x14b   : > { %5795 = vtanh.f32 %v528_v47  ;;  %v5054_v51 = vpop.f32.mrb[12].mxu0  ;;  %5237 = vmatmul.mubr.msk.f32.gmra.mrb[4].mxu1 %vm1244_vm0, %v5786_v49 }
 0x14c   : > { %5797 = vtanh.f32 %v533_v44  ;;  %v543_v52 = vadd.f32 %v5054_v51, %v6865_v6  ;;  %v537_v53 = vpop.f32.mrb[13].mxu0  ;;  %5212 = vmatmul.mubr.f32.gmra.mrb[118].mxu0 %v396_v48 }
 0x14d   : > { %v5788_v54 = vpop.eup %5787  ;;  %v538_v55 = vadd.f32 %v6865_v6, %v537_v53  ;;  %5214 = vmatprep.mubr.f32.mxu0 %v397_v50 }
 0x14e   : > { %v5790_v57 = vpop.eup %5789  ;;  %5239 = vmatprep.mubr.msk.f32.mxu1 %vm1244_vm0, %v5788_v54 }
 0x14f   : > { %5799 = vtanh.f32 %v538_v55  ;;  %v5057_v59 = vpop.f32.mrb[14].mxu0  ;;  %5240 = vmatmul.mubr.msk.f32.gmra.mrb[6].mxu1 %vm1244_vm0, %v5790_v57 }
 0x150   : > { %5801 = vtanh.f32 %v543_v52  ;;  %v553_v60 = vadd.f32 %v5057_v59, %v6865_v6  ;;  %v547_v61 = vpop.f32.mrb[15].mxu0  ;;  %5215 = vmatmul.mubr.f32.gmra.mrb[120].mxu0 %v398_v56 }
 0x151   : > { %v5792_v62 = vpop.eup %5791  ;;  %v548_v63 = vadd.f32 %v6865_v6, %v547_v61  ;;  %5217 = vmatprep.mubr.f32.mxu0 %v399_v58 }
 0x152   : > { %v5794_v1 = vpop.eup %5793  ;;  %5242 = vmatprep.mubr.msk.f32.mxu1 %vm1244_vm0, %v5792_v62 }
 0x153   : > { %5803 = vtanh.f32 %v548_v63  ;;  %v5060_v3 = vpop.f32.mrb[16].mxu0  ;;  %5243 = vmatmul.mubr.msk.f32.gmra.mrb[8].mxu1 %vm1244_vm0, %v5794_v1 }
 0x154   : > { %5805 = vtanh.f32 %v553_v60  ;;  %v563_v4 = vadd.f32 %v5060_v3, %v6865_v6  ;;  %v557_v5 = vpop.f32.mrb[17].mxu0  ;;  %5218 = vmatmul.mubr.f32.gmra.mrb[122].mxu0 %v400_v0 }
 0x155   : > { %v5796_v7 = vpop.eup %5795  ;;  %v558_v8 = vadd.f32 %v6865_v6, %v557_v5  ;;  %5220 = vmatprep.mubr.f32.mxu0 %v401_v2 }
 0x156   : > { %v5798_v10 = vpop.eup %5797  ;;  %5245 = vmatprep.mubr.msk.f32.mxu1 %vm1244_vm0, %v5796_v7 }
 0x157   : > { %5807 = vtanh.f32 %v558_v8  ;;  %v5063_v12 = vpop.f32.mrb[18].mxu0  ;;  %5246 = vmatmul.mubr.msk.f32.gmra.mrb[10].mxu1 %vm1244_vm0, %v5798_v10 }
 0x158   : > { %5809 = vtanh.f32 %v563_v4  ;;  %v573_v13 = vadd.f32 %v5063_v12, %v6865_v6  ;;  %v567_v14 = vpop.f32.mrb[19].mxu0  ;;  %5221 = vmatmul.mubr.f32.gmra.mrb[124].mxu0 %v402_v9 }
 0x159   : > { %v5800_v15 = vpop.eup %5799  ;;  %v568_v16 = vadd.f32 %v6865_v6, %v567_v14  ;;  %5223 = vmatprep.mubr.f32.mxu0 %v403_v11 }
 0x15a   : > { %v5802_v18 = vpop.eup %5801  ;;  %5248 = vmatprep.mubr.msk.f32.mxu1 %vm1244_vm0, %v5800_v15 }
 0x15b   : > { %5811 = vtanh.f32 %v568_v16  ;;  %v5066_v19 = vpop.f32.mrb[20].mxu0  ;;  %5249 = vmatmul.mubr.msk.f32.gmra.mrb[12].mxu1 %vm1244_vm0, %v5802_v18 }
 0x15c   : > { %5813 = vtanh.f32 %v573_v13  ;;  %v583_v20 = vadd.f32 %v5066_v19, %v6865_v6  ;;  %v577_v21 = vpop.f32.mrb[21].mxu0  ;;  %5224 = vmatmul.mubr.f32.gmra.mrb[126].mxu0 %v404_v17 }
 0x15d   : > { %v5804_v22 = vpop.eup %5803  ;;  %v578_v23 = vadd.f32 %v6865_v6, %v577_v21 }
 0x15e   : > { %v5806_v24 = vpop.eup %5805  ;;  %5251 = vmatprep.mubr.msk.f32.mxu1 %vm1244_vm0, %v5804_v22 }
 0x15f   : > { %5815 = vtanh.f32 %v578_v23  ;;  %v5069_v25 = vpop.f32.mrb[22].mxu0  ;;  %5252 = vmatmul.mubr.msk.f32.gmra.mrb[14].mxu1 %vm1244_vm0, %v5806_v24 }
 0x160   : > { %5817 = vtanh.f32 %v583_v20  ;;  %v593_v26 = vadd.f32 %v5069_v25, %v6865_v6  ;;  %v587_v27 = vpop.f32.mrb[23].mxu0 }
 0x161   : > { %v5808_v28 = vpop.eup %5807  ;;  %v588_v29 = vadd.f32 %v6865_v6, %v587_v27 }
 0x162   : > { %v5810_v30 = vpop.eup %5809  ;;  %5254 = vmatprep.mubr.msk.f32.mxu1 %vm1244_vm0, %v5808_v28 }
 0x163   : > { %5819 = vtanh.f32 %v588_v29  ;;  %v5072_v31 = vpop.f32.mrb[24].mxu0  ;;  %5255 = vmatmul.mubr.msk.f32.gmra.mrb[16].mxu1 %vm1244_vm0, %v5810_v30 }
 0x164   : > { %5821 = vtanh.f32 %v593_v26  ;;  %v603_v32 = vadd.f32 %v5072_v31, %v6865_v6  ;;  %v597_v33 = vpop.f32.mrb[25].mxu0 }
 0x165   : > { %v5812_v34 = vpop.eup %5811  ;;  %v598_v35 = vadd.f32 %v6865_v6, %v597_v33 }
 0x166   : > { %v5814_v36 = vpop.eup %5813  ;;  %5257 = vmatprep.mubr.msk.f32.mxu1 %vm1244_vm0, %v5812_v34 }
 0x167   : > { %5823 = vtanh.f32 %v598_v35  ;;  %v5075_v37 = vpop.f32.mrb[26].mxu0  ;;  %5258 = vmatmul.mubr.msk.f32.gmra.mrb[18].mxu1 %vm1244_vm0, %v5814_v36 }
 0x168   : > { %5825 = vtanh.f32 %v603_v32  ;;  %v613_v38 = vadd.f32 %v5075_v37, %v6865_v6  ;;  %v607_v39 = vpop.f32.mrb[27].mxu0 }
 0x169   : > { %v5816_v40 = vpop.eup %5815  ;;  %v608_v41 = vadd.f32 %v6865_v6, %v607_v39 }
 0x16a   : > { %v5818_v42 = vpop.eup %5817  ;;  %5260 = vmatprep.mubr.msk.f32.mxu1 %vm1244_vm0, %v5816_v40 }
 0x16b   : > { %5827 = vtanh.f32 %v608_v41  ;;  %v5078_v43 = vpop.f32.mrb[28].mxu0  ;;  %5261 = vmatmul.mubr.msk.f32.gmra.mrb[20].mxu1 %vm1244_vm0, %v5818_v42 }
 0x16c   : > { %5829 = vtanh.f32 %v613_v38  ;;  %v623_v44 = vadd.f32 %v5078_v43, %v6865_v6  ;;  %v617_v45 = vpop.f32.mrb[29].mxu0 }
 0x16d   : > { %v5820_v46 = vpop.eup %5819  ;;  %v618_v47 = vadd.f32 %v6865_v6, %v617_v45 }
 0x16e   : > { %v5822_v48 = vpop.eup %5821  ;;  %5263 = vmatprep.mubr.msk.f32.mxu1 %vm1244_vm0, %v5820_v46 }
 0x16f   : > { %5831 = vtanh.f32 %v618_v47  ;;  %v5081_v49 = vpop.f32.mrb[30].mxu0  ;;  %5264 = vmatmul.mubr.msk.f32.gmra.mrb[22].mxu1 %vm1244_vm0, %v5822_v48 }
 0x170   : > { %5833 = vtanh.f32 %v623_v44  ;;  %v633_v50 = vadd.f32 %v5081_v49, %v6865_v6  ;;  %v627_v51 = vpop.f32.mrb[31].mxu0 }
 0x171   : > { %v5824_v52 = vpop.eup %5823  ;;  %v628_v53 = vadd.f32 %v6865_v6, %v627_v51 }
 0x172   : > { %v5826_v54 = vpop.eup %5825  ;;  %5266 = vmatprep.mubr.msk.f32.mxu1 %vm1244_vm0, %v5824_v52 }
 0x173   : > { %5835 = vtanh.f32 %v628_v53  ;;  %v5084_v55 = vpop.f32.mrb[32].mxu0  ;;  %5267 = vmatmul.mubr.msk.f32.gmra.mrb[24].mxu1 %vm1244_vm0, %v5826_v54 }
 0x174   : > { %5837 = vtanh.f32 %v633_v50  ;;  %v643_v56 = vadd.f32 %v5084_v55, %v6865_v6  ;;  %v637_v57 = vpop.f32.mrb[33].mxu0 }
 0x175   : > { %v5828_v58 = vpop.eup %5827  ;;  %v638_v59 = vadd.f32 %v6865_v6, %v637_v57 }
 0x176   : > { %v5830_v60 = vpop.eup %5829  ;;  %5269 = vmatprep.mubr.msk.f32.mxu1 %vm1244_vm0, %v5828_v58 }
 0x177   : > { %5839 = vtanh.f32 %v638_v59  ;;  %v5087_v61 = vpop.f32.mrb[34].mxu0  ;;  %5270 = vmatmul.mubr.msk.f32.gmra.mrb[26].mxu1 %vm1244_vm0, %v5830_v60 }
 0x178   : > { %5841 = vtanh.f32 %v643_v56  ;;  %v653_v62 = vadd.f32 %v5087_v61, %v6865_v6  ;;  %v647_v63 = vpop.f32.mrb[35].mxu0 }
 0x179   : > { %v5832_v0 = vpop.eup %5831  ;;  %v648_v1 = vadd.f32 %v6865_v6, %v647_v63 }
 0x17a   : > { %v5834_v2 = vpop.eup %5833  ;;  %5272 = vmatprep.mubr.msk.f32.mxu1 %vm1244_vm0, %v5832_v0 }
 0x17b   : > { %5843 = vtanh.f32 %v648_v1  ;;  %v5090_v3 = vpop.f32.mrb[36].mxu0  ;;  %5273 = vmatmul.mubr.msk.f32.gmra.mrb[28].mxu1 %vm1244_vm0, %v5834_v2 }
 0x17c   : > { %5845 = vtanh.f32 %v653_v62  ;;  %v663_v4 = vadd.f32 %v5090_v3, %v6865_v6  ;;  %v657_v5 = vpop.f32.mrb[37].mxu0 }
 0x17d   : > { %v5836_v7 = vpop.eup %5835  ;;  %v658_v8 = vadd.f32 %v6865_v6, %v657_v5 }
 0x17e   : > { %v5838_v9 = vpop.eup %5837  ;;  %5275 = vmatprep.mubr.msk.f32.mxu1 %vm1244_vm0, %v5836_v7 }
 0x17f   : > { %5847 = vtanh.f32 %v658_v8  ;;  %v5093_v10 = vpop.f32.mrb[38].mxu0  ;;  %5276 = vmatmul.mubr.msk.f32.gmra.mrb[30].mxu1 %vm1244_vm0, %v5838_v9 }
 0x180   : > { %5849 = vtanh.f32 %v663_v4  ;;  %v673_v11 = vadd.f32 %v5093_v10, %v6865_v6  ;;  %v667_v12 = vpop.f32.mrb[39].mxu0 }
 0x181   : > { %v5840_v13 = vpop.eup %5839  ;;  %v668_v14 = vadd.f32 %v6865_v6, %v667_v12 }
 0x182   : > { %v5842_v15 = vpop.eup %5841  ;;  %5278 = vmatprep.mubr.msk.f32.mxu1 %vm1244_vm0, %v5840_v13 }
 0x183   : > { %5851 = vtanh.f32 %v668_v14  ;;  %v5096_v16 = vpop.f32.mrb[40].mxu0  ;;  %5279 = vmatmul.mubr.msk.f32.gmra.mrb[32].mxu1 %vm1244_vm0, %v5842_v15 }
 0x184   : > { %5853 = vtanh.f32 %v673_v11  ;;  %v683_v17 = vadd.f32 %v5096_v16, %v6865_v6  ;;  %v677_v18 = vpop.f32.mrb[41].mxu0 }
 0x185   : > { %v5844_v19 = vpop.eup %5843  ;;  %v678_v20 = vadd.f32 %v6865_v6, %v677_v18 }
 0x186   : > { %v5846_v21 = vpop.eup %5845  ;;  %5281 = vmatprep.mubr.msk.f32.mxu1 %vm1244_vm0, %v5844_v19 }
 0x187   : > { %5855 = vtanh.f32 %v678_v20  ;;  %v5099_v22 = vpop.f32.mrb[42].mxu0  ;;  %5282 = vmatmul.mubr.msk.f32.gmra.mrb[34].mxu1 %vm1244_vm0, %v5846_v21 }
 0x188   : > { %5857 = vtanh.f32 %v683_v17  ;;  %v693_v23 = vadd.f32 %v5099_v22, %v6865_v6  ;;  %v687_v24 = vpop.f32.mrb[43].mxu0 }
 0x189   : > { %v5848_v25 = vpop.eup %5847  ;;  %v688_v26 = vadd.f32 %v6865_v6, %v687_v24 }
 0x18a   : > { %v5850_v27 = vpop.eup %5849  ;;  %5284 = vmatprep.mubr.msk.f32.mxu1 %vm1244_vm0, %v5848_v25 }
 0x18b   : > { %5859 = vtanh.f32 %v688_v26  ;;  %v5102_v28 = vpop.f32.mrb[44].mxu0  ;;  %5285 = vmatmul.mubr.msk.f32.gmra.mrb[36].mxu1 %vm1244_vm0, %v5850_v27 }
 0x18c   : > { %5861 = vtanh.f32 %v693_v23  ;;  %v703_v29 = vadd.f32 %v5102_v28, %v6865_v6  ;;  %v697_v30 = vpop.f32.mrb[45].mxu0 }
 0x18d   : > { %v5852_v31 = vpop.eup %5851  ;;  %v698_v32 = vadd.f32 %v6865_v6, %v697_v30 }
 0x18e   : > { %v5854_v33 = vpop.eup %5853  ;;  %5287 = vmatprep.mubr.msk.f32.mxu1 %vm1244_vm0, %v5852_v31 }
 0x18f   : > { %5863 = vtanh.f32 %v698_v32  ;;  %v5105_v34 = vpop.f32.mrb[46].mxu0  ;;  %5288 = vmatmul.mubr.msk.f32.gmra.mrb[38].mxu1 %vm1244_vm0, %v5854_v33 }
 0x190   : > { %5865 = vtanh.f32 %v703_v29  ;;  %v713_v35 = vadd.f32 %v5105_v34, %v6865_v6  ;;  %v707_v36 = vpop.f32.mrb[47].mxu0 }
 0x191   : > { %v5856_v37 = vpop.eup %5855  ;;  %v708_v38 = vadd.f32 %v6865_v6, %v707_v36 }
 0x192   : > { %v5858_v39 = vpop.eup %5857  ;;  %5290 = vmatprep.mubr.msk.f32.mxu1 %vm1244_vm0, %v5856_v37 }
 0x193   : > { %5867 = vtanh.f32 %v708_v38  ;;  %v5108_v40 = vpop.f32.mrb[48].mxu0  ;;  %5291 = vmatmul.mubr.msk.f32.gmra.mrb[40].mxu1 %vm1244_vm0, %v5858_v39 }
 0x194   : > { %5869 = vtanh.f32 %v713_v35  ;;  %v723_v41 = vadd.f32 %v5108_v40, %v6865_v6  ;;  %v717_v42 = vpop.f32.mrb[49].mxu0 }
 0x195   : > { %v5860_v43 = vpop.eup %5859  ;;  %v718_v44 = vadd.f32 %v6865_v6, %v717_v42 }
 0x196   : > { %v5862_v45 = vpop.eup %5861  ;;  %5293 = vmatprep.mubr.msk.f32.mxu1 %vm1244_vm0, %v5860_v43 }
 0x197   : > { %5871 = vtanh.f32 %v718_v44  ;;  %v5111_v46 = vpop.f32.mrb[50].mxu0  ;;  %5294 = vmatmul.mubr.msk.f32.gmra.mrb[42].mxu1 %vm1244_vm0, %v5862_v45 }
 0x198   : > { %5873 = vtanh.f32 %v723_v41  ;;  %v733_v47 = vadd.f32 %v5111_v46, %v6865_v6  ;;  %v727_v48 = vpop.f32.mrb[51].mxu0 }
 0x199   : > { %v5864_v49 = vpop.eup %5863  ;;  %v728_v50 = vadd.f32 %v6865_v6, %v727_v48 }
 0x19a   : > { %v5866_v51 = vpop.eup %5865  ;;  %5296 = vmatprep.mubr.msk.f32.mxu1 %vm1244_vm0, %v5864_v49 }
 0x19b   : > { %5875 = vtanh.f32 %v728_v50  ;;  %v5114_v52 = vpop.f32.mrb[52].mxu0  ;;  %5297 = vmatmul.mubr.msk.f32.gmra.mrb[44].mxu1 %vm1244_vm0, %v5866_v51 }
 0x19c   : > { %5877 = vtanh.f32 %v733_v47  ;;  %v743_v53 = vadd.f32 %v5114_v52, %v6865_v6  ;;  %v737_v54 = vpop.f32.mrb[53].mxu0 }
 0x19d   : > { %v5868_v55 = vpop.eup %5867  ;;  %v738_v56 = vadd.f32 %v6865_v6, %v737_v54 }
 0x19e   : > { %v5870_v57 = vpop.eup %5869  ;;  %5299 = vmatprep.mubr.msk.f32.mxu1 %vm1244_vm0, %v5868_v55 }
 0x19f   : > { %5879 = vtanh.f32 %v738_v56  ;;  %v5117_v58 = vpop.f32.mrb[54].mxu0  ;;  %5300 = vmatmul.mubr.msk.f32.gmra.mrb[46].mxu1 %vm1244_vm0, %v5870_v57 }
 0x1a0   : > { %5881 = vtanh.f32 %v743_v53  ;;  %v753_v59 = vadd.f32 %v5117_v58, %v6865_v6  ;;  %v747_v60 = vpop.f32.mrb[55].mxu0 }
 0x1a1   : > { %v5872_v61 = vpop.eup %5871  ;;  %v748_v62 = vadd.f32 %v6865_v6, %v747_v60 }
 0x1a2   : > { %v5874_v63 = vpop.eup %5873  ;;  %5302 = vmatprep.mubr.msk.f32.mxu1 %vm1244_vm0, %v5872_v61 }
 0x1a3   : > { %5883 = vtanh.f32 %v748_v62  ;;  %v5120_v0 = vpop.f32.mrb[56].mxu0  ;;  %5303 = vmatmul.mubr.msk.f32.gmra.mrb[48].mxu1 %vm1244_vm0, %v5874_v63 }
 0x1a4   : > { %5885 = vtanh.f32 %v753_v59  ;;  %v763_v1 = vadd.f32 %v5120_v0, %v6865_v6  ;;  %v757_v2 = vpop.f32.mrb[57].mxu0 }
 0x1a5   : > { %v5876_v3 = vpop.eup %5875  ;;  %v758_v4 = vadd.f32 %v6865_v6, %v757_v2 }
 0x1a6   : > { %v5878_v5 = vpop.eup %5877  ;;  %5305 = vmatprep.mubr.msk.f32.mxu1 %vm1244_vm0, %v5876_v3 }
 0x1a7   : > { %5887 = vtanh.f32 %v758_v4  ;;  %v5123_v7 = vpop.f32.mrb[58].mxu0  ;;  %5306 = vmatmul.mubr.msk.f32.gmra.mrb[50].mxu1 %vm1244_vm0, %v5878_v5 }
 0x1a8   : > { %5889 = vtanh.f32 %v763_v1  ;;  %v773_v8 = vadd.f32 %v5123_v7, %v6865_v6  ;;  %v767_v9 = vpop.f32.mrb[59].mxu0 }
 0x1a9   : > { %v5880_v10 = vpop.eup %5879  ;;  %v768_v11 = vadd.f32 %v6865_v6, %v767_v9 }
 0x1aa   : > { %v5882_v12 = vpop.eup %5881  ;;  %5308 = vmatprep.mubr.msk.f32.mxu1 %vm1244_vm0, %v5880_v10 }
 0x1ab   : > { %5891 = vtanh.f32 %v768_v11  ;;  %v5126_v13 = vpop.f32.mrb[60].mxu0  ;;  %5309 = vmatmul.mubr.msk.f32.gmra.mrb[52].mxu1 %vm1244_vm0, %v5882_v12 }
 0x1ac   : > { %5893 = vtanh.f32 %v773_v8  ;;  %v783_v14 = vadd.f32 %v5126_v13, %v6865_v6  ;;  %v777_v15 = vpop.f32.mrb[61].mxu0 }
 0x1ad   : > { %v5884_v16 = vpop.eup %5883  ;;  %v778_v17 = vadd.f32 %v6865_v6, %v777_v15 }
 0x1ae   : > { %v5886_v18 = vpop.eup %5885  ;;  %5311 = vmatprep.mubr.msk.f32.mxu1 %vm1244_vm0, %v5884_v16 }
 0x1af   : > { %5895 = vtanh.f32 %v778_v17  ;;  %v5129_v19 = vpop.f32.mrb[62].mxu0  ;;  %5312 = vmatmul.mubr.msk.f32.gmra.mrb[54].mxu1 %vm1244_vm0, %v5886_v18 }
 0x1b0   : > { %5897 = vtanh.f32 %v783_v14  ;;  %v793_v20 = vadd.f32 %v5129_v19, %v6865_v6  ;;  %v787_v21 = vpop.f32.mrb[63].mxu0 }
 0x1b1   : > { %v5888_v22 = vpop.eup %5887  ;;  %v788_v23 = vadd.f32 %v6865_v6, %v787_v21 }
 0x1b2   : > { %v5890_v24 = vpop.eup %5889  ;;  %5314 = vmatprep.mubr.msk.f32.mxu1 %vm1244_vm0, %v5888_v22 }
 0x1b3   : > { %5899 = vtanh.f32 %v788_v23  ;;  %v5132_v25 = vpop.f32.mrb[64].mxu0  ;;  %5315 = vmatmul.mubr.msk.f32.gmra.mrb[56].mxu1 %vm1244_vm0, %v5890_v24 }
 0x1b4   : > { %5901 = vtanh.f32 %v793_v20  ;;  %v803_v26 = vadd.f32 %v5132_v25, %v6865_v6  ;;  %v797_v27 = vpop.f32.mrb[65].mxu0 }
 0x1b5   : > { %v5892_v28 = vpop.eup %5891  ;;  %v798_v29 = vadd.f32 %v6865_v6, %v797_v27 }
 0x1b6   : > { %v5894_v30 = vpop.eup %5893  ;;  %5317 = vmatprep.mubr.msk.f32.mxu1 %vm1244_vm0, %v5892_v28 }
 0x1b7   : > { %5903 = vtanh.f32 %v798_v29  ;;  %v5135_v31 = vpop.f32.mrb[66].mxu0  ;;  %5318 = vmatmul.mubr.msk.f32.gmra.mrb[58].mxu1 %vm1244_vm0, %v5894_v30 }
 0x1b8   : > { %5905 = vtanh.f32 %v803_v26  ;;  %v813_v32 = vadd.f32 %v5135_v31, %v6865_v6  ;;  %v807_v33 = vpop.f32.mrb[67].mxu0 }
 0x1b9   : > { %v5896_v34 = vpop.eup %5895  ;;  %v808_v35 = vadd.f32 %v6865_v6, %v807_v33 }
 0x1ba   : > { %v5898_v36 = vpop.eup %5897  ;;  %5320 = vmatprep.mubr.msk.f32.mxu1 %vm1244_vm0, %v5896_v34 }
 0x1bb   : > { %5907 = vtanh.f32 %v808_v35  ;;  %v5138_v37 = vpop.f32.mrb[68].mxu0  ;;  %5321 = vmatmul.mubr.msk.f32.gmra.mrb[60].mxu1 %vm1244_vm0, %v5898_v36 }
 0x1bc   : > { %5909 = vtanh.f32 %v813_v32  ;;  %v823_v38 = vadd.f32 %v5138_v37, %v6865_v6  ;;  %v817_v39 = vpop.f32.mrb[69].mxu0 }
 0x1bd   : > { %v5900_v40 = vpop.eup %5899  ;;  %v818_v41 = vadd.f32 %v6865_v6, %v817_v39 }
 0x1be   : > { %v5902_v42 = vpop.eup %5901  ;;  %5911 = vtanh.f32 %v823_v38  ;;  %5323 = vmatprep.mubr.msk.f32.mxu1 %vm1244_vm0, %v5900_v40 }
 0x1bf   : > { %5913 = vtanh.f32 %v818_v41  ;;  %v5141_v43 = vpop.f32.mrb[70].mxu0  ;;  %5324 = vmatmul.mubr.msk.f32.gmra.mrb[62].mxu1 %vm1244_vm0, %v5902_v42 }
 0x1c0   : > { %v833_v44 = vadd.f32 %v5141_v43, %v6865_v6  ;;  %v827_v45 = vpop.f32.mrb[71].mxu0 }
 0x1c1   : > { %v5904_v46 = vpop.eup %5903  ;;  %v828_v47 = vadd.f32 %v6865_v6, %v827_v45 }
 0x1c2   : > { %v5906_v48 = vpop.eup %5905  ;;  %5915 = vtanh.f32 %v833_v44  ;;  %5326 = vmatprep.mubr.msk.f32.mxu1 %vm1244_vm0, %v5904_v46 }
 0x1c3   : > { %5917 = vtanh.f32 %v828_v47  ;;  %v5144_v49 = vpop.f32.mrb[72].mxu0  ;;  %5327 = vmatmul.mubr.msk.f32.gmra.mrb[64].mxu1 %vm1244_vm0, %v5906_v48 }
 0x1c4   : > { %v843_v50 = vadd.f32 %v5144_v49, %v6865_v6  ;;  %v837_v51 = vpop.f32.mrb[73].mxu0 }
 0x1c5   : > { %v5908_v52 = vpop.eup %5907  ;;  %v838_v53 = vadd.f32 %v6865_v6, %v837_v51 }
 0x1c6   : > { %v5910_v54 = vpop.eup %5909  ;;  %5919 = vtanh.f32 %v843_v50  ;;  %5329 = vmatprep.mubr.msk.f32.mxu1 %vm1244_vm0, %v5908_v52 }
 0x1c7   : > { %5921 = vtanh.f32 %v838_v53  ;;  %v5147_v55 = vpop.f32.mrb[74].mxu0  ;;  %5330 = vmatmul.mubr.msk.f32.gmra.mrb[66].mxu1 %vm1244_vm0, %v5910_v54 }
 0x1c8   : > { %v5912_v56 = vpop.eup %5911  ;;  %v853_v57 = vadd.f32 %v5147_v55, %v6865_v6  ;;  %v847_v58 = vpop.f32.mrb[75].mxu0 }
 0x1c9   : > { %v5914_v59 = vpop.eup %5913  ;;  %v848_v60 = vadd.f32 %v6865_v6, %v847_v58 }
 0x1ca   : > { %5923 = vtanh.f32 %v853_v57  ;;  %5332 = vmatprep.mubr.msk.f32.mxu1 %vm1244_vm0, %v5914_v59 }
 0x1cb   : > { %5925 = vtanh.f32 %v848_v60  ;;  %v5150_v61 = vpop.f32.mrb[76].mxu0  ;;  %5333 = vmatmul.mubr.msk.f32.gmra.mrb[68].mxu1 %vm1244_vm0, %v5912_v56  ;;  %v7077_v60 = vld [vmem:[%s8828_s2] ss:$0 sm:$0xff] }
 0x1cc   : > { %v5916_v62 = vpop.eup %5915  ;;  %v863_v63 = vadd.f32 %v5150_v61, %v6865_v6  ;;  %v857_v0 = vpop.f32.mrb[77].mxu0 }
 0x1cd   : > { %v5918_v1 = vpop.eup %5917  ;;  %v858_v2 = vadd.f32 %v6865_v6, %v857_v0 }
 0x1ce   : > { %5927 = vtanh.f32 %v863_v63  ;;  %5335 = vmatprep.mubr.msk.f32.mxu1 %vm1244_vm0, %v5918_v1 }
 0x1cf   : > { %5929 = vtanh.f32 %v858_v2  ;;  %v5153_v3 = vpop.f32.mrb[78].mxu0  ;;  %5336 = vmatmul.mubr.msk.f32.gmra.mrb[70].mxu1 %vm1244_vm0, %v5916_v62 }
 0x1d0   : > { %v5920_v4 = vpop.eup %5919  ;;  %v873_v5 = vadd.f32 %v5153_v3, %v6865_v6  ;;  %v867_v7 = vpop.f32.mrb[79].mxu0 }
 0x1d1   : > { %v5922_v8 = vpop.eup %5921  ;;  %v868_v9 = vadd.f32 %v6865_v6, %v867_v7 }
 0x1d2   : > { %5931 = vtanh.f32 %v873_v5  ;;  %5338 = vmatprep.mubr.msk.f32.mxu1 %vm1244_vm0, %v5922_v8 }
 0x1d3   : > { %5933 = vtanh.f32 %v868_v9  ;;  %v5156_v10 = vpop.f32.mrb[80].mxu0  ;;  %5339 = vmatmul.mubr.msk.f32.gmra.mrb[72].mxu1 %vm1244_vm0, %v5920_v4 }
 0x1d4   : > { %v5924_v11 = vpop.eup %5923  ;;  %v883_v12 = vadd.f32 %v5156_v10, %v6865_v6  ;;  %v877_v13 = vpop.f32.mrb[81].mxu0 }
 0x1d5   : > { %v5926_v14 = vpop.eup %5925  ;;  %v878_v15 = vadd.f32 %v6865_v6, %v877_v13 }
 0x1d6   : > { %5935 = vtanh.f32 %v883_v12  ;;  %5341 = vmatprep.mubr.msk.f32.mxu1 %vm1244_vm0, %v5926_v14 }
 0x1d7   : > { %5937 = vtanh.f32 %v878_v15  ;;  %v5159_v16 = vpop.f32.mrb[82].mxu0  ;;  %5342 = vmatmul.mubr.msk.f32.gmra.mrb[74].mxu1 %vm1244_vm0, %v5924_v11 }
 0x1d8   : > { %v5928_v17 = vpop.eup %5927  ;;  %v893_v18 = vadd.f32 %v5159_v16, %v6865_v6  ;;  %v887_v19 = vpop.f32.mrb[83].mxu0 }
 0x1d9   : > { %v5930_v20 = vpop.eup %5929  ;;  %v888_v21 = vadd.f32 %v6865_v6, %v887_v19 }
 0x1da   : > { %5939 = vtanh.f32 %v893_v18  ;;  %5344 = vmatprep.mubr.msk.f32.mxu1 %vm1244_vm0, %v5930_v20 }
 0x1db   : > { %5941 = vtanh.f32 %v888_v21  ;;  %v5162_v22 = vpop.f32.mrb[84].mxu0  ;;  %5345 = vmatmul.mubr.msk.f32.gmra.mrb[76].mxu1 %vm1244_vm0, %v5928_v17 }
 0x1dc   : > { %v5932_v23 = vpop.eup %5931  ;;  %v903_v24 = vadd.f32 %v5162_v22, %v6865_v6  ;;  %v897_v25 = vpop.f32.mrb[85].mxu0 }
 0x1dd   : > { %v5934_v26 = vpop.eup %5933  ;;  %v898_v27 = vadd.f32 %v6865_v6, %v897_v25 }
 0x1de   : > { %5943 = vtanh.f32 %v903_v24  ;;  %5347 = vmatprep.mubr.msk.f32.mxu1 %vm1244_vm0, %v5934_v26 }
 0x1df   : > { %5945 = vtanh.f32 %v898_v27  ;;  %v5165_v28 = vpop.f32.mrb[86].mxu0  ;;  %5348 = vmatmul.mubr.msk.f32.gmra.mrb[78].mxu1 %vm1244_vm0, %v5932_v23 }
 0x1e0   : > { %v5936_v29 = vpop.eup %5935  ;;  %v913_v30 = vadd.f32 %v5165_v28, %v6865_v6  ;;  %v907_v31 = vpop.f32.mrb[87].mxu0 }
 0x1e1   : > { %v5938_v32 = vpop.eup %5937  ;;  %v908_v33 = vadd.f32 %v6865_v6, %v907_v31 }
 0x1e2   : > { %5947 = vtanh.f32 %v913_v30  ;;  %5350 = vmatprep.mubr.msk.f32.mxu1 %vm1244_vm0, %v5938_v32 }
 0x1e3   : > { %5949 = vtanh.f32 %v908_v33  ;;  %v5168_v34 = vpop.f32.mrb[88].mxu0  ;;  %5351 = vmatmul.mubr.msk.f32.gmra.mrb[80].mxu1 %vm1244_vm0, %v5936_v29 }
 0x1e4   : > { %v5940_v35 = vpop.eup %5939  ;;  %v923_v36 = vadd.f32 %v5168_v34, %v6865_v6  ;;  %v917_v37 = vpop.f32.mrb[89].mxu0 }
 0x1e5   : > { %v5942_v38 = vpop.eup %5941  ;;  %v918_v39 = vadd.f32 %v6865_v6, %v917_v37 }
 0x1e6   : > { %5951 = vtanh.f32 %v923_v36  ;;  %5353 = vmatprep.mubr.msk.f32.mxu1 %vm1244_vm0, %v5942_v38 }
 0x1e7   : > { %5953 = vtanh.f32 %v918_v39  ;;  %v5171_v40 = vpop.f32.mrb[90].mxu0  ;;  %5354 = vmatmul.mubr.msk.f32.gmra.mrb[82].mxu1 %vm1244_vm0, %v5940_v35 }
 0x1e8   : > { %v5944_v41 = vpop.eup %5943  ;;  %v933_v42 = vadd.f32 %v5171_v40, %v6865_v6  ;;  %v927_v43 = vpop.f32.mrb[91].mxu0 }
 0x1e9   : > { %v5946_v44 = vpop.eup %5945  ;;  %v928_v45 = vadd.f32 %v6865_v6, %v927_v43 }
 0x1ea   : > { %5955 = vtanh.f32 %v933_v42  ;;  %5356 = vmatprep.mubr.msk.f32.mxu1 %vm1244_vm0, %v5946_v44 }
 0x1eb   : > { %5957 = vtanh.f32 %v928_v45  ;;  %v5174_v46 = vpop.f32.mrb[92].mxu0  ;;  %5357 = vmatmul.mubr.msk.f32.gmra.mrb[84].mxu1 %vm1244_vm0, %v5944_v41 }
 0x1ec   : > { %v5948_v47 = vpop.eup %5947  ;;  %v943_v48 = vadd.f32 %v5174_v46, %v6865_v6  ;;  %v937_v49 = vpop.f32.mrb[93].mxu0 }
 0x1ed   : > { %v5950_v50 = vpop.eup %5949  ;;  %v938_v51 = vadd.f32 %v6865_v6, %v937_v49 }
 0x1ee   : > { %5959 = vtanh.f32 %v943_v48  ;;  %5359 = vmatprep.mubr.msk.f32.mxu1 %vm1244_vm0, %v5950_v50 }
 0x1ef   : > { %5961 = vtanh.f32 %v938_v51  ;;  %v5177_v52 = vpop.f32.mrb[94].mxu0  ;;  %5360 = vmatmul.mubr.msk.f32.gmra.mrb[86].mxu1 %vm1244_vm0, %v5948_v47 }
 0x1f0   : > { %v5952_v53 = vpop.eup %5951  ;;  %v953_v54 = vadd.f32 %v5177_v52, %v6865_v6  ;;  %v947_v55 = vpop.f32.mrb[95].mxu0 }
 0x1f1   : > { %v5954_v56 = vpop.eup %5953  ;;  %v948_v57 = vadd.f32 %v6865_v6, %v947_v55 }
 0x1f2   : > { %5963 = vtanh.f32 %v953_v54  ;;  %5362 = vmatprep.mubr.msk.f32.mxu1 %vm1244_vm0, %v5954_v56 }
 0x1f3   : > { %5965 = vtanh.f32 %v948_v57  ;;  %v5180_v58 = vpop.f32.mrb[96].mxu0  ;;  %5363 = vmatmul.mubr.msk.f32.gmra.mrb[88].mxu1 %vm1244_vm0, %v5952_v53 }
 0x1f4   : > { %v5956_v59 = vpop.eup %5955  ;;  %v963_v61 = vadd.f32 %v7077_v60, %v5180_v58  ;;  %v957_v62 = vpop.f32.mrb[97].mxu0 }
 0x1f5   : > { %v5958_v63 = vpop.eup %5957  ;;  %v958_v0 = vadd.f32 %v7077_v60, %v957_v62 }
 0x1f6   : > { %5967 = vtanh.f32 %v963_v61  ;;  %5365 = vmatprep.mubr.msk.f32.mxu1 %vm1244_vm0, %v5958_v63 }
 0x1f7   : > { %5969 = vtanh.f32 %v958_v0  ;;  %v5183_v6 = vpop.f32.mrb[98].mxu0  ;;  %5366 = vmatmul.mubr.msk.f32.gmra.mrb[90].mxu1 %vm1244_vm0, %v5956_v59 }
 0x1f8   : > { %v5960_v1 = vpop.eup %5959  ;;  %v973_v2 = vadd.f32 %v7077_v60, %v5183_v6  ;;  %v967_v3 = vpop.f32.mrb[99].mxu0 }
 0x1f9   : > { %v5962_v4 = vpop.eup %5961  ;;  %v968_v5 = vadd.f32 %v7077_v60, %v967_v3 }
 0x1fa   : > { %5971 = vtanh.f32 %v973_v2  ;;  %5368 = vmatprep.mubr.msk.f32.mxu1 %vm1244_vm0, %v5962_v4 }
 0x1fb   : > { %5973 = vtanh.f32 %v968_v5  ;;  %v5186_v7 = vpop.f32.mrb[100].mxu0  ;;  %5369 = vmatmul.mubr.msk.f32.gmra.mrb[92].mxu1 %vm1244_vm0, %v5960_v1 }
 0x1fc   : > { %v5964_v8 = vpop.eup %5963  ;;  %v983_v9 = vadd.f32 %v7077_v60, %v5186_v7  ;;  %v977_v10 = vpop.f32.mrb[101].mxu0 }
 0x1fd   : > { %v5966_v11 = vpop.eup %5965  ;;  %v978_v12 = vadd.f32 %v7077_v60, %v977_v10 }
 0x1fe   : > { %5975 = vtanh.f32 %v983_v9  ;;  %5371 = vmatprep.mubr.msk.f32.mxu1 %vm1244_vm0, %v5966_v11 }
 0x1ff   : > { %5977 = vtanh.f32 %v978_v12  ;;  %v5189_v13 = vpop.f32.mrb[102].mxu0  ;;  %5372 = vmatmul.mubr.msk.f32.gmra.mrb[94].mxu1 %vm1244_vm0, %v5964_v8 }
 0x200   : > { %v5968_v14 = vpop.eup %5967  ;;  %v993_v15 = vadd.f32 %v7077_v60, %v5189_v13  ;;  %v987_v16 = vpop.f32.mrb[103].mxu0 }
 0x201   : > { %v5970_v17 = vpop.eup %5969  ;;  %v988_v18 = vadd.f32 %v7077_v60, %v987_v16 }
 0x202   : > { %5979 = vtanh.f32 %v993_v15  ;;  %5374 = vmatprep.mubr.msk.f32.mxu1 %vm1244_vm0, %v5970_v17 }
 0x203   : > { %5981 = vtanh.f32 %v988_v18  ;;  %v5192_v19 = vpop.f32.mrb[104].mxu0  ;;  %5375 = vmatmul.mubr.msk.f32.gmra.mrb[96].mxu1 %vm1244_vm0, %v5968_v14 }
 0x204   : > { %v5972_v20 = vpop.eup %5971  ;;  %v1003_v21 = vadd.f32 %v7077_v60, %v5192_v19  ;;  %v997_v22 = vpop.f32.mrb[105].mxu0 }
 0x205   : > { %v5974_v23 = vpop.eup %5973  ;;  %v998_v24 = vadd.f32 %v7077_v60, %v997_v22 }
 0x206   : > { %5983 = vtanh.f32 %v1003_v21  ;;  %5377 = vmatprep.mubr.msk.f32.mxu1 %vm1244_vm0, %v5974_v23 }
 0x207   : > { %5985 = vtanh.f32 %v998_v24  ;;  %v5195_v25 = vpop.f32.mrb[106].mxu0  ;;  %5378 = vmatmul.mubr.msk.f32.gmra.mrb[98].mxu1 %vm1244_vm0, %v5972_v20 }
 0x208   : > { %v5976_v26 = vpop.eup %5975  ;;  %v1013_v27 = vadd.f32 %v7077_v60, %v5195_v25  ;;  %v1007_v28 = vpop.f32.mrb[107].mxu0 }
 0x209   : > { %v5978_v29 = vpop.eup %5977  ;;  %v1008_v30 = vadd.f32 %v7077_v60, %v1007_v28 }
 0x20a   : > { %5987 = vtanh.f32 %v1013_v27  ;;  %5380 = vmatprep.mubr.msk.f32.mxu1 %vm1244_vm0, %v5978_v29 }
 0x20b   : > { %5989 = vtanh.f32 %v1008_v30  ;;  %v5198_v31 = vpop.f32.mrb[108].mxu0  ;;  %5381 = vmatmul.mubr.msk.f32.gmra.mrb[100].mxu1 %vm1244_vm0, %v5976_v26 }
 0x20c   : > { %v5980_v32 = vpop.eup %5979  ;;  %v1023_v33 = vadd.f32 %v7077_v60, %v5198_v31  ;;  %v1017_v34 = vpop.f32.mrb[109].mxu0 }
 0x20d   : > { %v5982_v35 = vpop.eup %5981  ;;  %v1018_v36 = vadd.f32 %v7077_v60, %v1017_v34 }
 0x20e   : > { %5991 = vtanh.f32 %v1023_v33  ;;  %5383 = vmatprep.mubr.msk.f32.mxu1 %vm1244_vm0, %v5982_v35 }
 0x20f   : > { %5993 = vtanh.f32 %v1018_v36  ;;  %v5201_v37 = vpop.f32.mrb[110].mxu0  ;;  %5384 = vmatmul.mubr.msk.f32.gmra.mrb[102].mxu1 %vm1244_vm0, %v5980_v32 }
 0x210   : > { %v5984_v38 = vpop.eup %5983  ;;  %v1033_v39 = vadd.f32 %v7077_v60, %v5201_v37  ;;  %v1027_v40 = vpop.f32.mrb[111].mxu0 }
 0x211   : > { %v5986_v41 = vpop.eup %5985  ;;  %v1028_v42 = vadd.f32 %v7077_v60, %v1027_v40 }
 0x212   : > { %5995 = vtanh.f32 %v1033_v39  ;;  %5386 = vmatprep.mubr.msk.f32.mxu1 %vm1244_vm0, %v5986_v41 }
 0x213   : > { %5997 = vtanh.f32 %v1028_v42  ;;  %v5204_v43 = vpop.f32.mrb[112].mxu0  ;;  %5387 = vmatmul.mubr.msk.f32.gmra.mrb[104].mxu1 %vm1244_vm0, %v5984_v38 }
 0x214   : > { %v5988_v44 = vpop.eup %5987  ;;  %v1043_v45 = vadd.f32 %v7077_v60, %v5204_v43  ;;  %v1037_v46 = vpop.f32.mrb[113].mxu0 }
 0x215   : > { %v5990_v47 = vpop.eup %5989  ;;  %v1038_v48 = vadd.f32 %v7077_v60, %v1037_v46 }
 0x216   : > { %5999 = vtanh.f32 %v1043_v45  ;;  %v7113_v49 = vpop.f32.mrb[0].mxu1  ;;  %5389 = vmatprep.mubr.msk.f32.mxu1 %vm1244_vm0, %v5990_v47  ;;  %v6549_v45 = vmov 0  }
 0x217   : > { %6001 = vtanh.f32 %v1038_v48  ;;  %v5207_v50 = vpop.f32.mrb[114].mxu0  ;;  %v7116_v51 = vpop.f32.mrb[1].mxu1  ;;  %5390 = vmatmul.mubr.msk.f32.gmra.mrb[106].mxu1 %vm1244_vm0, %v5988_v44  ;;  %5613 = vset.pattern.permute.xlu1 %v6549_v45 }
 0x218   : > { %v5992_v52 = vpop.eup %5991  ;;  %v1053_v53 = vadd.f32 %v7077_v60, %v5207_v50  ;;  %v1047_v54 = vpop.f32.mrb[115].mxu0  ;;  %5614 = vset.pattern.permute.xlu0 %v6549_v45 }
 0x219   : > { %v5994_v55 = vpop.eup %5993  ;;  %v1048_v56 = vadd.f32 %v7077_v60, %v1047_v54 }
 0x21a   : > { %6003 = vtanh.f32 %v1053_v53  ;;  %v7121_v57 = vpop.f32.mrb[2].mxu1  ;;  %5392 = vmatprep.mubr.msk.f32.mxu1 %vm1244_vm0, %v5994_v55 }
 0x21b   : > { %6005 = vtanh.f32 %v1048_v56  ;;  %v5210_v58 = vpop.f32.mrb[116].mxu0  ;;  %v7124_v59 = vpop.f32.mrb[3].mxu1  ;;  %5393 = vmatmul.mubr.msk.f32.gmra.mrb[108].mxu1 %vm1244_vm0, %v5992_v52 }
 0x21c   : > { %v5996_v61 = vpop.eup %5995  ;;  %v1063_v62 = vadd.f32 %v7077_v60, %v5210_v58  ;;  %v1057_v63 = vpop.f32.mrb[117].mxu0 }
 0x21d   : > { %v5998_v0 = vpop.eup %5997  ;;  %v1058_v6 = vadd.f32 %v7077_v60, %v1057_v63 }
 0x21e   : > { %6007 = vtanh.f32 %v1063_v62  ;;  %v7129_v1 = vpop.f32.mrb[4].mxu1  ;;  %5395 = vmatprep.mubr.msk.f32.mxu1 %vm1244_vm0, %v5998_v0 }
 0x21f   : > { %6009 = vtanh.f32 %v1058_v6  ;;  %v5213_v2 = vpop.f32.mrb[118].mxu0  ;;  %v7132_v3 = vpop.f32.mrb[5].mxu1  ;;  %5396 = vmatmul.mubr.msk.f32.gmra.mrb[110].mxu1 %vm1244_vm0, %v5996_v61 }
 0x220   : > { %v6000_v4 = vpop.eup %5999  ;;  %v1073_v5 = vadd.f32 %v7077_v60, %v5213_v2  ;;  %v1067_v7 = vpop.f32.mrb[119].mxu0 }
 0x221   : > { %v6002_v8 = vpop.eup %6001  ;;  %v1068_v9 = vadd.f32 %v7077_v60, %v1067_v7 }
 0x222   : > { %6011 = vtanh.f32 %v1073_v5  ;;  %v7137_v10 = vpop.f32.mrb[6].mxu1  ;;  %5398 = vmatprep.mubr.msk.f32.mxu1 %vm1244_vm0, %v6002_v8 }
 0x223   : > { %6013 = vtanh.f32 %v1068_v9  ;;  %v5216_v11 = vpop.f32.mrb[120].mxu0  ;;  %v7140_v12 = vpop.f32.mrb[7].mxu1  ;;  %5399 = vmatmul.mubr.msk.f32.gmra.mrb[112].mxu1 %vm1244_vm0, %v6000_v4 }
 0x224   : > { %v6004_v13 = vpop.eup %6003  ;;  %v1083_v14 = vadd.f32 %v7077_v60, %v5216_v11  ;;  %v1077_v15 = vpop.f32.mrb[121].mxu0 }
 0x225   : > { %v6006_v16 = vpop.eup %6005  ;;  %v1078_v17 = vadd.f32 %v7077_v60, %v1077_v15 }
 0x226   : > { %6015 = vtanh.f32 %v1083_v14  ;;  %v7145_v18 = vpop.f32.mrb[8].mxu1  ;;  %5401 = vmatprep.mubr.msk.f32.mxu1 %vm1244_vm0, %v6006_v16 }
 0x227   : > { %6017 = vtanh.f32 %v1078_v17  ;;  %v5219_v19 = vpop.f32.mrb[122].mxu0  ;;  %v7148_v20 = vpop.f32.mrb[9].mxu1  ;;  %5402 = vmatmul.mubr.msk.f32.gmra.mrb[114].mxu1 %vm1244_vm0, %v6004_v13 }
 0x228   : > { %v6008_v21 = vpop.eup %6007  ;;  %v1093_v22 = vadd.f32 %v7077_v60, %v5219_v19  ;;  %v1087_v23 = vpop.f32.mrb[123].mxu0 }
 0x229   : > { %v6010_v24 = vpop.eup %6009  ;;  %v1088_v25 = vadd.f32 %v7077_v60, %v1087_v23 }
 0x22a   : > { %6019 = vtanh.f32 %v1093_v22  ;;  %v7153_v26 = vpop.f32.mrb[10].mxu1  ;;  %5404 = vmatprep.mubr.msk.f32.mxu1 %vm1244_vm0, %v6010_v24 }
 0x22b   : > { %6021 = vtanh.f32 %v1088_v25  ;;  %v5222_v27 = vpop.f32.mrb[124].mxu0  ;;  %v7156_v28 = vpop.f32.mrb[11].mxu1  ;;  %5405 = vmatmul.mubr.msk.f32.gmra.mrb[116].mxu1 %vm1244_vm0, %v6008_v21 }
 0x22c   : > { %v6012_v29 = vpop.eup %6011  ;;  %v1103_v30 = vadd.f32 %v7077_v60, %v5222_v27  ;;  %v1097_v31 = vpop.f32.mrb[125].mxu0 }
 0x22d   : > { %v6014_v32 = vpop.eup %6013  ;;  %v1098_v33 = vadd.f32 %v7077_v60, %v1097_v31 }
 0x22e   : > { %6023 = vtanh.f32 %v1103_v30  ;;  %v7161_v34 = vpop.f32.mrb[12].mxu1  ;;  %5407 = vmatprep.mubr.msk.f32.mxu1 %vm1244_vm0, %v6014_v32 }
 0x22f   : > { %6025 = vtanh.f32 %v1098_v33  ;;  %v5225_v35 = vpop.f32.mrb[126].mxu0  ;;  %v7164_v36 = vpop.f32.mrb[13].mxu1  ;;  %5408 = vmatmul.mubr.msk.f32.gmra.mrb[118].mxu1 %vm1244_vm0, %v6012_v29 }
 0x230   : > { %v6016_v37 = vpop.eup %6015  ;;  %v1113_v38 = vadd.f32 %v7077_v60, %v5225_v35  ;;  %v1107_v39 = vpop.f32.mrb[127].mxu0 }
 0x231   : > { %v6018_v40 = vpop.eup %6017  ;;  %v1108_v41 = vadd.f32 %v7077_v60, %v1107_v39 }
 0x232   : > { %6027 = vtanh.f32 %v1113_v38  ;;  %v7169_v42 = vpop.f32.mrb[14].mxu1  ;;  %5410 = vmatprep.mubr.msk.f32.mxu1 %vm1244_vm0, %v6018_v40 }
 0x233   : > { %6029 = vtanh.f32 %v1108_v41  ;;  %v7172_v43 = vpop.f32.mrb[15].mxu1  ;;  %5411 = vmatmul.mubr.msk.f32.gmra.mrb[120].mxu1 %vm1244_vm0, %v6016_v37 }
 0x234   : > { %v6020_v44 = vpop.eup %6019 }
 0x235   : > { %v6022_v46 = vpop.eup %6021 }
 0x236   : > { %v7175_v47 = vpop.f32.mrb[16].mxu1  ;;  %5413 = vmatprep.mubr.msk.f32.mxu1 %vm1244_vm0, %v6022_v46 }
 0x237   : > { %v7178_v60 = vpop.f32.mrb[17].mxu1  ;;  %5414 = vmatmul.mubr.msk.f32.gmra.mrb[122].mxu1 %vm1244_vm0, %v6020_v44 }
 0x238   : > { %v6024_v48 = vpop.eup %6023 }
 0x239   : > { %v6026_v50 = vpop.eup %6025 }
 0x23a   : > { %v7181_v52 = vpop.f32.mrb[18].mxu1  ;;  %5416 = vmatprep.mubr.msk.f32.mxu1 %vm1244_vm0, %v6026_v50 }
 0x23b   : > { %v7184_v53 = vpop.f32.mrb[19].mxu1  ;;  %5417 = vmatmul.mubr.msk.f32.gmra.mrb[124].mxu1 %vm1244_vm0, %v6024_v48 }
 0x23c   : > { %v6028_v54 = vpop.eup %6027 }
 0x23d   : > { %v6030_v55 = vpop.eup %6029 }
 0x23e   : > { %v7187_v56 = vpop.f32.mrb[20].mxu1  ;;  %5419 = vmatprep.mubr.msk.f32.mxu1 %vm1244_vm0, %v6030_v55 }
 0x23f   : > { %v7190_v58 = vpop.f32.mrb[21].mxu1  ;;  %5420 = vmatmul.mubr.msk.f32.gmra.mrb[126].mxu1 %vm1244_vm0, %v6028_v54 }
 0x242   : > { %v7193_v61 = vpop.f32.mrb[22].mxu1 }
 0x243   : > { %v7195_v62 = vpop.f32.mrb[23].mxu1 }
 0x246   : > { %v7197_v63 = vpop.f32.mrb[24].mxu1 }
 0x247   : > { %v7199_v0 = vpop.f32.mrb[25].mxu1 }
 0x24a   : > { %v7201_v6 = vpop.f32.mrb[26].mxu1 }
 0x24b   : > { %v7203_v2 = vpop.f32.mrb[27].mxu1 }
 0x24e   : > { %v7205_v4 = vpop.f32.mrb[28].mxu1 }
 0x24f   : > { %v7207_v5 = vpop.f32.mrb[29].mxu1 }
 0x252   : > { %v7209_v7 = vpop.f32.mrb[30].mxu1 }
 0x253   : > { %v7211_v8 = vpop.f32.mrb[31].mxu1 }
 0x256   : > { %v7213_v9 = vpop.f32.mrb[32].mxu1 }
 0x257   : > { %v7215_v11 = vpop.f32.mrb[33].mxu1 }
 0x25a   : > { %v7217_v13 = vpop.f32.mrb[34].mxu1 }
 0x25b   : > { %v7219_v14 = vpop.f32.mrb[35].mxu1 }
 0x25e   : > { %v7221_v15 = vpop.f32.mrb[36].mxu1 }
 0x25f   : > { %v7223_v16 = vpop.f32.mrb[37].mxu1 }
 0x262   : > { %v7225_v17 = vpop.f32.mrb[38].mxu1 }
 0x263   : > { %v7227_v19 = vpop.f32.mrb[39].mxu1 }
 0x266   : > { %v7229_v21 = vpop.f32.mrb[40].mxu1 }
 0x267   : > { %v7231_v22 = vpop.f32.mrb[41].mxu1 }
 0x26a   : > { %v7233_v23 = vpop.f32.mrb[42].mxu1 }
 0x26b   : > { %v7235_v24 = vpop.f32.mrb[43].mxu1 }
 0x26e   : > { %v7237_v25 = vpop.f32.mrb[44].mxu1 }
 0x26f   : > { %v7239_v27 = vpop.f32.mrb[45].mxu1 }
 0x272   : > { %v7241_v29 = vpop.f32.mrb[46].mxu1 }
 0x273   : > { %v7243_v30 = vpop.f32.mrb[47].mxu1 }
 0x276   : > { %v7245_v31 = vpop.f32.mrb[48].mxu1 }
 0x277   : > { %v7247_v32 = vpop.f32.mrb[49].mxu1 }
 0x27a   : > { %v7249_v33 = vpop.f32.mrb[50].mxu1 }
 0x27b   : > { %8970 = vst [vmem:[#allocation11_spill] sm:$0xff] %v7249_v33  ;;  %v7251_v35 = vpop.f32.mrb[51].mxu1 }
 0x27c   : > { %8971 = vst [vmem:[#allocation12_spill] sm:$0xff] %v7251_v35 }
 0x27e   : > { %v7253_v37 = vpop.f32.mrb[52].mxu1 }
 0x27f   : > { %8972 = vst [vmem:[#allocation13_spill] sm:$0xff] %v7253_v37  ;;  %v7255_v38 = vpop.f32.mrb[53].mxu1 }
 0x280   : > { %8973 = vst [vmem:[#allocation14_spill] sm:$0xff] %v7255_v38 }
 0x282   : > { %v7257_v39 = vpop.f32.mrb[54].mxu1 }
 0x283   : > { %8974 = vst [vmem:[#allocation15_spill] sm:$0xff] %v7257_v39  ;;  %v7259_v40 = vpop.f32.mrb[55].mxu1 }
 0x284   : > { %8975 = vst [vmem:[#allocation16_spill] sm:$0xff] %v7259_v40 }
 0x286   : > { %v7261_v41 = vpop.f32.mrb[56].mxu1 }
 0x287   : > { %8976 = vst [vmem:[#allocation17_spill] sm:$0xff] %v7261_v41  ;;  %v7263_v44 = vpop.f32.mrb[57].mxu1 }
 0x288   : > { %8977 = vst [vmem:[#allocation18_spill] sm:$0xff] %v7263_v44 }
 0x28a   : > { %v7265_v45 = vpop.f32.mrb[58].mxu1 }
 0x28b   : > { %8978 = vst [vmem:[#allocation19_spill] sm:$0xff] %v7265_v45  ;;  %v7267_v46 = vpop.f32.mrb[59].mxu1 }
 0x28c   : > { %8979 = vst [vmem:[#allocation20_spill] sm:$0xff] %v7267_v46 }
 0x28e   : > { %v7269_v48 = vpop.f32.mrb[60].mxu1 }
 0x28f   : > { %8980 = vst [vmem:[#allocation21_spill] sm:$0xff] %v7269_v48  ;;  %v7271_v50 = vpop.f32.mrb[61].mxu1 }
 0x290   : > { %8981 = vst [vmem:[#allocation22_spill] sm:$0xff] %v7271_v50 }
 0x292   : > { %v7273_v54 = vpop.f32.mrb[62].mxu1 }
 0x293   : > { %8982 = vst [vmem:[#allocation23_spill] sm:$0xff] %v7273_v54  ;;  %v7275_v55 = vpop.f32.mrb[63].mxu1 }
 0x294   : > { %8983 = vst [vmem:[#allocation24_spill] sm:$0xff] %v7275_v55 }
 0x296   : > { %v5328_v38 = vpop.f32.mrb[64].mxu1 }
 0x297   : > { %v2335_v39 = vsub.f32 %v7113_v49, %v5328_v38  ;;  %v2015_v40 = vpop.f32.mrb[65].mxu1 }
 0x298   : > { %v2334_v41 = vsub.f32 %v7116_v51, %v2015_v40 }
 0x299   : > { %v2400_v37 = vmul.f32 1.442695, %v2335_v39 }
 0x29a   : > { %v2398_v44 = vmul.f32 1.442695, %v2334_v41  ;;  %v5331_v35 = vpop.f32.mrb[66].mxu1 }
 0x29b   : > { %6031 = vpow2.f32 %v2400_v37  ;;  %v2337_v46 = vsub.f32 %v7121_v57, %v5331_v35  ;;  %v2025_v45 = vpop.f32.mrb[67].mxu1 }
 0x29c   : > { %6033 = vpow2.f32 %v2398_v44  ;;  %v2336_v50 = vsub.f32 %v7124_v59, %v2025_v45 }
 0x29d   : > { %v2404_v48 = vmul.f32 1.442695, %v2337_v46 }
 0x29e   : > { %v2402_v54 = vmul.f32 1.442695, %v2336_v50  ;;  %v5334_v33 = vpop.f32.mrb[68].mxu1 }
 0x29f   : > { %6035 = vpow2.f32 %v2404_v48  ;;  %v2339_v55 = vsub.f32 %v7129_v1, %v5334_v33  ;;  %v2035_v49 = vpop.f32.mrb[69].mxu1 }
 0x2a0   : > { %6037 = vpow2.f32 %v2402_v54  ;;  %v2338_v51 = vsub.f32 %v7132_v3, %v2035_v49 }
 0x2a1   : > { %v2408_v38 = vmul.f32 1.442695, %v2339_v55 }
 0x2a2   : > { %v2406_v39 = vmul.f32 1.442695, %v2338_v51  ;;  %v5337_v40 = vpop.f32.mrb[70].mxu1 }
 0x2a3   : > { %6039 = vpow2.f32 %v2408_v38  ;;  %v2341_v57 = vsub.f32 %v7137_v10, %v5337_v40  ;;  %v2045_v35 = vpop.f32.mrb[71].mxu1 }
 0x2a4   : > { %6041 = vpow2.f32 %v2406_v39  ;;  %v2340_v59 = vsub.f32 %v7140_v12, %v2045_v35 }
 0x2a5   : > { %v6032_v37 = vpop.eup %6031  ;;  %v2412_v41 = vmul.f32 1.442695, %v2341_v57 }
 0x2a6   : > { %v6034_v44 = vpop.eup %6033  ;;  %v2527_v45 = vadd.f32 1.0, %v6032_v37  ;;  %v2410_v46 = vmul.f32 1.442695, %v2340_v59  ;;  %v5340_v1 = vpop.f32.mrb[72].mxu1 }
 0x2a7   : > { %v2526_v33 = vadd.f32 1.0, %v6034_v44  ;;  %6043 = vpow2.f32 %v2412_v41  ;;  %v2343_v3 = vsub.f32 %v7145_v18, %v5340_v1  ;;  %v2055_v48 = vpop.f32.mrb[73].mxu1 }
 0x2a8   : > { %6045 = vrcp.f32 %v2527_v45  ;;  %v2342_v50 = vsub.f32 %v7148_v20, %v2055_v48 }
 0x2a9   : > { %v6036_v54 = vpop.eup %6035  ;;  %6047 = vrcp.f32 %v2526_v33  ;;  %v2416_v10 = vmul.f32 1.442695, %v2343_v3 }
 0x2aa   : > { %v6038_v55 = vpop.eup %6037  ;;  %v2529_v49 = vadd.f32 1.0, %v6036_v54  ;;  %6049 = vpow2.f32 %v2410_v46  ;;  %v2414_v12 = vmul.f32 1.442695, %v2342_v50  ;;  %v5343_v51 = vpop.f32.mrb[74].mxu1 }
 0x2ab   : > { %v2528_v38 = vadd.f32 1.0, %v6038_v55  ;;  %6051 = vpow2.f32 %v2416_v10  ;;  %v2345_v39 = vsub.f32 %v7153_v26, %v5343_v51  ;;  %v7288_v40 = vpop.f32.mrb[75].mxu1 }
 0x2ac   : > { %6053 = vrcp.f32 %v2529_v49 }
 0x2ad   : > { %v6040_v57 = vpop.eup %6039  ;;  %6055 = vrcp.f32 %v2528_v38 }
 0x2ae   : > { %v6042_v20 = vpop.eup %6041  ;;  %v2531_v35 = vadd.f32 1.0, %v6040_v57  ;;  %6057 = vpow2.f32 %v2414_v12  ;;  %v5346_v59 = vpop.f32.mrb[76].mxu1 }
 0x2af   : > { %v2530_v37 = vadd.f32 1.0, %v6042_v20  ;;  %v2347_v41 = vsub.f32 %v7161_v34, %v5346_v59  ;;  %v7293_v44 = vpop.f32.mrb[77].mxu1 }
 0x2b0   : > { %6059 = vrcp.f32 %v2531_v35 }
 0x2b1   : > { %v6044_v45 = vpop.eup %6043  ;;  %6061 = vrcp.f32 %v2530_v37 }
 0x2b2   : > { %v7297_v46 = vpop.eup %6045  ;;  %v2533_v1 = vadd.f32 1.0, %v6044_v45  ;;  %v5349_v33 = vpop.f32.mrb[78].mxu1 }
 0x2b3   : > { %8984 = vst [vmem:[#allocation25_spill] sm:$0xff] %v7297_v46  ;;  %v7299_v3 = vpop.eup %6047  ;;  %v2349_v48 = vsub.f32 %v7169_v42, %v5349_v33  ;;  %3173 = vperm.xlu1 %5613, %v7297_v46   ;;  %v7303_v50 = vpop.f32.mrb[79].mxu1  ;;  %v2420_v42 = vmul.f32 1.442695, %v2345_v39 }
 0x2b4   : > { %8985 = vst [vmem:[#allocation26_spill] sm:$0xff] %v7299_v3  ;;  %v6050_v34 = vpop.eup %6049  ;;  %3168 = vperm.xlu0 %5614, %v7299_v3   ;;  %v5615_v10 = vpack.i.bf16 %v7297_v46, %v7299_v3  ;;  %6063 = vrcp.f32 %v2533_v1 }
 0x2b5   : > { %v6052_v55 = vpop.eup %6051  ;;  %v2532_v49 = vadd.f32 1.0, %v6050_v34  ;;  %v8848_v34 = vsub.f32 1.0, %v7297_v46 }
 0x2b6   : > { %v7310_v12 = vpop.eup %6053  ;;  %v2535_v51 = vadd.f32 1.0, %v6052_v55  ;;  %v5352_v38 = vpop.f32.mrb[80].mxu1 }
 0x2b7   : > { %8986 = vst [vmem:[#allocation27_spill] sm:$0xff] %v7310_v12  ;;  %v7312_v57 = vpop.eup %6055  ;;  %6065 = vrcp.f32 %v2532_v49  ;;  %v2351_v20 = vsub.f32 %v7175_v47, %v5352_v38  ;;  %3183 = vperm.xlu1 %5613, %v7310_v12   ;;  %v7316_v35 = vpop.f32.mrb[81].mxu1  ;;  %v8847_v1 = vsub.f32 1.0, %v7310_v12  ;;  %v2424_v49 = vmul.f32 1.442695, %v2347_v41 }
 0x2b8   : > { %8987 = vst [vmem:[#allocation28_spill] sm:$0xff] %v7312_v57  ;;  %v6058_v59 = vpop.eup %6057  ;;  %5616 = vrot.lane.b32.xlu0 %v5615_v10, %s6550_s25  ;;  %v5620_v39 = vpack.i.bf16 %v7310_v12, %v7312_v57  ;;  %6067 = vrcp.f32 %v2535_v51  ;;  %v8850_v41 = vsub.f32 1.0, %v7299_v3  ;;  %v8994_v3 = vsub.f32 %v7156_v28, %v7288_v40 }
 0x2b9   : > { %v2534_v45 = vadd.f32 1.0, %v6058_v59  ;;  %6069 = vpow2.f32 %v2420_v42  ;;  %v8849_v59 = vsub.f32 1.0, %v7312_v57 }
 0x2ba   : > { %v7324_v33 = vpop.eup %6059  ;;  %v5355_v47 = vpop.f32.mrb[82].mxu1 }
 0x2bb   : > { %8988 = vst [vmem:[#allocation29_spill] sm:$0xff] %v7324_v33  ;;  %v7327_v55 = vpop.eup %6061  ;;  %6071 = vrcp.f32 %v2534_v45  ;;  %v2353_v38 = vsub.f32 %v7181_v52, %v5355_v47  ;;  %2799 = vperm.xlu1 %5613, %v8847_v1   ;;  %v7332_v10 = vpop.f32.mrb[83].mxu1  ;;  %v2428_v47 = vmul.f32 1.442695, %v2349_v48 }
 0x2bc   : > { %8989 = vst [vmem:[#allocation30_spill] sm:$0xff] %v7327_v55  ;;  %2789 = vperm.xlu0 %5614, %v8848_v34   ;;  %v5625_v42 = vpack.i.bf16 %v7324_v33, %v7327_v55  ;;  %6073 = vpow2.f32 %v2424_v49  ;;  %v8854_v49 = vsub.f32 1.0, %v7324_v33 }
 0x2bd   : > { %6075 = vpow2.f32 %v2428_v47 }
 0x2be   : > { %v5358_v45 = vpop.f32.mrb[84].mxu1  ;;  %v7342_v52 = vpop.eup %6063 }
 0x2bf   : > { %8990 = vst [vmem:[#allocation31_spill] sm:$0xff] %v7342_v52  ;;  %v2355_v1 = vsub.f32 %v7187_v56, %v5358_v45  ;;  %2794 = vperm.xlu1 %5613, %v8849_v59   ;;  %v7347_v51 = vpop.f32.mrb[85].mxu1  ;;  %v2432_v56 = vmul.f32 1.442695, %v2351_v20  ;;  %v2418_v20 = vmul.f32 1.442695, %v8994_v3 }
 0x2c0   : > { %2784 = vperm.xlu0 %5614, %v8850_v41   ;;  %v8855_v28 = vsub.f32 1.0, %v7342_v52 }
 0x2c1   : > { %v7353_v37 = vpop.eup %6065  ;;  %6077 = vpow2.f32 %v2432_v56 }
 0x2c2   : > { %8991 = vst [vmem:[#allocation32_spill] sm:$0xff] %v7353_v37  ;;  %v5361_v54 = vpop.f32.mrb[86].mxu1  ;;  %v7357_v48 = vpop.eup %6067 }
 0x2c3   : > { %8992 = vst [vmem:[#allocation33_spill] sm:$0xff] %v7357_v48  ;;  %v2357_v45 = vsub.f32 %v7193_v61, %v5361_v54  ;;  %3193 = vperm.xlu1 %5613, %v7324_v33   ;;  %v7361_v59 = vpop.f32.mrb[87].mxu1  ;;  %v6070_v34 = vpop.eup %6069  ;;  %v2436_v61 = vmul.f32 1.442695, %v2353_v38  ;;  %v2440_v38 = vmul.f32 1.442695, %v2355_v1 }
 0x2c4   : > { %3178 = vperm.xlu0 %5614, %v7312_v57   ;;  %v2537_v41 = vadd.f32 1.0, %v6070_v34 }
 0x2c5   : > { %v7366_v26 = vpop.eup %6071  ;;  %6079 = vpow2.f32 %v2436_v61  ;;  %v2444_v3 = vmul.f32 1.442695, %v2357_v45 }
 0x2c6   : > { %8993 = vst [vmem:[#allocation34_spill] sm:$0xff] %v7366_v26  ;;  %v5364_v18 = vpop.f32.mrb[88].mxu1  ;;  %v6074_v12 = vpop.eup %6073  ;;  %6081 = vrcp.f32 %v2537_v41 }
 0x2c7   : > { %v2359_v54 = vsub.f32 %v7197_v63, %v5364_v18  ;;  %2809 = vperm.xlu1 %5613, %v8854_v49   ;;  %v7374_v47 = vpop.f32.mrb[89].mxu1  ;;  %v2539_v34 = vadd.f32 1.0, %v6074_v12  ;;  %6083 = vpow2.f32 %v2418_v20  ;;  %v8995_v20 = vsub.f32 %v7164_v36, %v7293_v44 }
 0x2c8   : > { %5621 = vrot.lane.b32.xlu0 %v5620_v39, %s6550_s25  ;;  %v6076_v39 = vpop.eup %6075  ;;  %6085 = vpow2.f32 %v2440_v38  ;;  %v8859_v44 = vsub.f32 1.0, %v7357_v48 }
 0x2c9   : > { %6087 = vrcp.f32 %v2539_v34  ;;  %v2541_v12 = vadd.f32 1.0, %v6076_v39  ;;  %v2448_v38 = vmul.f32 1.442695, %v2359_v54 }
 0x2ca   : > { %v5367_v56 = vpop.f32.mrb[90].mxu1  ;;  %6089 = vpow2.f32 %v2444_v3 }
 0x2cb   : > { %v2361_v63 = vsub.f32 %v7201_v6, %v5367_v56  ;;  %3203 = vperm.xlu1 %5613, %v7342_v52   ;;  %v7384_v18 = vpop.f32.mrb[91].mxu1  ;;  %v6078_v61 = vpop.eup %6077  ;;  %v2422_v56 = vmul.f32 1.442695, %v8995_v20  ;;  %6091 = vrcp.f32 %v2541_v12 }
 0x2cc   : > { %3188 = vperm.xlu0 %5614, %v7327_v55   ;;  %v2543_v39 = vadd.f32 1.0, %v6078_v61 }
 0x2cd   : > { %6093 = vpow2.f32 %v2422_v56 }
 0x2ce   : > { %v5370_v40 = vpop.f32.mrb[92].mxu1  ;;  %6095 = vpow2.f32 %v2448_v38 }
 0x2cf   : > { %v2363_v6 = vsub.f32 %v7205_v4, %v5370_v40  ;;  %2819 = vperm.xlu1 %5613, %v8855_v28   ;;  %v7393_v1 = vpop.f32.mrb[93].mxu1  ;;  %v8856_v4 = vsub.f32 1.0, %v7327_v55  ;;  %v6080_v36 = vpop.eup %6079  ;;  %6097 = vrcp.f32 %v2543_v39  ;;  %v9018_v55 = vld [vmem:[#allocation14_spill] sm:$0xff] }
 0x2d0   : > { %5626 = vrot.lane.b32.xlu0 %v5625_v42, %s6550_s25  ;;  %v7411_v20 = vpop.eup %6081 }
 0x2d1   : > { %8996 = vst [vmem:[#allocation35_spill] sm:$0xff] %v7411_v20  ;;  %v6084_v61 = vpop.eup %6083  ;;  %v8858_v42 = vsub.f32 1.0, %v7411_v20 }
 0x2d2   : > { %v5373_v45 = vpop.f32.mrb[94].mxu1 }
 0x2d3   : > { %v2365_v40 = vsub.f32 %v7209_v7, %v5373_v45  ;;  %3213 = vperm.xlu1 %5613, %v7357_v48   ;;  %v7404_v34 = vpop.f32.mrb[95].mxu1  ;;  %v2452_v7 = vmul.f32 1.442695, %v2361_v63  ;;  %v2545_v45 = vadd.f32 1.0, %v6080_v36  ;;  %v8998_v63 = vsub.f32 %v7172_v43, %v7303_v50 }
 0x2d4   : > { %2804 = vperm.xlu0 %5614, %v8856_v4   ;;  %v6086_v4 = vpop.eup %6085  ;;  %v8999_v43 = vpack.i.bf16 %v7342_v52, %v7353_v37 }
 0x2d5   : > { %v7419_v56 = vpop.eup %6087  ;;  %6099 = vpow2.f32 %v2452_v7  ;;  %v2547_v36 = vadd.f32 1.0, %v6086_v4 }
 0x2d6   : > { %v5376_v54 = vpop.f32.mrb[96].mxu1  ;;  %8997 = vst [vmem:[#allocation36_spill] sm:$0xff] %v7419_v56  ;;  %6101 = vrcp.f32 %v2545_v45  ;;  %v6090_v50 = vpop.eup %6089  ;;  %v8857_v7 = vsub.f32 1.0, %v7419_v56 }
 0x2d7   : > { %v2367_v3 = vsub.f32 %v7213_v9, %v5376_v54  ;;  %2829 = vperm.xlu1 %5613, %v8859_v44   ;;  %v2175_v12 = vpop.f32.mrb[97].mxu1  ;;  %v2426_v9 = vmul.f32 1.442695, %v8998_v63  ;;  %v2456_v54 = vmul.f32 1.442695, %v2363_v6  ;;  %v2536_v6 = vadd.f32 1.0, %v6084_v61 }
 0x2d8   : > { %v2366_v28 = vsub.f32 %v7215_v11, %v2175_v12  ;;  %3198 = vperm.xlu0 %5614, %v7353_v37   ;;  %v9000_v63 = vsub.f32 %v7178_v60, %v7316_v35 }
 0x2d9   : > { %6103 = vpow2.f32 %v2426_v9  ;;  %v2549_v9 = vadd.f32 1.0, %v6090_v50 }
 0x2da   : > { %v7424_v38 = vpop.f32.mrb[98].mxu1  ;;  %v2430_v45 = vmul.f32 1.442695, %v9000_v63  ;;  %6105 = vpow2.f32 %v2456_v54  ;;  %v2464_v63 = vmul.f32 1.442695, %v2367_v3 }
 0x2db   : > { %v2369_v39 = vsub.f32 %v7217_v13, %v7424_v38  ;;  %2839 = vperm.xlu1 %5613, %v8858_v42   ;;  %v7430_v11 = vpop.f32.mrb[99].mxu1  ;;  %v7439_v13 = vpop.eup %6091  ;;  %v2460_v38 = vmul.f32 1.442695, %v2365_v40  ;;  %6107 = vrcp.f32 %v2547_v36  ;;  %v2462_v42 = vmul.f32 1.442695, %v2366_v28 }
 0x2dc   : > { %v2368_v12 = vsub.f32 %v7219_v14, %v7430_v11  ;;  %5631 = vrot.lane.b32.xlu0 %v8999_v43, %s6550_s25  ;;  %v8860_v14 = vsub.f32 1.0, %v7353_v37  ;;  %v6094_v43 = vpop.eup %6093  ;;  %6109 = vrcp.f32 %v2536_v6  ;;  %v8861_v40 = vsub.f32 1.0, %v7439_v13 }
 0x2dd   : > { %v6096_v35 = vpop.eup %6095  ;;  %6111 = vpow2.f32 %v2430_v45  ;;  %v2538_v45 = vadd.f32 1.0, %v6094_v43 }
 0x2de   : > { %v7444_v4 = vpop.f32.mrb[100].mxu1  ;;  %v7458_v54 = vpop.eup %6097  ;;  %6113 = vpow2.f32 %v2460_v38  ;;  %v2551_v6 = vadd.f32 1.0, %v6096_v35 }
 0x2df   : > { %2849 = vperm.xlu1 %5613, %v8857_v7   ;;  %v7451_v61 = vpop.f32.mrb[101].mxu1  ;;  %9001 = vst [vmem:[#allocation37_spill] sm:$0xff] %v7458_v54  ;;  %6115 = vrcp.f32 %v2549_v9  ;;  %v6100_v3 = vpop.eup %6099  ;;  %v8862_v38 = vsub.f32 1.0, %v7458_v54 }
 0x2e0   : > { %2814 = vperm.xlu0 %5614, %v8860_v14   ;;  %v7472_v28 = vpop.eup %6101  ;;  %6117 = vpow2.f32 %v2464_v63  ;;  %v2553_v49 = vadd.f32 1.0, %v6100_v3  ;;  %v2466_v63 = vmul.f32 1.442695, %v2368_v12 }
 0x2e1   : > { %9002 = vst [vmem:[#allocation38_spill] sm:$0xff] %v7472_v28  ;;  %6119 = vpow2.f32 %v2462_v42  ;;  %v8863_v42 = vsub.f32 1.0, %v7472_v28 }
 0x2e2   : > { %v7460_v7 = vpop.f32.mrb[102].mxu1  ;;  %6121 = vrcp.f32 %v2551_v6  ;;  %v8864_v6 = vsub.f32 1.0, %v7366_v26 }
 0x2e3   : > { %2859 = vperm.xlu1 %5613, %v8861_v40   ;;  %v7466_v50 = vpop.f32.mrb[103].mxu1  ;;  %v9003_v40 = vsub.f32 %v7184_v53, %v7332_v10  ;;  %v6104_v43 = vpop.eup %6103  ;;  %v9004_v53 = vpack.i.bf16 %v7357_v48, %v7366_v26  ;;  %6123 = vrcp.f32 %v2538_v45 }
 0x2e4   : > { %3208 = vperm.xlu0 %5614, %v7366_v26   ;;  %v6106_v10 = vpop.eup %6105  ;;  %v9013_v26 = vld [vmem:[#allocation11_spill] sm:$0xff] }
 0x2e5   : > { %v2434_v41 = vmul.f32 1.442695, %v9003_v40  ;;  %v7492_v40 = vpop.eup %6107  ;;  %v2555_v44 = vadd.f32 1.0, %v6106_v10 }
 0x2e6   : > { %v7474_v14 = vpop.f32.mrb[104].mxu1  ;;  %v7497_v3 = vpop.eup %6109  ;;  %v8865_v12 = vsub.f32 1.0, %v7492_v40 }
 0x2e7   : > { %2869 = vperm.xlu1 %5613, %v8862_v38   ;;  %v7483_v35 = vpop.f32.mrb[105].mxu1  ;;  %v2468_v38 = vmul.f32 1.442695, %v2369_v39  ;;  %9005 = vst [vmem:[#allocation39_spill] sm:$0xff] %v7497_v3  ;;  %6125 = vpow2.f32 %v2434_v41  ;;  %v2540_v41 = vadd.f32 1.0, %v6104_v43 }
 0x2e8   : > { %5636 = vrot.lane.b32.xlu0 %v9004_v53, %s6550_s25  ;;  %v6112_v53 = vpop.eup %6111  ;;  %6127 = vrcp.f32 %v2553_v49  ;;  %v5640_v49 = vpack.i.bf16 %v7411_v20, %v7497_v3 }
 0x2e9   : > { %v6114_v36 = vpop.eup %6113  ;;  %6129 = vpow2.f32 %v2468_v38  ;;  %v2542_v10 = vadd.f32 1.0, %v6112_v53 }
 0x2ea   : > { %v7494_v9 = vpop.f32.mrb[106].mxu1  ;;  %v7510_v60 = vpop.eup %6115  ;;  %6131 = vpow2.f32 %v2466_v63  ;;  %v9007_v63 = vsub.f32 %v7221_v15, %v7444_v4 }
 0x2eb   : > { %2879 = vperm.xlu1 %5613, %v8863_v42   ;;  %v7503_v45 = vpop.f32.mrb[107].mxu1  ;;  %v9006_v42 = vsub.f32 %v7190_v58, %v7347_v51  ;;  %v6118_v39 = vpop.eup %6117  ;;  %6133 = vrcp.f32 %v2555_v44  ;;  %v2557_v58 = vadd.f32 1.0, %v6114_v36  ;;  %v8867_v53 = vsub.f32 1.0, %v7510_v60 }
 0x2ec   : > { %2824 = vperm.xlu0 %5614, %v8864_v6   ;;  %v6120_v38 = vpop.eup %6119  ;;  %6135 = vrcp.f32 %v2540_v41  ;;  %v9008_v44 = vsub.f32 %v7223_v16, %v7451_v61  ;;  %v8866_v51 = vsub.f32 1.0, %v7497_v3  ;;  %v2559_v41 = vadd.f32 1.0, %v6118_v39 }
 0x2ed   : > { %v2438_v57 = vmul.f32 1.442695, %v9006_v42  ;;  %v2472_v42 = vmul.f32 1.442695, %v9007_v63  ;;  %v7532_v6 = vpop.eup %6121 }
 0x2ee   : > { %v7515_v11 = vpop.f32.mrb[108].mxu1  ;;  %v2470_v36 = vmul.f32 1.442695, %v9008_v44  ;;  %v8868_v39 = vsub.f32 1.0, %v7532_v6 }
 0x2ef   : > { %2889 = vperm.xlu1 %5613, %v8865_v12   ;;  %v7523_v43 = vpop.f32.mrb[109].mxu1  ;;  %6137 = vpow2.f32 %v2438_v57  ;;  %v2558_v57 = vadd.f32 1.0, %v6120_v38 }
 0x2f0   : > { %5641 = vrot.lane.b32.xlu0 %v5640_v49, %s6550_s25  ;;  %v7540_v49 = vpop.eup %6123  ;;  %6139 = vrcp.f32 %v2542_v10 }
 0x2f1   : > { %9009 = vst [vmem:[#allocation40_spill] sm:$0xff] %v7540_v49  ;;  %6141 = vrcp.f32 %v2557_v58  ;;  %v6126_v61 = vpop.eup %6125  ;;  %v5645_v44 = vpack.i.bf16 %v7419_v56, %v7540_v49  ;;  %v9010_v58 = vsub.f32 %v7195_v62, %v7361_v59  ;;  %v9011_v62 = vsub.f32 %v7225_v17, %v7460_v7 }
 0x2f2   : > { %v7537_v12 = vpop.f32.mrb[110].mxu1  ;;  %6143 = vpow2.f32 %v2472_v42  ;;  %v7553_v10 = vpop.eup %6127 }
 0x2f3   : > { %2899 = vperm.xlu1 %5613, %v8867_v53   ;;  %v7546_v4 = vpop.f32.mrb[111].mxu1  ;;  %6145 = vpow2.f32 %v2470_v36  ;;  %v2442_v38 = vmul.f32 1.442695, %v9010_v58  ;;  %v6130_v53 = vpop.eup %6129  ;;  %v2544_v36 = vadd.f32 1.0, %v6126_v61  ;;  %v2476_v59 = vmul.f32 1.442695, %v9011_v62 }
 0x2f4   : > { %2834 = vperm.xlu0 %5614, %v8866_v51   ;;  %6147 = vrcp.f32 %v2559_v41  ;;  %v6132_v15 = vpop.eup %6131  ;;  %v8871_v41 = vsub.f32 1.0, %v7553_v10 }
 0x2f5   : > { %6149 = vrcp.f32 %v2558_v57  ;;  %v7575_v58 = vpop.eup %6133  ;;  %v8872_v57 = vsub.f32 1.0, %v7540_v49  ;;  %v9024_v49 = vld [vmem:[#allocation15_spill] sm:$0xff] }
 0x2f6   : > { %v7555_v63 = vpop.f32.mrb[112].mxu1  ;;  %v7583_v16 = vpop.eup %6135  ;;  %6151 = vpow2.f32 %v2442_v38 }
 0x2f7   : > { %2909 = vperm.xlu1 %5613, %v8868_v39   ;;  %v7566_v42 = vpop.f32.mrb[113].mxu1  ;;  %v9012_v39 = vsub.f32 %v7227_v19, %v7466_v50  ;;  %6153 = vrcp.f32 %v2544_v36  ;;  %v2560_v19 = vadd.f32 1.0, %v6132_v15  ;;  %v9014_v50 = vld [vmem:[#allocation12_spill] sm:$0xff]  ;;  %v9016_v15 = vsub.f32 %v7199_v0, %v7374_v47 }
 0x2f8   : > { %5646 = vrot.lane.b32.xlu0 %v5645_v44, %s6550_s25  ;;  %v2561_v44 = vadd.f32 1.0, %v6130_v53  ;;  %6155 = vpow2.f32 %v2476_v59  ;;  %v8877_v53 = vsub.f32 1.0, %v7575_v58  ;;  %v9019_v33 = vsub.f32 1.0, %v7583_v16 }
 0x2f9   : > { %v2474_v51 = vmul.f32 1.442695, %v9012_v39  ;;  %v6138_v62 = vpop.eup %6137  ;;  %v2446_v39 = vmul.f32 1.442695, %v9016_v15  ;;  %v9021_v47 = vsub.f32 %v7229_v21, %v7474_v14 }
 0x2fa   : > { %v7580_v61 = vpop.f32.mrb[114].mxu1  ;;  %v7595_v48 = vpop.eup %6139 }
 0x2fb   : > { %2919 = vperm.xlu1 %5613, %v8871_v41   ;;  %v7589_v7 = vpop.f32.mrb[115].mxu1  ;;  %9015 = vst [vmem:[#allocation11_spill] sm:$0xff] %v7595_v48  ;;  %v7598_v38 = vpop.eup %6141  ;;  %6157 = vpow2.f32 %v2474_v51  ;;  %v2546_v51 = vadd.f32 1.0, %v6138_v62  ;;  %v9023_v62 = vsub.f32 %v7231_v22, %v7483_v35  ;;  %v5650_v17 = vpack.i.bf16 %v7458_v54, %v7595_v48  ;;  %v9025_v22 = vld [vmem:[#allocation16_spill] sm:$0xff]  ;;  %v9034_v35 = vld [vmem:[#allocation19_spill] sm:$0xff] }
 0x2fc   : > { %2844 = vperm.xlu0 %5614, %v8872_v57   ;;  %v6144_v36 = vpop.eup %6143  ;;  %6159 = vrcp.f32 %v2561_v44  ;;  %v9017_v57 = vld [vmem:[#allocation13_spill] sm:$0xff]  ;;  %v2480_v44 = vmul.f32 1.442695, %v9021_v47  ;;  %v8882_v15 = vsub.f32 1.0, %v7598_v38 }
 0x2fd   : > { %v6146_v52 = vpop.eup %6145  ;;  %6161 = vrcp.f32 %v2560_v19  ;;  %v2478_v19 = vmul.f32 1.442695, %v9023_v62 }
 0x2fe   : > { %v7600_v41 = vpop.f32.mrb[116].mxu1  ;;  %v7616_v0 = vpop.eup %6147  ;;  %6163 = vpow2.f32 %v2446_v39  ;;  %v2562_v14 = vadd.f32 1.0, %v6146_v52  ;;  %v9027_v52 = vsub.f32 %v7203_v2, %v7384_v18  ;;  %v9031_v2 = vsub.f32 %v7233_v23, %v7494_v9 }
 0x2ff   : > { %2929 = vperm.xlu1 %5613, %v8877_v53   ;;  %v7610_v59 = vpop.f32.mrb[117].mxu1  ;;  %9020 = vst [vmem:[#allocation12_spill] sm:$0xff] %v7616_v0  ;;  %v7622_v53 = vpop.eup %6149  ;;  %6165 = vrcp.f32 %v2546_v51 }
 0x300   : > { %2854 = vperm.xlu0 %5614, %v9019_v33   ;;  %9022 = vst [vmem:[#allocation13_spill] sm:$0xff] %v7622_v53  ;;  %v2563_v33 = vadd.f32 1.0, %v6144_v36  ;;  %v6152_v47 = vpop.eup %6151  ;;  %6167 = vpow2.f32 %v2480_v44  ;;  %v5695_v39 = vpack.i.bf16 %v7616_v0, %v7622_v53  ;;  %v2450_v51 = vmul.f32 1.442695, %v9027_v52 }
 0x301   : > { %v7642_v36 = vpop.eup %6153  ;;  %6169 = vpow2.f32 %v2478_v19  ;;  %v2548_v46 = vadd.f32 1.0, %v6152_v47  ;;  %v9029_v19 = vld [vmem:[#allocation18_spill] sm:$0xff]  ;;  %v2484_v18 = vmul.f32 1.442695, %v9031_v2  ;;  %v9033_v47 = vsub.f32 %v7235_v24, %v7503_v45  ;;  %v9035_v24 = vld [vmem:[#allocation20_spill] sm:$0xff]  ;;  %v9041_v45 = vld [vmem:[#allocation23_spill] sm:$0xff] }
 0x302   : > { %v7627_v37 = vpop.f32.mrb[118].mxu1  ;;  %9026 = vst [vmem:[#allocation14_spill] sm:$0xff] %v7642_v36  ;;  %v6156_v56 = vpop.eup %6155  ;;  %6171 = vrcp.f32 %v2563_v33  ;;  %v8893_v33 = vsub.f32 1.0, %v7616_v0  ;;  %v5655_v3 = vpack.i.bf16 %v7472_v28, %v7642_v36 }
 0x303   : > { %2939 = vperm.xlu1 %5613, %v8882_v15   ;;  %v7635_v21 = vpop.f32.mrb[119].mxu1  ;;  %v8890_v15 = vsub.f32 1.0, %v7595_v48  ;;  %6173 = vrcp.f32 %v2562_v14  ;;  %v2482_v14 = vmul.f32 1.442695, %v9033_v47 }
 0x304   : > { %5651 = vrot.lane.b32.xlu0 %v5650_v17, %s6550_s25  ;;  %v9028_v17 = vld [vmem:[#allocation17_spill] sm:$0xff]  ;;  %6175 = vpow2.f32 %v2450_v51 }
 0x305   : > { %v6158_v54 = vpop.eup %6157  ;;  %6177 = vrcp.f32 %v2548_v46  ;;  %v9036_v46 = vsub.f32 %v7207_v5, %v7393_v1  ;;  %v9039_v5 = vsub.f32 %v7237_v25, %v7515_v11 }
 0x306   : > { %v7644_v62 = vpop.f32.mrb[120].mxu1  ;;  %v7659_v20 = vpop.eup %6159  ;;  %v2564_v9 = vadd.f32 1.0, %v6158_v54  ;;  %6179 = vpow2.f32 %v2484_v18 }
 0x307   : > { %5696 = vrot.lane.b32.xlu1 %v5695_v39, %s6550_s25  ;;  %v7653_v44 = vpop.f32.mrb[121].mxu1  ;;  %9030 = vst [vmem:[#allocation15_spill] sm:$0xff] %v7659_v20  ;;  %v7665_v39 = vpop.eup %6161  ;;  %6181 = vpow2.f32 %v2482_v14  ;;  %v2454_v54 = vmul.f32 1.442695, %v9036_v46  ;;  %v9038_v14 = vld [vmem:[#allocation22_spill] sm:$0xff] }
 0x308   : > { %2864 = vperm.xlu0 %5614, %v8890_v15   ;;  %9032 = vst [vmem:[#allocation16_spill] sm:$0xff] %v7665_v39  ;;  %v2565_v15 = vadd.f32 1.0, %v6156_v56  ;;  %v6164_v2 = vpop.eup %6163  ;;  %v5700_v56 = vpack.i.bf16 %v7659_v20, %v7665_v39  ;;  %v2488_v1 = vmul.f32 1.442695, %v9039_v5 }
 0x309   : > { %v7685_v51 = vpop.eup %6165  ;;  %v2550_v28 = vadd.f32 1.0, %v6164_v2  ;;  %v9040_v2 = vsub.f32 %v7239_v27, %v7523_v43  ;;  %v9042_v27 = vld [vmem:[#allocation24_spill] sm:$0xff] }
 0x30a   : > { %v7670_v52 = vpop.f32.mrb[122].mxu1  ;;  %v6168_v48 = vpop.eup %6167  ;;  %6183 = vrcp.f32 %v2565_v15  ;;  %v8905_v15 = vsub.f32 1.0, %v7659_v20  ;;  %v5660_v39 = vpack.i.bf16 %v7492_v40, %v7685_v51 }
 0x30b   : > { %2949 = vperm.xlu1 %5613, %v8893_v33   ;;  %v7678_v23 = vpop.f32.mrb[123].mxu1  ;;  %v8902_v33 = vsub.f32 1.0, %v7642_v36  ;;  %v6170_v0 = vpop.eup %6169  ;;  %6185 = vrcp.f32 %v2564_v9  ;;  %v2486_v9 = vmul.f32 1.442695, %v9040_v2  ;;  %v8916_v2 = vsub.f32 1.0, %v7685_v51 }
 0x30c   : > { %5656 = vrot.lane.b32.xlu0 %v5655_v3, %s6550_s25  ;;  %v9037_v3 = vld [vmem:[#allocation21_spill] sm:$0xff]  ;;  %v7702_v53 = vpop.eup %6171  ;;  %6187 = vpow2.f32 %v2454_v54  ;;  %v2566_v11 = vadd.f32 1.0, %v6170_v0  ;;  %v9043_v0 = vsub.f32 %v7211_v8, %v7404_v34 }
 0x30d   : > { %6189 = vrcp.f32 %v2550_v28 }
 0x30e   : > { %v7687_v47 = vpop.f32.mrb[124].mxu1  ;;  %6191 = vpow2.f32 %v2488_v1  ;;  %v2458_v43 = vmul.f32 1.442695, %v9043_v0 }
 0x30f   : > { %5701 = vrot.lane.b32.xlu1 %v5700_v56, %s6550_s25  ;;  %v7696_v18 = vpop.f32.mrb[125].mxu1  ;;  %v7708_v56 = vpop.eup %6173  ;;  %6193 = vpow2.f32 %v2486_v9  ;;  %v8911_v9 = vsub.f32 1.0, %v7702_v53 }
 0x310   : > { %2874 = vperm.xlu0 %5614, %v8902_v33   ;;  %v2567_v33 = vadd.f32 1.0, %v6168_v48  ;;  %v6176_v5 = vpop.eup %6175  ;;  %v5705_v48 = vpack.i.bf16 %v7702_v53, %v7708_v56 }
 0x311   : > { %v7728_v54 = vpop.eup %6177  ;;  %v2552_v1 = vadd.f32 1.0, %v6176_v5 }
 0x312   : > { %v7713_v46 = vpop.f32.mrb[126].mxu1  ;;  %6195 = vrcp.f32 %v2567_v33  ;;  %v9044_v33 = vsub.f32 %v7241_v29, %v7537_v12  ;;  %v5665_v20 = vpack.i.bf16 %v7510_v60, %v7728_v54  ;;  %v9045_v29 = vsub.f32 %v7245_v31, %v7555_v63 }
 0x313   : > { %2959 = vperm.xlu1 %5613, %v8905_v15   ;;  %v7721_v25 = vpop.f32.mrb[127].mxu1  ;;  %v6180_v15 = vpop.eup %6179  ;;  %6197 = vrcp.f32 %v2566_v11 }
 0x314   : > { %5661 = vrot.lane.b32.xlu0 %v5660_v39, %s6550_s25  ;;  %v6182_v28 = vpop.eup %6181  ;;  %v2569_v8 = vadd.f32 1.0, %v6180_v15  ;;  %6199 = vpow2.f32 %v2458_v43  ;;  %v2496_v12 = vmul.f32 1.442695, %v9045_v29  ;;  %v8915_v15 = vsub.f32 1.0, %v7728_v54 }
 0x315   : > { %v7737_v39 = vpop.eup %6183  ;;  %v2568_v34 = vadd.f32 1.0, %v6182_v28  ;;  %6201 = vrcp.f32 %v2552_v1  ;;  %v9046_v43 = vsub.f32 %v7247_v32, %v7566_v42 }
 0x316   : > { %v7740_v36 = vpop.eup %6185  ;;  %v8910_v31 = vsub.f32 1.0, %v7737_v39 }
 0x317   : > { %5706 = vrot.lane.b32.xlu1 %v5705_v48, %s6550_s25  ;;  %v2492_v48 = vmul.f32 1.442695, %v9044_v33  ;;  %v6188_v11 = vpop.eup %6187  ;;  %v5710_v5 = vpack.i.bf16 %v7737_v39, %v7740_v36 }
 0x318   : > { %2884 = vperm.xlu0 %5614, %v8916_v2   ;;  %v7752_v0 = vpop.eup %6189  ;;  %v6291_v2 = vld [vmem:[%s6695_s28 + $0x10] sm:$0xff] }
 0x319   : > { %6203 = vpow2.f32 %v2492_v48  ;;  %v6192_v33 = vpop.eup %6191  ;;  %v2554_v48 = vadd.f32 1.0, %v6188_v11 }
 0x31a   : > { %6205 = vrcp.f32 %v2569_v8  ;;  %v6194_v28 = vpop.eup %6193  ;;  %v5670_v8 = vpack.i.bf16 %v7532_v6, %v7752_v0  ;;  %v2571_v32 = vadd.f32 1.0, %v6192_v33  ;;  %v9048_v33 = vsub.f32 %v9014_v50, %v7589_v7 }
 0x31b   : > { %2969 = vperm.xlu1 %5613, %v8911_v9   ;;  %6207 = vrcp.f32 %v2568_v34  ;;  %v2570_v42 = vadd.f32 1.0, %v6194_v28 }
 0x31c   : > { %5666 = vrot.lane.b32.xlu0 %v5665_v20, %s6550_s25  ;;  %v2494_v20 = vmul.f32 1.442695, %v9046_v43  ;;  %v7764_v1 = vpop.eup %6195  ;;  %6209 = vpow2.f32 %v2496_v12  ;;  %v8914_v12 = vsub.f32 1.0, %v7752_v0 }
 0x31d   : > { %v7767_v63 = vpop.eup %6197 }
 0x31e   : > { %6211 = vpow2.f32 %v2494_v20  ;;  %v5715_v34 = vpack.i.bf16 %v7764_v1, %v7767_v63  ;;  %v6200_v11 = vpop.eup %6199  ;;  %v2498_v20 = vmul.f32 1.442695, %v9048_v33 }
 0x31f   : > { %5711 = vrot.lane.b32.xlu1 %v5710_v5, %s6550_s25  ;;  %6213 = vrcp.f32 %v2554_v48  ;;  %v9047_v5 = vsub.f32 %v9013_v26, %v7580_v61  ;;  %v7780_v43 = vpop.eup %6201  ;;  %v2556_v26 = vadd.f32 1.0, %v6200_v11  ;;  %v8908_v61 = vsub.f32 1.0, %v7764_v1 }
 0x320   : > { %2894 = vperm.xlu0 %5614, %v8915_v15   ;;  %6215 = vrcp.f32 %v2571_v32  ;;  %v5675_v32 = vpack.i.bf16 %v7553_v10, %v7780_v43 }
 0x321   : > { %v2500_v29 = vmul.f32 1.442695, %v9047_v5  ;;  %6217 = vrcp.f32 %v2570_v42 }
 0x323   : > { %2979 = vperm.xlu1 %5613, %v8910_v31   ;;  %v6204_v28 = vpop.eup %6203  ;;  %6219 = vpow2.f32 %v2500_v29  ;;  %v9051_v29 = vsub.f32 %v9018_v55, %v7610_v59 }
 0x324   : > { %5671 = vrot.lane.b32.xlu0 %v5670_v8, %s6550_s25  ;;  %v7788_v48 = vpop.eup %6205  ;;  %6221 = vpow2.f32 %v2498_v20  ;;  %v2573_v50 = vadd.f32 1.0, %v6204_v28  ;;  %v8913_v20 = vsub.f32 1.0, %v7780_v43 }
 0x325   : > { %9049 = vst [vmem:[#allocation17_spill] sm:$0xff] %v7788_v48  ;;  %v7791_v8 = vpop.eup %6207  ;;  %6223 = vrcp.f32 %v2556_v26  ;;  %v2502_v33 = vmul.f32 1.442695, %v9051_v29  ;;  %v9053_v29 = vsub.f32 %v9025_v22, %v7635_v21 }
 0x326   : > { %v6210_v7 = vpop.eup %6209  ;;  %v5720_v5 = vpack.i.bf16 %v7788_v48, %v7791_v8  ;;  %6225 = vrcp.f32 %v2573_v50 }
 0x327   : > { %5716 = vrot.lane.b32.xlu1 %v5715_v34, %s6550_s25  ;;  %v9050_v34 = vsub.f32 %v9017_v57, %v7600_v41  ;;  %v2575_v28 = vadd.f32 1.0, %v6210_v7  ;;  %v8909_v57 = vsub.f32 1.0, %v7788_v48 }
 0x328   : > { %2904 = vperm.xlu0 %5614, %v8914_v12   ;;  %v6212_v42 = vpop.eup %6211  ;;  %v6290_v12 = vld [vmem:[%s6695_s28 + $0x18] sm:$0xff] }
 0x329   : > { %v2504_v11 = vmul.f32 1.442695, %v9050_v34  ;;  %v2574_v26 = vadd.f32 1.0, %v6212_v42  ;;  %v9052_v34 = vsub.f32 %v9024_v49, %v7627_v37 }
 0x32b   : > { %2989 = vperm.xlu1 %5613, %v8908_v61   ;;  %v7807_v61 = vpop.eup %6213  ;;  %6227 = vpow2.f32 %v2504_v11  ;;  %v2508_v11 = vmul.f32 1.442695, %v9052_v34 }
 0x32c   : > { %5676 = vrot.lane.b32.xlu0 %v5675_v32, %s6550_s25  ;;  %v7812_v41 = vpop.eup %6215  ;;  %6229 = vpow2.f32 %v2502_v33  ;;  %v5680_v59 = vpack.i.bf16 %v7575_v58, %v7807_v61  ;;  %v2506_v33 = vmul.f32 1.442695, %v9053_v29  ;;  %v6289_v29 = vld [vmem:[%s6695_s28 + $0x30] sm:$0xff] }
 0x32d   : > { %v7815_v32 = vpop.eup %6217  ;;  %6231 = vrcp.f32 %v2575_v28  ;;  %v8920_v49 = vsub.f32 1.0, %v7812_v41 }
 0x32e   : > { %v6220_v50 = vpop.eup %6219  ;;  %6233 = vrcp.f32 %v2574_v26 }
 0x32f   : > { %5721 = vrot.lane.b32.xlu1 %v5720_v5, %s6550_s25  ;;  %v6222_v42 = vpop.eup %6221  ;;  %v5725_v5 = vpack.i.bf16 %v7812_v41, %v7815_v32  ;;  %v2577_v26 = vadd.f32 1.0, %v6220_v50  ;;  %6235 = vpow2.f32 %v2508_v11 }
 0x330   : > { %2914 = vperm.xlu0 %5614, %v8913_v20   ;;  %v7831_v31 = vpop.eup %6223  ;;  %v2576_v37 = vadd.f32 1.0, %v6222_v42  ;;  %6237 = vpow2.f32 %v2506_v33  ;;  %v9054_v20 = vsub.f32 %v7243_v30, %v7546_v4  ;;  %v9056_v4 = vsub.f32 %v9029_v19, %v7653_v44  ;;  %v6292_v44 = vld [vmem:[%s6695_s28 + $0x8] sm:$0xff] }
 0x331   : > { %v7840_v21 = vpop.eup %6225  ;;  %v5685_v50 = vpack.i.bf16 %v7598_v38, %v7831_v31  ;;  %6239 = vrcp.f32 %v2577_v26  ;;  %v9055_v26 = vsub.f32 %v9028_v17, %v7644_v62 }
 0x332   : > { %v3174_v55 = vpop.permute.xlu1 %3173  ;;  %v2490_v33 = vmul.f32 1.442695, %v9054_v20  ;;  %6241 = vrcp.f32 %v2576_v37 }
 0x333   : > { %v3169_v7 = vpop.permute.xlu0 %3168  ;;  %2999 = vperm.xlu1 %5613, %v8909_v57   ;;  %v8912_v57 = vsub.f32 1.0, %v7807_v61  ;;  %v3487_v15 = vmul.f32 %v6290_v12, %v3174_v55  ;;  %v2510_v12 = vmul.f32 1.442695, %v9056_v4 }
 0x334   : > { %5681 = vrot.lane.b32.xlu0 %v5680_v59, %s6550_s25  ;;  %6243 = vpow2.f32 %v2490_v33  ;;  %v3486_v19 = vmul.f32 %v6292_v44, %v3169_v7  ;;  %v6294_v33 = vld [vmem:[%s6695_s28 + $0x20] sm:$0xff] }
 0x335   : > { %v6228_v34 = vpop.eup %6227 }
 0x336   : > { %v3184_v28 = vpop.permute.xlu1 %3183  ;;  %v6230_v11 = vpop.eup %6229  ;;  %v2579_v55 = vadd.f32 1.0, %v6228_v34  ;;  %v8935_v34 = vsub.f32 1.0, %v7831_v31 }
 0x337   : > { %v7833_v59 = vpop.permute.xlu0 %5616  ;;  %5726 = vrot.lane.b32.xlu1 %v5725_v5, %s6550_s25  ;;  %v6288_v5 = vld [vmem:[%s6695_s28 + $0x38] sm:$0xff]  ;;  %v2578_v17 = vadd.f32 1.0, %v6230_v11 }
 0x338   : > { %2924 = vperm.xlu0 %5614, %v8912_v57   ;;  %v3489_v42 = vmul.f32 %v6288_v5, %v3184_v28  ;;  %v7854_v28 = vpop.eup %6231 }
 0x339   : > { %v7860_v30 = vpop.eup %6233 }
 0x33a   : > { %v2800_v22 = vpop.permute.xlu1 %2799 }
 0x33b   : > { %v3105_v9 = vmul.f32 %v6289_v29, %v2800_v22  ;;  %v2790_v57 = vpop.permute.xlu0 %2789  ;;  %3009 = vperm.xlu1 %5613, %v8920_v49   ;;  %v2512_v22 = vmul.f32 1.442695, %v9055_v26  ;;  %v8919_v29 = vsub.f32 1.0, %v7840_v21 }
 0x33c   : > { %v3103_v48 = vmul.f32 %v6291_v2, %v2790_v57  ;;  %5686 = vrot.lane.b32.xlu0 %v5685_v50, %s6550_s25  ;;  %v5690_v57 = vpack.i.bf16 %v7439_v13, %v7583_v16 }
 0x33d   : > { %v3553_v5 = vadd.f32 %v3489_v42, %v3105_v9  ;;  %v6293_v9 = vld [vmem:[%s6695_s28] sm:$0xff]  ;;  %6245 = vpow2.f32 %v2512_v22  ;;  %v6236_v42 = vpop.eup %6235  ;;  %v6295_v22 = vld [vmem:[%s6695_s28 + $0x28] sm:$0xff] }
 0x33e   : > { %v3551_v2 = vadd.f32 %v3487_v15, %v3103_v48  ;;  %v2795_v20 = vpop.permute.xlu1 %2794  ;;  %v5730_v48 = vpack.i.bf16 %v7854_v28, %v7860_v30  ;;  %6247 = vpow2.f32 %v2510_v12  ;;  %v6238_v11 = vpop.eup %6237  ;;  %v9057_v12 = vsub.f32 %v9034_v35, %v7670_v52 }
 0x33f   : > { %3617 = vst [vmem:[%s7869_s12 + $0x18] sm:$0xff] %v3553_v5  ;;  %v2785_v62 = vpop.permute.xlu0 %2784  ;;  %3019 = vperm.xlu1 %5613, %v8919_v29   ;;  %6249 = vrcp.f32 %v2579_v55  ;;  %v3104_v26 = vmul.f32 %v6294_v33, %v2795_v20  ;;  %v7887_v4 = vpop.eup %6239  ;;  %v9058_v20 = vsub.f32 %v9035_v24, %v7678_v23  ;;  %v2580_v33 = vadd.f32 1.0, %v6238_v11 }
 0x340   : > { %3615 = vst [vmem:[%s7869_s12 + $0x8] sm:$0xff] %v3551_v2  ;;  %v3102_v15 = vmul.f32 %v6293_v9, %v2785_v62  ;;  %5691 = vrot.lane.b32.xlu0 %v5690_v57, %s6550_s25  ;;  %6251 = vrcp.f32 %v2578_v17  ;;  %v2516_v2 = vmul.f32 1.442695, %v9057_v12  ;;  %v8933_v57 = vsub.f32 1.0, %v7854_v28  ;;  %v7893_v55 = vpop.eup %6241 }
 0x341   : > { %v2514_v62 = vmul.f32 1.442695, %v9058_v20  ;;  %v5735_v24 = vpack.i.bf16 %v7887_v4, %v7893_v55  ;;  %v9061_v20 = vsub.f32 %v9037_v3, %v7687_v47 }
 0x342   : > { %v3550_v37 = vadd.f32 %v3486_v19, %v3102_v15  ;;  %v3194_v50 = vpop.permute.xlu1 %3193  ;;  %v9059_v19 = vld [vmem:[#allocation13_spill] sm:$0xff]  ;;  %v2581_v15 = vadd.f32 1.0, %v6236_v42  ;;  %6253 = vpow2.f32 %v2516_v2  ;;  %v6244_v42 = vpop.eup %6243 }
 0x343   : > { %v3179_v7 = vpop.permute.xlu0 %3178  ;;  %5731 = vrot.lane.b32.xlu1 %v5730_v48, %s6550_s25  ;;  %v8934_v9 = vsub.f32 1.0, %v9059_v19  ;;  %v6296_v48 = vld [vmem:[%s6695_s28 + $0x58] sm:$0xff]  ;;  %6255 = vpow2.f32 %v2514_v62  ;;  %v2520_v62 = vmul.f32 1.442695, %v9061_v20  ;;  %v2572_v3 = vadd.f32 1.0, %v6244_v42  ;;  %v6300_v42 = vld [vmem:[%s6695_s28 + $0x48] sm:$0xff] }
 0x344   : > { %3614 = vst [vmem:[%s7869_s12] sm:$0xff] %v3550_v37  ;;  %v3488_v5 = vmul.f32 %v6295_v22, %v3179_v7  ;;  %2934 = vperm.xlu0 %5614, %v8935_v34   ;;  %v3491_v37 = vmul.f32 %v6296_v48, %v3194_v50  ;;  %v6297_v7 = vld [vmem:[%s6695_s28 + $0x50] sm:$0xff]  ;;  %6257 = vrcp.f32 %v2581_v15  ;;  %v9062_v15 = vsub.f32 %v9038_v14, %v7696_v18 }
 0x345   : > { %6259 = vrcp.f32 %v2580_v33  ;;  %v6298_v33 = vld [vmem:[%s6695_s28 + $0x78] sm:$0xff] }
 0x346   : > { %v3552_v17 = vadd.f32 %v3488_v5, %v3104_v26  ;;  %v2810_v44 = vpop.permute.xlu1 %2809  ;;  %v9060_v26 = vld [vmem:[#allocation16_spill] sm:$0xff]  ;;  %v2518_v48 = vmul.f32 1.442695, %v9062_v15  ;;  %6261 = vpow2.f32 %v2520_v62 }
 0x347   : > { %v3107_v35 = vmul.f32 %v6297_v7, %v2810_v44  ;;  %v7901_v52 = vpop.permute.xlu0 %5621  ;;  %3029 = vperm.xlu1 %5613, %v8933_v57   ;;  %v8931_v22 = vsub.f32 1.0, %v9060_v26  ;;  %v6246_v5 = vpop.eup %6245  ;;  %v8925_v7 = vsub.f32 1.0, %v7708_v56 }
 0x348   : > { %3616 = vst [vmem:[%s7869_s12 + $0x10] sm:$0xff] %v3552_v17  ;;  %2944 = vperm.xlu0 %5614, %v8934_v9   ;;  %v6248_v12 = vpop.eup %6247  ;;  %v8929_v17 = vsub.f32 1.0, %v7887_v4  ;;  %6263 = vpow2.f32 %v2518_v48 }
 0x349   : > { %v3555_v23 = vadd.f32 %v3491_v37, %v3107_v35  ;;  %v7915_v2 = vpop.eup %6249  ;;  %v2583_v35 = vadd.f32 1.0, %v6246_v5  ;;  %v2582_v47 = vadd.f32 1.0, %v6248_v12  ;;  %v8921_v5 = vsub.f32 1.0, %v7740_v36 }
 0x34a   : > { %v3204_v50 = vpop.permute.xlu1 %3203  ;;  %v7921_v44 = vpop.eup %6251 }
 0x34b   : > { %3619 = vst [vmem:[%s7869_s12 + $0x28] sm:$0xff] %v3555_v23  ;;  %v3189_v11 = vpop.permute.xlu0 %3188  ;;  %5736 = vrot.lane.b32.xlu1 %v5735_v24, %s6550_s25  ;;  %v3493_v23 = vmul.f32 %v6298_v33, %v3204_v50  ;;  %v6299_v24 = vld [vmem:[%s6695_s28 + $0x70] sm:$0xff]  ;;  %v5740_v14 = vpack.i.bf16 %v7915_v2, %v7921_v44  ;;  %6265 = vrcp.f32 %v2583_v35  ;;  %v9064_v35 = vsub.f32 %v9041_v45, %v7713_v46 }
 0x34c   : > { %2954 = vperm.xlu0 %5614, %v8931_v22   ;;  %v6254_v20 = vpop.eup %6253  ;;  %6267 = vrcp.f32 %v2582_v47  ;;  %v8937_v34 = vsub.f32 1.0, %v7921_v44 }
 0x34d   : > { %v6256_v12 = vpop.eup %6255  ;;  %6269 = vrcp.f32 %v2572_v3  ;;  %v2524_v33 = vmul.f32 1.442695, %v9064_v35 }
 0x34e   : > { %v2820_v37 = vpop.permute.xlu1 %2819  ;;  %v7944_v48 = vpop.eup %6257  ;;  %v2584_v35 = vadd.f32 1.0, %v6256_v12 }
 0x34f   : > { %v3109_v29 = vmul.f32 %v6299_v24, %v2820_v37  ;;  %v7929_v49 = vpop.permute.xlu0 %5626  ;;  %3039 = vperm.xlu1 %5613, %v8929_v17   ;;  %v3490_v37 = vmul.f32 %v6300_v42, %v3189_v11  ;;  %9063 = vst [vmem:[#allocation18_spill] sm:$0xff] %v7944_v48  ;;  %v7950_v24 = vpop.eup %6259  ;;  %v9066_v11 = vsub.f32 %v9042_v27, %v7721_v25  ;;  %v2585_v42 = vadd.f32 1.0, %v6254_v20 }
 0x350   : > { %2964 = vperm.xlu0 %5614, %v8925_v7   ;;  %9065 = vst [vmem:[#allocation19_spill] sm:$0xff] %v7950_v24  ;;  %6271 = vpow2.f32 %v2524_v33  ;;  %v5745_v27 = vpack.i.bf16 %v7944_v48, %v7950_v24  ;;  %v8926_v33 = vsub.f32 1.0, %v7944_v48 }
 0x351   : > { %v3557_v18 = vadd.f32 %v3493_v23, %v3109_v29  ;;  %v6301_v29 = vld [vmem:[%s6695_s28 + $0x40] sm:$0xff]  ;;  %v8924_v23 = vsub.f32 1.0, %v7915_v2  ;;  %v2522_v47 = vmul.f32 1.442695, %v9066_v11 }
 0x352   : > { %v3214_v50 = vpop.permute.xlu1 %3213 }
 0x353   : > { %3621 = vst [vmem:[%s7869_s12 + $0x38] sm:$0xff] %v3557_v18  ;;  %v2805_v15 = vpop.permute.xlu0 %2804  ;;  %5741 = vrot.lane.b32.xlu1 %v5740_v14, %s6550_s25  ;;  %6273 = vpow2.f32 %v2522_v47 }
 0x354   : > { %v3106_v62 = vmul.f32 %v6301_v29, %v2805_v15  ;;  %2974 = vperm.xlu0 %5614, %v8921_v5   ;;  %v8923_v15 = vsub.f32 1.0, %v7767_v63  ;;  %v6302_v29 = vld [vmem:[%s6695_s28 + $0x98] sm:$0xff]  ;;  %v6303_v5 = vld [vmem:[%s6695_s28 + $0x90] sm:$0xff]  ;;  %6275 = vrcp.f32 %v2585_v42 }
 0x355   : > { %v3495_v3 = vmul.f32 %v6302_v29, %v3214_v50  ;;  %v8922_v50 = vsub.f32 1.0, %v7791_v8  ;;  %6277 = vrcp.f32 %v2584_v35 }
 0x356   : > { %v3554_v18 = vadd.f32 %v3490_v37, %v3106_v62  ;;  %v2830_v14 = vpop.permute.xlu1 %2829 }
 0x357   : > { %v3111_v45 = vmul.f32 %v6303_v5, %v2830_v14  ;;  %v3199_v46 = vpop.permute.xlu0 %3198  ;;  %3049 = vperm.xlu1 %5613, %v8924_v23   ;;  %v6262_v5 = vpop.eup %6261 }
 0x358   : > { %3618 = vst [vmem:[%s7869_s12 + $0x20] sm:$0xff] %v3554_v18  ;;  %2984 = vperm.xlu0 %5614, %v8923_v15   ;;  %v6264_v12 = vpop.eup %6263  ;;  %v8928_v18 = vsub.f32 1.0, %v7815_v32  ;;  %v2587_v42 = vadd.f32 1.0, %v6262_v5 }
 0x359   : > { %v3559_v25 = vadd.f32 %v3495_v3, %v3111_v45  ;;  %v7974_v62 = vpop.eup %6265  ;;  %v2586_v3 = vadd.f32 1.0, %v6264_v12  ;;  %v6304_v45 = vld [vmem:[%s6695_s28 + $0x68] sm:$0xff] }
 0x35a   : > { %v7965_v20 = vpop.permute.xlu1 %2839  ;;  %9068 = vst [vmem:[#allocation21_spill] sm:$0xff] %v7974_v62  ;;  %v7977_v11 = vpop.eup %6267  ;;  %v3492_v35 = vmul.f32 %v6304_v45, %v3199_v46  ;;  %6279 = vrcp.f32 %v2587_v42  ;;  %v8932_v42 = vsub.f32 1.0, %v7860_v30 }
 0x35b   : > { %9067 = vst [vmem:[#allocation20_spill] sm:$0xff] %v7965_v20  ;;  %3623 = vst [vmem:[%s7869_s12 + $0x48] sm:$0xff] %v3559_v25  ;;  %v7969_v37 = vpop.permute.xlu0 %5631  ;;  %5746 = vrot.lane.b32.xlu1 %v5745_v27, %s6550_s25  ;;  %v7982_v14 = vpop.eup %6269  ;;  %v6305_v25 = vld [vmem:[%s6695_s28 + $0x60] sm:$0xff]  ;;  %6281 = vrcp.f32 %v2586_v3 }
 0x35c   : > { %2994 = vperm.xlu0 %5614, %v8922_v50   ;;  %9069 = vst [vmem:[#allocation22_spill] sm:$0xff] %v7977_v11  ;;  %v5750_v50 = vpack.i.bf16 %v7974_v62, %v7977_v11  ;;  %v8927_v5 = vsub.f32 1.0, %v7982_v14  ;;  %v6272_v7 = vpop.eup %6271 }
 0x35d   : > { %v6274_v12 = vpop.eup %6273 }
 0x35e   : > { %v7979_v47 = vpop.permute.xlu1 %2849  ;;  %v7999_v46 = vpop.eup %6275 }
 0x35f   : > { %9070 = vst [vmem:[#allocation23_spill] sm:$0xff] %v7979_v47  ;;  %v2815_v29 = vpop.permute.xlu0 %2814  ;;  %3059 = vperm.xlu1 %5613, %v8926_v33   ;;  %9072 = vst [vmem:[#allocation13_spill] sm:$0xff] %v7999_v46  ;;  %v8002_v45 = vpop.eup %6277 }
 0x360   : > { %v3108_v27 = vmul.f32 %v6305_v25, %v2815_v29  ;;  %3004 = vperm.xlu0 %5614, %v8928_v18   ;;  %v8930_v29 = vsub.f32 1.0, %v7974_v62  ;;  %9073 = vst [vmem:[#allocation16_spill] sm:$0xff] %v8002_v45  ;;  %v2589_v25 = vadd.f32 1.0, %v6272_v7  ;;  %v5755_v3 = vpack.i.bf16 %v7999_v46, %v8002_v45  ;;  %v6306_v7 = vld [vmem:[%s6695_s28 + $0x88] sm:$0xff] }
 0x362   : > { %v3556_v15 = vadd.f32 %v3492_v35, %v3108_v27  ;;  %v7992_v23 = vpop.permute.xlu1 %2859  ;;  %6283 = vrcp.f32 %v2589_v25 }
 0x363   : > { %9071 = vst [vmem:[#allocation24_spill] sm:$0xff] %v7992_v23  ;;  %v3209_v33 = vpop.permute.xlu0 %3208  ;;  %5751 = vrot.lane.b32.xlu1 %v5750_v50, %s6550_s25 }
 0x364   : > { %3620 = vst [vmem:[%s7869_s12 + $0x30] sm:$0xff] %v3556_v15  ;;  %3014 = vperm.xlu0 %5614, %v8927_v5   ;;  %v2588_v15 = vadd.f32 1.0, %v6274_v12  ;;  %v8939_v5 = vsub.f32 1.0, %v7893_v55  ;;  %v3494_v17 = vmul.f32 %v6306_v7, %v3209_v33  ;;  %v8023_v22 = vpop.eup %6279 }
 0x365   : > { %9076 = vst [vmem:[#allocation43_spill] sm:$0xff] %v8023_v22  ;;  %v8026_v57 = vpop.eup %6281 }
 0x366   : > { %v8004_v35 = vpop.permute.xlu1 %2869  ;;  %6285 = vrcp.f32 %v2588_v15  ;;  %9077 = vst [vmem:[#allocation44_spill] sm:$0xff] %v8026_v57  ;;  %v5760_v33 = vpack.i.bf16 %v8023_v22, %v8026_v57 }
 0x367   : > { %9074 = vst [vmem:[#allocation41_spill] sm:$0xff] %v8004_v35  ;;  %v8007_v50 = vpop.permute.xlu0 %5636  ;;  %3069 = vperm.xlu1 %5613, %v8930_v29   ;;  %v6307_v29 = vld [vmem:[%s6695_s28 + $0x80] sm:$0xff]  ;;  %v9089_v35 = vld [vmem:[#allocation35_spill] sm:$0xff] }
 0x368   : > { %3024 = vperm.xlu0 %5614, %v8932_v42   ;;  %v8936_v42 = vsub.f32 1.0, %v7999_v46 }
 0x36a   : > { %v8015_v27 = vpop.permute.xlu1 %2879 }
 0x36b   : > { %9075 = vst [vmem:[#allocation42_spill] sm:$0xff] %v8015_v27  ;;  %v2825_v18 = vpop.permute.xlu0 %2824  ;;  %5756 = vrot.lane.b32.xlu1 %v5755_v3, %s6550_s25 }
 0x36c   : > { %v3110_v12 = vmul.f32 %v6307_v29, %v2825_v18  ;;  %3034 = vperm.xlu0 %5614, %v8939_v5   ;;  %v8048_v15 = vpop.eup %6283  ;;  %v8942_v5 = vsub.f32 1.0, %v8002_v45 }
 0x36d   : > { %9081 = vst [vmem:[#allocation48_spill] sm:$0xff] %v8048_v15 }
 0x36e   : > { %v3558_v9 = vadd.f32 %v3494_v17, %v3110_v12  ;;  %v8028_v25 = vpop.permute.xlu1 %2889  ;;  %v8938_v17 = vsub.f32 1.0, %v7950_v24 }
 0x36f   : > { %9078 = vst [vmem:[#allocation45_spill] sm:$0xff] %v8028_v25  ;;  %v8031_v3 = vpop.permute.xlu0 %5641  ;;  %3079 = vperm.xlu1 %5613, %v8936_v42   ;;  %v8941_v42 = vsub.f32 1.0, %v7977_v11  ;;  %v9112_v11 = vld [vmem:[#allocation14_spill] sm:$0xff] }
 0x370   : > { %3622 = vst [vmem:[%s7869_s12 + $0x40] sm:$0xff] %v3558_v9  ;;  %3044 = vperm.xlu0 %5614, %v8937_v34   ;;  %v8940_v9 = vsub.f32 1.0, %v8023_v22  ;;  %v8051_v7 = vpop.eup %6285  ;;  %v9113_v62 = vsub.f32 1.0, %v9112_v11 }
 0x371   : > { %9082 = vst [vmem:[#allocation49_spill] sm:$0xff] %v8051_v7 }
 0x372   : > { %v8040_v18 = vpop.permute.xlu1 %2899 }
 0x373   : > { %9079 = vst [vmem:[#allocation46_spill] sm:$0xff] %v8040_v18  ;;  %v8043_v29 = vpop.permute.xlu0 %2834  ;;  %5761 = vrot.lane.b32.xlu1 %v5760_v33, %s6550_s25  ;;  %v5765_v33 = vpack.i.bf16 %v8048_v15, %v8051_v7  ;;  %v9097_v15 = vld [vmem:[#allocation11_spill] sm:$0xff] }
 0x374   : > { %9080 = vst [vmem:[#allocation47_spill] sm:$0xff] %v8043_v29  ;;  %3054 = vperm.xlu0 %5614, %v8938_v17  }
 0x376   : > { %v8053_v12 = vpop.permute.xlu1 %2909 }
 0x377   : > { %9083 = vst [vmem:[#allocation50_spill] sm:$0xff] %v8053_v12  ;;  %v8056_v34 = vpop.permute.xlu0 %5646  ;;  %3089 = vperm.xlu1 %5613, %v8940_v9   ;;  %v5770_v9 = vpack.i.bf16 %v7840_v21, %v7982_v14 }
 0x378   : > { %3064 = vperm.xlu0 %5614, %v8941_v42   ;;  %v8943_v42 = vsub.f32 1.0, %v8026_v57  ;;  %v9098_v57 = vsub.f32 1.0, %v9097_v15 }
 0x37a   : > { %v8064_v17 = vpop.permute.xlu1 %2919 }
 0x37b   : > { %9084 = vst [vmem:[#allocation51_spill] sm:$0xff] %v8064_v17  ;;  %v8067_v18 = vpop.permute.xlu0 %2844  ;;  %5766 = vrot.lane.b32.xlu1 %v5765_v33, %s6550_s25  ;;  %v5619_v17 = vunpack.i.h.bf16 %v7833_v59  ;;  %v5618_v33 = vunpack.i.l.bf16 %v7833_v59  ;;  %v9095_v59 = vld [vmem:[#allocation37_spill] sm:$0xff] }
 0x37c   : > { %9085 = vst [vmem:[#allocation52_spill] sm:$0xff] %v8067_v18  ;;  %3074 = vperm.xlu0 %5614, %v8942_v5   ;;  %v9090_v18 = vld [vmem:[#allocation39_spill] sm:$0xff]  ;;  %v9096_v7 = vsub.f32 1.0, %v9095_v59 }
 0x37e   : > { %v8074_v12 = vpop.permute.xlu1 %2929 }
 0x37f   : > { %9086 = vst [vmem:[#allocation53_spill] sm:$0xff] %v8074_v12  ;;  %v8077_v25 = vpop.permute.xlu0 %2854  ;;  %5771 = vrot.lane.b32.xlu1 %v5770_v9, %s6550_s25 }
 0x380   : > { %9087 = vst [vmem:[#allocation54_spill] sm:$0xff] %v8077_v25  ;;  %3084 = vperm.xlu0 %5614, %v8943_v42   ;;  %v9091_v25 = vld [vmem:[#allocation25_spill] sm:$0xff]  ;;  %v9093_v42 = vld [vmem:[#allocation26_spill] sm:$0xff] }
 0x381   : > { %v9092_v9 = vsub.f32 1.0, %v9091_v25  ;;  %v9094_v29 = vsub.f32 1.0, %v9093_v42  ;;  %v3935_v25 = vlaneseq }
 0x382   : > { %v8084_v5 = vpop.permute.xlu1 %2939 }
 0x383   : > { %9088 = vst [vmem:[#allocation55_spill] sm:$0xff] %v8084_v5  ;;  %v5652_v27 = vpop.permute.xlu0 %5651  ;;  %3223 = vperm.xlu1 %5613, %v9089_v35   ;;  %v3872_v47 = vsel %vm3870_vm1, %v9092_v9, %v5619_v17  ;;  %v3871_v20 = vsel %vm3870_vm1, %v9094_v29, %v5618_v33  ;;  %v9102_v17 = vld [vmem:[#allocation36_spill] sm:$0xff]  ;;  %v5623_v9 = vunpack.i.l.bf16 %v7901_v52 }
 0x384   : > { %v5654_v12 = vunpack.i.h.bf16 %v5652_v27  ;;  %v5653_v23 = vunpack.i.l.bf16 %v5652_v27  ;;  %3218 = vperm.xlu0 %5614, %v9090_v18   ;;  %v5461_v33 = vpack.c.bf16 %v3872_v47, %v3871_v20  ;;  %v6551_v20 = vmov 0.0   ;;  %v6315_v27 = vld [vmem:[%s6695_s28 + $0xc8] sm:$0xff] }
 0x386   : > { %v3888_v5 = vsel %vm3870_vm1, %v9096_v7, %v5654_v12  ;;  %v3887_v22 = vsel %vm3870_vm1, %v9098_v57, %v5653_v23  ;;  %v8100_v45 = vpop.permute.xlu1 %5696  ;;  %v9103_v7 = vld [vmem:[#allocation40_spill] sm:$0xff]  ;;  %v8112_v12 = vshrl.u32 %v3935_v25, 7  ;;  %v3938_v57 = vand.u32 127, %v3935_v25 }
 0x387   : > { %v8108_v42 = vpop.permute.xlu0 %2864  ;;  %3233 = vperm.xlu1 %5613, %v9102_v17   ;;  %v5458_v29 = vpack.c.bf16 %v3888_v5, %v3887_v22  ;;  %v5624_v23 = vunpack.i.h.bf16 %v7901_v52  ;;  %v9106_v52 = vld [vmem:[#allocation27_spill] sm:$0xff] }
 0x388   : > { %9101 = vst [vmem:[#allocation35_spill] sm:$0xff] %v8108_v42  ;;  %3228 = vperm.xlu0 %5614, %v9103_v7   ;;  %9104 = vst [vmem:[#allocation39_spill] sm:$0xff] %v8112_v12  ;;  %vm3939_vm4 = vcmp.eq.s32.totalorder %v8112_v12, %v3938_v57 }
 0x389   : > { %5460 = vmatprep.subr.msk.bf16.mxu1 %vm8104_vm3, %v5458_v29  ;;  %v8124_v47 = vsel %vm3939_vm4, 1.0, %v6551_v20  ;;  %v9107_v29 = vsub.f32 1.0, %v9106_v52  ;;  %v9110_v20 = vld [vmem:[#allocation38_spill] sm:$0xff] }
 0x38a   : > { %5463 = vmatpush3.bf16.xpose.msk.msra.mxu1 %vm8104_vm3, %v5461_v33  ;;  %v8120_v42 = vpop.permute.xlu1 %2949  ;;  %4966 = vmatprep.mubr.msk.f32.mxu1 %vm3942_vm2, %v8124_v47  ;;  %v9111_v12 = vsub.f32 1.0, %v9110_v20 }
 0x38b   : > { %9105 = vst [vmem:[#allocation25_spill] sm:$0xff] %v8120_v42  ;;  %v5657_v22 = vpop.permute.xlu0 %5656  ;;  %3243 = vperm.xlu1 %5613, %v7439_v13   ;;  %v3874_v33 = vsel %vm3870_vm1, %v9107_v29, %v5624_v23  ;;  %v9108_v42 = vld [vmem:[#allocation28_spill] sm:$0xff]  ;;  %5000 = vmatprep.mubr.msk.f32.mxu0 %vm3942_vm2, %v8124_v47 }
 0x38c   : > { %v5659_v5 = vunpack.i.h.bf16 %v5657_v22  ;;  %v5658_v25 = vunpack.i.l.bf16 %v5657_v22  ;;  %3238 = vperm.xlu0 %5614, %v7583_v16   ;;  %v9109_v46 = vsub.f32 1.0, %v9108_v42 }
 0x38e   : > { %v3873_v57 = vsel %vm3870_vm1, %v9109_v46, %v5623_v9  ;;  %v3890_v22 = vsel %vm3870_vm1, %v9111_v12, %v5659_v5  ;;  %v3889_v24 = vsel %vm3870_vm1, %v9113_v62, %v5658_v25  ;;  %v8143_v48 = vpop.permute.xlu1 %5701  ;;  %v5629_v46 = vunpack.i.h.bf16 %v7929_v49 }
 0x38f   : > { %v8145_v52 = vpop.permute.xlu0 %2874  ;;  %3253 = vperm.xlu1 %5613, %v9095_v59   ;;  %v5464_v42 = vpack.c.bf16 %v3890_v22, %v3889_v24  ;;  %v5467_v23 = vpack.c.bf16 %v3874_v33, %v3873_v57  ;;  %v5628_v9 = vunpack.i.l.bf16 %v7929_v49  ;;  %v9116_v49 = vld [vmem:[#allocation30_spill] sm:$0xff]  ;;  %v9118_v57 = vsub.f32 1.0, %v7492_v40 }
 0x390   : > { %3248 = vperm.xlu0 %5614, %v9097_v15   ;;  %v9114_v15 = vld [vmem:[#allocation29_spill] sm:$0xff]  ;;  %v9117_v29 = vsub.f32 1.0, %v9116_v49 }
 0x391   : > { %5466 = vmatprep.subr.msk.bf16.mxu1 %vm8104_vm3, %v5464_v42  ;;  %v9115_v5 = vsub.f32 1.0, %v9114_v15  ;;  %v9119_v42 = vsub.f32 1.0, %v7685_v51  ;;  %v5633_v15 = vunpack.i.l.bf16 %v7969_v37 }
 0x392   : > { %5469 = vmatpush3.bf16.xpose.msk.msra.mxu1 %vm8104_vm3, %v5467_v23  ;;  %v8155_v62 = vpop.permute.xlu1 %2959  ;;  %v3875_v33 = vsel %vm3870_vm1, %v9117_v29, %v5628_v9  ;;  %v5634_v9 = vunpack.i.h.bf16 %v7969_v37  ;;  %v9122_v37 = vld [vmem:[#allocation32_spill] sm:$0xff] }
 0x393   : > { %v5662_v12 = vpop.permute.xlu0 %5661  ;;  %3263 = vperm.xlu1 %5613, %v9110_v20   ;;  %v3876_v25 = vsel %vm3870_vm1, %v9115_v5, %v5629_v46  ;;  %v9123_v29 = vsub.f32 1.0, %v9122_v37 }
 0x394   : > { %v5664_v59 = vunpack.i.h.bf16 %v5662_v12  ;;  %v5663_v24 = vunpack.i.l.bf16 %v5662_v12  ;;  %3258 = vperm.xlu0 %5614, %v9112_v11   ;;  %v5473_v46 = vpack.c.bf16 %v3876_v25, %v3875_v33 }
 0x395   : > { %v3877_v33 = vsel %vm3870_vm1, %v9123_v29, %v5633_v15  ;;  %v5639_v15 = vunpack.i.h.bf16 %v8007_v50 }
 0x396   : > { %v3892_v22 = vsel %vm3870_vm1, %v9118_v57, %v5664_v59  ;;  %v3891_v20 = vsel %vm3870_vm1, %v9119_v42, %v5663_v24  ;;  %v8171_v23 = vpop.permute.xlu1 %5706  ;;  %v9124_v57 = vsub.f32 1.0, %v7510_v60  ;;  %v9125_v42 = vsub.f32 1.0, %v7728_v54 }
 0x397   : > { %v8173_v12 = vpop.permute.xlu0 %2884  ;;  %3273 = vperm.xlu1 %5613, %v7492_v40   ;;  %v5470_v11 = vpack.c.bf16 %v3892_v22, %v3891_v20 }
 0x398   : > { %3268 = vperm.xlu0 %5614, %v7685_v51   ;;  %v9120_v51 = vld [vmem:[#allocation31_spill] sm:$0xff] }
 0x399   : > { %5472 = vmatprep.subr.msk.bf16.mxu1 %vm8104_vm3, %v5470_v11  ;;  %v9121_v25 = vsub.f32 1.0, %v9120_v51 }
 0x39a   : > { %5475 = vmatpush3.bf16.xpose.msk.msra.mxu1 %vm8104_vm3, %v5473_v46  ;;  %v8183_v59 = vpop.permute.xlu1 %2969 }
 0x39b   : > { %v5667_v24 = vpop.permute.xlu0 %5666  ;;  %3283 = vperm.xlu1 %5613, %v7510_v60   ;;  %v3878_v49 = vsel %vm3870_vm1, %v9121_v25, %v5634_v9  ;;  %v5638_v60 = vunpack.i.l.bf16 %v8007_v50  ;;  %v9126_v25 = vld [vmem:[#allocation33_spill] sm:$0xff]  ;;  %v9128_v50 = vld [vmem:[#allocation34_spill] sm:$0xff] }
 0x39c   : > { %v5669_v40 = vunpack.i.h.bf16 %v5667_v24  ;;  %v5668_v5 = vunpack.i.l.bf16 %v5667_v24  ;;  %3278 = vperm.xlu0 %5614, %v7728_v54   ;;  %v5479_v9 = vpack.c.bf16 %v3878_v49, %v3877_v33  ;;  %v9127_v49 = vsub.f32 1.0, %v9126_v25 }
 0x39d   : > { %v9129_v29 = vsub.f32 1.0, %v9128_v50 }
 0x39e   : > { %v3894_v22 = vsel %vm3870_vm1, %v9124_v57, %v5669_v40  ;;  %v3893_v20 = vsel %vm3870_vm1, %v9125_v42, %v5668_v5  ;;  %v8199_v11 = vpop.permute.xlu1 %5711  ;;  %v3880_v37 = vsel %vm3870_vm1, %v9127_v49, %v5639_v15  ;;  %v9130_v57 = vsub.f32 1.0, %v7532_v6 }
 0x39f   : > { %v8201_v46 = vpop.permute.xlu0 %2894  ;;  %3293 = vperm.xlu1 %5613, %v7532_v6   ;;  %v5476_v24 = vpack.c.bf16 %v3894_v22, %v3893_v20  ;;  %v3879_v33 = vsel %vm3870_vm1, %v9129_v29, %v5638_v60  ;;  %v9131_v42 = vsub.f32 1.0, %v7752_v0  ;;  %v5644_v60 = vunpack.i.h.bf16 %v8031_v3 }
 0x3a0   : > { %3288 = vperm.xlu0 %5614, %v7752_v0   ;;  %v5485_v15 = vpack.c.bf16 %v3880_v37, %v3879_v33  ;;  %v5643_v6 = vunpack.i.l.bf16 %v8031_v3  ;;  %v9132_v49 = vsub.f32 1.0, %v9089_v35  ;;  %v9133_v3 = vsub.f32 1.0, %v9090_v18 }
 0x3a1   : > { %5478 = vmatprep.subr.msk.bf16.mxu1 %vm8104_vm3, %v5476_v24  ;;  %v9134_v29 = vsub.f32 1.0, %v7553_v10  ;;  %v5649_v18 = vunpack.i.h.bf16 %v8056_v34 }
 0x3a2   : > { %5481 = vmatpush3.bf16.xpose.msk.msra.mxu1 %vm8104_vm3, %v5479_v9  ;;  %v8211_v54 = vpop.permute.xlu1 %2979  ;;  %v3882_v37 = vsel %vm3870_vm1, %v9132_v49, %v5644_v60  ;;  %v3881_v50 = vsel %vm3870_vm1, %v9133_v3, %v5643_v6  ;;  %v9137_v6 = vld [vmem:[#allocation15_spill] sm:$0xff]  ;;  %v9140_v3 = vsub.f32 1.0, %v7575_v58 }
 0x3a3   : > { %v5672_v40 = vpop.permute.xlu0 %5671  ;;  %3303 = vperm.xlu1 %5613, %v7553_v10   ;;  %v5648_v10 = vunpack.i.l.bf16 %v8056_v34  ;;  %v9139_v34 = vsub.f32 1.0, %v9103_v7 }
 0x3a4   : > { %v5674_v5 = vunpack.i.h.bf16 %v5672_v40  ;;  %v5673_v51 = vunpack.i.l.bf16 %v5672_v40  ;;  %3298 = vperm.xlu0 %5614, %v7780_v43  }
 0x3a6   : > { %v3896_v22 = vsel %vm3870_vm1, %v9130_v57, %v5674_v5  ;;  %v3895_v20 = vsel %vm3870_vm1, %v9131_v42, %v5673_v51  ;;  %v8227_v24 = vpop.permute.xlu1 %5716  ;;  %v9135_v57 = vsub.f32 1.0, %v7780_v43 }
 0x3a7   : > { %v8229_v9 = vpop.permute.xlu0 %2904  ;;  %3313 = vperm.xlu1 %5613, %v7575_v58   ;;  %v5482_v40 = vpack.c.bf16 %v3896_v22, %v3895_v20 }
 0x3a8   : > { %3308 = vperm.xlu0 %5614, %v7807_v61  }
 0x3a9   : > { %5484 = vmatprep.subr.msk.bf16.mxu1 %vm8104_vm3, %v5482_v40  ;;  %v9136_v40 = vld [vmem:[#allocation12_spill] sm:$0xff] }
 0x3aa   : > { %5487 = vmatpush3.bf16.xpose.msk.msra.mxu1 %vm8104_vm3, %v5485_v15  ;;  %v8239_v0 = vpop.permute.xlu1 %2989  ;;  %v5491_v15 = vpack.c.bf16 %v3882_v37, %v3881_v50  ;;  %v3883_v37 = vsel %vm3870_vm1, %v9139_v34, %v5648_v10  ;;  %v5699_v34 = vunpack.i.h.bf16 %v8100_v45 }
 0x3ab   : > { %v5677_v5 = vpop.permute.xlu0 %5676  ;;  %3323 = vperm.xlu1 %5613, %v7598_v38  }
 0x3ac   : > { %v5679_v51 = vunpack.i.h.bf16 %v5677_v5  ;;  %v5678_v25 = vunpack.i.l.bf16 %v5677_v5  ;;  %3318 = vperm.xlu0 %5614, %v7831_v31  }
 0x3ae   : > { %v3898_v33 = vsel %vm3870_vm1, %v9134_v29, %v5679_v51  ;;  %v3897_v22 = vsel %vm3870_vm1, %v9135_v57, %v5678_v25  ;;  %v8255_v42 = vpop.permute.xlu1 %5721  ;;  %v9138_v25 = vsub.f32 1.0, %v9102_v17  ;;  %v9141_v29 = vsub.f32 1.0, %v7807_v61 }
 0x3af   : > { %v8257_v20 = vpop.permute.xlu0 %2914  ;;  %3333 = vperm.xlu1 %5613, %v9136_v40   ;;  %v5488_v35 = vpack.c.bf16 %v3898_v33, %v3897_v22 }
 0x3b0   : > { %3328 = vperm.xlu0 %5614, %v9059_v19   ;;  %v3884_v49 = vsel %vm3870_vm1, %v9138_v25, %v5649_v18  ;;  %v9142_v18 = vsub.f32 1.0, %v7598_v38  ;;  %v9144_v38 = vsub.f32 1.0, %v7439_v13  ;;  %v9148_v13 = vsub.f32 1.0, %v9059_v19 }
 0x3b1   : > { %5490 = vmatprep.subr.msk.bf16.mxu1 %vm8104_vm3, %v5488_v35  ;;  %v5497_v17 = vpack.c.bf16 %v3884_v49, %v3883_v37  ;;  %v5698_v37 = vunpack.i.l.bf16 %v8100_v45 }
 0x3b2   : > { %5493 = vmatpush3.bf16.xpose.msk.msra.mxu1 %vm8104_vm3, %v5491_v15  ;;  %v8267_v43 = vpop.permute.xlu1 %2999 }
 0x3b3   : > { %v5682_v60 = vpop.permute.xlu0 %5681  ;;  %3343 = vperm.xlu1 %5613, %v9137_v6  }
 0x3b4   : > { %v5684_v5 = vunpack.i.h.bf16 %v5682_v60  ;;  %v5683_v51 = vunpack.i.l.bf16 %v5682_v60  ;;  %3338 = vperm.xlu0 %5614, %v9060_v26   ;;  %v9143_v60 = vsub.f32 1.0, %v7831_v31 }
 0x3b6   : > { %v3900_v50 = vsel %vm3870_vm1, %v9140_v3, %v5684_v5  ;;  %v3899_v33 = vsel %vm3870_vm1, %v9141_v29, %v5683_v51  ;;  %v8283_v57 = vpop.permute.xlu1 %5726  ;;  %v9145_v29 = vsub.f32 1.0, %v7583_v16  ;;  %v9149_v16 = vsub.f32 1.0, %v7854_v28 }
 0x3b7   : > { %v5494_v22 = vpack.c.bf16 %v3900_v50, %v3899_v33  ;;  %v8285_v35 = vpop.permute.xlu0 %2924  ;;  %3353 = vperm.xlu1 %5613, %v7702_v53  }
 0x3b8   : > { %3348 = vperm.xlu0 %5614, %v7708_v56  }
 0x3b9   : > { %5496 = vmatprep.subr.msk.bf16.mxu1 %vm8104_vm3, %v5494_v22 }
 0x3ba   : > { %5499 = vmatpush3.bf16.xpose.msk.msra.mxu1 %vm8104_vm3, %v5497_v17  ;;  %v8293_v58 = vpop.permute.xlu1 %3009 }
 0x3bb   : > { %v5687_v61 = vpop.permute.xlu0 %5686  ;;  %3363 = vperm.xlu1 %5613, %v7737_v39  }
 0x3bc   : > { %v5689_v7 = vunpack.i.h.bf16 %v5687_v61  ;;  %v5688_v15 = vunpack.i.l.bf16 %v5687_v61  ;;  %3358 = vperm.xlu0 %5614, %v7740_v36  }
 0x3be   : > { %v3902_v10 = vsel %vm3870_vm1, %v9142_v18, %v5689_v7  ;;  %v3901_v5 = vsel %vm3870_vm1, %v9143_v60, %v5688_v15  ;;  %v8303_v51 = vpop.permute.xlu1 %3019  ;;  %v9146_v15 = vld [vmem:[#allocation17_spill] sm:$0xff]  ;;  %v9147_v18 = vsub.f32 1.0, %v9136_v40  ;;  %v3903_v60 = vsel %vm3870_vm1, %v9148_v13, %v5698_v37 }
 0x3bf   : > { %v5500_v25 = vpack.c.bf16 %v3902_v10, %v3901_v5  ;;  %v5692_v49 = vpop.permute.xlu0 %5691  ;;  %3373 = vperm.xlu1 %5613, %v7764_v1   ;;  %v5704_v37 = vunpack.i.h.bf16 %v8143_v48 }
 0x3c0   : > { %v5694_v3 = vunpack.i.h.bf16 %v5692_v49  ;;  %v5693_v50 = vunpack.i.l.bf16 %v5692_v49  ;;  %3368 = vperm.xlu0 %5614, %v7767_v63   ;;  %v3904_v10 = vsel %vm3870_vm1, %v9147_v18, %v5699_v34 }
 0x3c1   : > { %5502 = vmatprep.subr.msk.bf16.mxu1 %vm8104_vm3, %v5500_v25  ;;  %v9150_v25 = vsub.f32 1.0, %v7860_v30  ;;  %v5509_v34 = vpack.c.bf16 %v3904_v10, %v3903_v60  ;;  %v9154_v10 = vsub.f32 1.0, %v7893_v55 }
 0x3c2   : > { %v3886_v31 = vsel %vm3870_vm1, %v9144_v38, %v5694_v3  ;;  %v3885_v33 = vsel %vm3870_vm1, %v9145_v29, %v5693_v50  ;;  %v5732_v22 = vpop.permute.xlu1 %5731  ;;  %v5703_v50 = vunpack.i.l.bf16 %v8143_v48  ;;  %v9152_v48 = vsub.f32 1.0, %v9060_v26 }
 0x3c3   : > { %v5503_v17 = vpack.c.bf16 %v3886_v31, %v3885_v33  ;;  %v5734_v61 = vunpack.i.h.bf16 %v5732_v22  ;;  %v5733_v7 = vunpack.i.l.bf16 %v5732_v22  ;;  %v8317_v45 = vpop.permute.xlu0 %2934  ;;  %3383 = vperm.xlu1 %5613, %v9146_v15   ;;  %v9151_v22 = vsub.f32 1.0, %v9137_v6 }
 0x3c4   : > { %3378 = vperm.xlu0 %5614, %v7791_v8  }
 0x3c5   : > { %v3920_v5 = vsel %vm3870_vm1, %v9149_v16, %v5734_v61  ;;  %v3919_v49 = vsel %vm3870_vm1, %v9150_v25, %v5733_v7  ;;  %5505 = vmatpush3.bf16.xpose.msk.msra.mxu1 %vm8104_vm3, %v5503_v17  ;;  %v3906_v17 = vsel %vm3870_vm1, %v9151_v22, %v5704_v37  ;;  %v3905_v61 = vsel %vm3870_vm1, %v9152_v48, %v5703_v50 }
 0x3c6   : > { %v5506_v40 = vpack.c.bf16 %v3920_v5, %v3919_v49  ;;  %v8335_v3 = vpop.permute.xlu1 %3029  ;;  %v9153_v7 = vsub.f32 1.0, %v7887_v4  ;;  %v5515_v16 = vpack.c.bf16 %v3906_v17, %v3905_v61  ;;  %v5709_v5 = vunpack.i.h.bf16 %v8171_v23 }
 0x3c7   : > { %v8337_v19 = vpop.permute.xlu0 %2944  ;;  %3393 = vperm.xlu1 %5613, %v7812_v41   ;;  %v5708_v25 = vunpack.i.l.bf16 %v8171_v23  ;;  %v9156_v23 = vsub.f32 1.0, %v7708_v56  ;;  %v5714_v56 = vunpack.i.h.bf16 %v8199_v11 }
 0x3c8   : > { %5508 = vmatprep.subr.msk.bf16.mxu0 %vm8104_vm3, %v5506_v40  ;;  %3388 = vperm.xlu0 %5614, %v7815_v32  }
 0x3c9   : > { %5511 = vmatpush3.bf16.xpose.msk.msra.mxu0 %vm8104_vm3, %v5509_v34 }
 0x3ca   : > { %v5737_v38 = vpop.permute.xlu1 %5736 }
 0x3cb   : > { %v5739_v31 = vunpack.i.h.bf16 %v5737_v38  ;;  %v5738_v29 = vunpack.i.l.bf16 %v5737_v38  ;;  %v8347_v33 = vpop.permute.xlu0 %2954  ;;  %3403 = vperm.xlu1 %5613, %v7840_v21   ;;  %v3907_v38 = vsel %vm3870_vm1, %v9156_v23, %v5708_v25  ;;  %v9165_v23 = vld [vmem:[#allocation21_spill] sm:$0xff] }
 0x3cc   : > { %3398 = vperm.xlu0 %5614, %v7982_v14   ;;  %4967 = vmatmul.mubr.msk.f32.vlgmr.msra.gmra.mrb[128].mxu1 %vm3942_vm2, %v8124_v47 }
 0x3cd   : > { %v3922_v18 = vsel %vm3870_vm1, %v9153_v7, %v5739_v31  ;;  %v3921_v13 = vsel %vm3870_vm1, %v9154_v10, %v5738_v29  ;;  %v9158_v29 = vsub.f32 1.0, %v7921_v44 }
 0x3ce   : > { %v5512_v6 = vpack.c.bf16 %v3922_v18, %v3921_v13  ;;  %v8365_v60 = vpop.permute.xlu1 %3039  ;;  %v9159_v13 = vld [vmem:[#allocation18_spill] sm:$0xff] }
 0x3cf   : > { %v8367_v26 = vpop.permute.xlu0 %2964  ;;  %3413 = vperm.xlu1 %5613, %v7854_v28   ;;  %v9155_v28 = vsub.f32 1.0, %v7702_v53 }
 0x3d0   : > { %5514 = vmatprep.subr.msk.bf16.mxu0 %vm8104_vm3, %v5512_v6  ;;  %3408 = vperm.xlu0 %5614, %v7860_v30   ;;  %v9157_v30 = vsub.f32 1.0, %v7915_v2 }
 0x3d1   : > { %5517 = vmatpush3.bf16.xpose.msk.msra.mxu0 %vm8104_vm3, %v5515_v16  ;;  %v3908_v50 = vsel %vm3870_vm1, %v9155_v28, %v5709_v5  ;;  %v9162_v5 = vld [vmem:[#allocation19_spill] sm:$0xff] }
 0x3d2   : > { %v5742_v49 = vpop.permute.xlu1 %5741  ;;  %v5521_v53 = vpack.c.bf16 %v3908_v50, %v3907_v38  ;;  %v5718_v38 = vunpack.i.l.bf16 %v8227_v24 }
 0x3d3   : > { %v5744_v40 = vunpack.i.h.bf16 %v5742_v49  ;;  %v5743_v34 = vunpack.i.l.bf16 %v5742_v49  ;;  %v8377_v37 = vpop.permute.xlu0 %2974  ;;  %3423 = vperm.xlu1 %5613, %v7887_v4   ;;  %v9164_v49 = vsub.f32 1.0, %v9162_v5 }
 0x3d4   : > { %3418 = vperm.xlu0 %5614, %v7893_v55   ;;  %v5713_v55 = vunpack.i.l.bf16 %v8199_v11  ;;  %v9161_v11 = vsub.f32 1.0, %v7740_v36  ;;  %v5719_v36 = vunpack.i.h.bf16 %v8227_v24  ;;  %v9169_v24 = vsub.f32 1.0, %v7767_v63 }
 0x3d5   : > { %v3924_v31 = vsel %vm3870_vm1, %v9157_v30, %v5744_v40  ;;  %v3923_v22 = vsel %vm3870_vm1, %v9158_v29, %v5743_v34  ;;  %v9166_v30 = vld [vmem:[#allocation22_spill] sm:$0xff]  ;;  %v5724_v63 = vunpack.i.h.bf16 %v8255_v42 }
 0x3d6   : > { %v5518_v17 = vpack.c.bf16 %v3924_v31, %v3923_v22  ;;  %v8393_v4 = vpop.permute.xlu1 %3049  ;;  %v3909_v16 = vsel %vm3870_vm1, %v9161_v11, %v5713_v55 }
 0x3d7   : > { %v8395_v48 = vpop.permute.xlu0 %2984  ;;  %3433 = vperm.xlu1 %5613, %v7915_v2   ;;  %v9160_v2 = vsub.f32 1.0, %v7737_v39 }
 0x3d8   : > { %5520 = vmatprep.subr.msk.bf16.mxu0 %vm8104_vm3, %v5518_v17  ;;  %3428 = vperm.xlu0 %5614, %v7921_v44   ;;  %v9163_v44 = vsub.f32 1.0, %v9159_v13 }
 0x3d9   : > { %5523 = vmatpush3.bf16.xpose.msk.msra.mxu0 %vm8104_vm3, %v5521_v53  ;;  %v3910_v6 = vsel %vm3870_vm1, %v9160_v2, %v5714_v56  ;;  %v9167_v53 = vld [vmem:[#allocation13_spill] sm:$0xff]  ;;  %v9168_v56 = vsub.f32 1.0, %v7764_v1  ;;  %v9172_v2 = vsub.f32 1.0, %v9166_v30 }
 0x3da   : > { %v5747_v61 = vpop.permute.xlu1 %5746  ;;  %v5527_v39 = vpack.c.bf16 %v3910_v6, %v3909_v16 }
 0x3db   : > { %v5749_v7 = vunpack.i.h.bf16 %v5747_v61  ;;  %v5748_v18 = vunpack.i.l.bf16 %v5747_v61  ;;  %v8405_v10 = vpop.permute.xlu0 %2994  ;;  %3443 = vperm.xlu1 %5613, %v9159_v13   ;;  %v3912_v55 = vsel %vm3870_vm1, %v9168_v56, %v5719_v36  ;;  %v3911_v61 = vsel %vm3870_vm1, %v9169_v24, %v5718_v38 }
 0x3dc   : > { %3438 = vperm.xlu0 %5614, %v9162_v5   ;;  %v5533_v1 = vpack.c.bf16 %v3912_v55, %v3911_v61  ;;  %v9179_v55 = vsub.f32 1.0, %v9167_v53 }
 0x3dd   : > { %v3926_v25 = vsel %vm3870_vm1, %v9163_v44, %v5749_v7  ;;  %v3925_v40 = vsel %vm3870_vm1, %v9164_v49, %v5748_v18  ;;  %v9170_v7 = vld [vmem:[#allocation16_spill] sm:$0xff]  ;;  %v9171_v18 = vsub.f32 1.0, %v9165_v23  ;;  %v9173_v44 = vld [vmem:[#allocation43_spill] sm:$0xff] }
 0x3de   : > { %v5524_v34 = vpack.c.bf16 %v3926_v25, %v3925_v40  ;;  %v8421_v28 = vpop.permute.xlu1 %3059  ;;  %v5723_v25 = vunpack.i.l.bf16 %v8255_v42  ;;  %v9174_v49 = vld [vmem:[#allocation44_spill] sm:$0xff]  ;;  %v9177_v42 = vsub.f32 1.0, %v9146_v15  ;;  %v9180_v61 = vsub.f32 1.0, %v9170_v7 }
 0x3df   : > { %v8423_v50 = vpop.permute.xlu0 %3004  ;;  %3453 = vperm.xlu1 %5613, %v9165_v23   ;;  %v9175_v40 = vld [vmem:[#allocation48_spill] sm:$0xff]  ;;  %v9176_v23 = vld [vmem:[#allocation49_spill] sm:$0xff] }
 0x3e0   : > { %5526 = vmatprep.subr.msk.bf16.mxu0 %vm8104_vm3, %v5524_v34  ;;  %3448 = vperm.xlu0 %5614, %v9166_v30   ;;  %v2781_v34 = vsub.f32 1.0, %v9175_v40  ;;  %v2780_v36 = vsub.f32 1.0, %v9176_v23 }
 0x3e1   : > { %5529 = vmatpush3.bf16.xpose.msk.msra.mxu0 %vm8104_vm3, %v5527_v39 }
 0x3e2   : > { %v5752_v31 = vpop.permute.xlu1 %5751 }
 0x3e3   : > { %v5754_v29 = vunpack.i.h.bf16 %v5752_v31  ;;  %v5753_v22 = vunpack.i.l.bf16 %v5752_v31  ;;  %v8433_v17 = vpop.permute.xlu0 %3014  ;;  %3463 = vperm.xlu1 %5613, %v9167_v53  }
 0x3e4   : > { %3458 = vperm.xlu0 %5614, %v9170_v7  }
 0x3e5   : > { %v3928_v13 = vsel %vm3870_vm1, %v9171_v18, %v5754_v29  ;;  %v3927_v6 = vsel %vm3870_vm1, %v9172_v2, %v5753_v22  ;;  %v3914_v29 = vsel %vm3870_vm1, %v9177_v42, %v5724_v63  ;;  %v9178_v22 = vsub.f32 1.0, %v7791_v8 }
 0x3e6   : > { %v5530_v11 = vpack.c.bf16 %v3928_v13, %v3927_v6  ;;  %v8449_v16 = vpop.permute.xlu1 %3069  ;;  %v5729_v8 = vunpack.i.h.bf16 %v8283_v57 }
 0x3e7   : > { %v8451_v5 = vpop.permute.xlu0 %3024  ;;  %3473 = vperm.xlu1 %5613, %v9173_v44   ;;  %v3913_v56 = vsel %vm3870_vm1, %v9178_v22, %v5723_v25  ;;  %v9181_v25 = vsub.f32 1.0, %v7812_v41 }
 0x3e8   : > { %5532 = vmatprep.subr.msk.bf16.mxu0 %vm8104_vm3, %v5530_v11  ;;  %3468 = vperm.xlu0 %5614, %v9174_v49   ;;  %v5539_v6 = vpack.c.bf16 %v3914_v29, %v3913_v56  ;;  %v5728_v11 = vunpack.i.l.bf16 %v8283_v57 }
 0x3e9   : > { %5535 = vmatpush3.bf16.xpose.msk.msra.mxu0 %vm8104_vm3, %v5533_v1 }
 0x3ea   : > { %v5757_v39 = vpop.permute.xlu1 %5756 }
 0x3eb   : > { %v5759_v38 = vunpack.i.h.bf16 %v5757_v39  ;;  %v5758_v30 = vunpack.i.l.bf16 %v5757_v39  ;;  %v8463_v31 = vpop.permute.xlu0 %3034  ;;  %3099 = vperm.xlu1 %5613, %v2781_v34   ;;  %v9182_v39 = vsub.f32 1.0, %v7815_v32 }
 0x3ec   : > { %3094 = vperm.xlu0 %5614, %v2780_v36  }
 0x3ed   : > { %v3930_v24 = vsel %vm3870_vm1, %v9179_v55, %v5759_v38  ;;  %v3929_v18 = vsel %vm3870_vm1, %v9180_v61, %v5758_v30  ;;  %v3915_v57 = vsel %vm3870_vm1, %v9182_v39, %v5728_v11  ;;  %v9183_v38 = vsub.f32 1.0, %v9173_v44  ;;  %v9187_v39 = vld [vmem:[#allocation20_spill] sm:$0xff] }
 0x3ee   : > { %v5536_v13 = vpack.c.bf16 %v3930_v24, %v3929_v18  ;;  %v8477_v2 = vpop.permute.xlu1 %3079  ;;  %v9184_v30 = vsub.f32 1.0, %v9174_v49 }
 0x3ef   : > { %v8479_v15 = vpop.permute.xlu0 %3044  ;;  %3483 = vperm.xlu1 %5613, %v9175_v40   ;;  %v3916_v40 = vsel %vm3870_vm1, %v9181_v25, %v5729_v8 }
 0x3f0   : > { %5538 = vmatprep.subr.msk.bf16.mxu0 %vm8104_vm3, %v5536_v13  ;;  %3478 = vperm.xlu0 %5614, %v9176_v23   ;;  %v5545_v56 = vpack.c.bf16 %v3916_v40, %v3915_v57  ;;  %v6308_v40 = vld [vmem:[%s6695_s28 + $0xb0] sm:$0xff] }
 0x3f1   : > { %5541 = vmatpush3.bf16.xpose.msk.msra.mxu0 %vm8104_vm3, %v5539_v6  ;;  %v3113_v57 = vmul.f32 %v6308_v40, %v9187_v39  ;;  %v6316_v39 = vld [vmem:[%s6695_s28 + $0xf0] sm:$0xff] }
 0x3f2   : > { %v5762_v53 = vpop.permute.xlu1 %5761 }
 0x3f3   : > { %v5764_v7 = vunpack.i.h.bf16 %v5762_v53  ;;  %v5763_v1 = vunpack.i.l.bf16 %v5762_v53  ;;  %v8489_v63 = vpop.permute.xlu0 %3054  ;;  %v9185_v53 = vsub.f32 1.0, %v7840_v21  ;;  %v9188_v21 = vld [vmem:[#allocation47_spill] sm:$0xff] }
 0x3f5   : > { %v3932_v23 = vsel %vm3870_vm1, %v9183_v38, %v5764_v7  ;;  %v3931_v42 = vsel %vm3870_vm1, %v9184_v30, %v5763_v1  ;;  %v9186_v1 = vsub.f32 1.0, %v7982_v14  ;;  %v6309_v38 = vld [vmem:[%s6695_s28 + $0xb8] sm:$0xff]  ;;  %v6311_v14 = vld [vmem:[%s6695_s28 + $0xa8] sm:$0xff] }
 0x3f6   : > { %v5542_v29 = vpack.c.bf16 %v3932_v23, %v3931_v42  ;;  %v8503_v22 = vpop.permute.xlu1 %3089  ;;  %v6310_v42 = vld [vmem:[%s6695_s28 + $0xa0] sm:$0xff] }
 0x3f7   : > { %v8505_v55 = vpop.permute.xlu0 %3064 }
 0x3f8   : > { %5544 = vmatprep.subr.msk.bf16.mxu0 %vm8104_vm3, %v5542_v29  ;;  %v3112_v29 = vmul.f32 %v6310_v42, %v9188_v21  ;;  %v6318_v21 = vld [vmem:[%s6695_s28 + $0xe0] sm:$0xff] }
 0x3f9   : > { %5547 = vmatpush3.bf16.xpose.msk.msra.mxu0 %vm8104_vm3, %v5545_v56 }
 0x3fa   : > { %v5767_v41 = vpop.permute.xlu1 %5766 }
 0x3fb   : > { %v5769_v32 = vunpack.i.h.bf16 %v5767_v41  ;;  %v5768_v44 = vunpack.i.l.bf16 %v5767_v41  ;;  %v8511_v49 = vpop.permute.xlu0 %3074 }
 0x3fd   : > { %v3934_v24 = vsel %vm3870_vm1, %v2781_v34, %v5769_v32  ;;  %v3933_v61 = vsel %vm3870_vm1, %v2780_v36, %v5768_v44 }
 0x3fe   : > { %v5548_v18 = vpack.c.bf16 %v3934_v24, %v3933_v61  ;;  %v5772_v13 = vpop.permute.xlu1 %5771  ;;  %v6312_v24 = vld [vmem:[%s6695_s28 + $0xd0] sm:$0xff] }
 0x3ff   : > { %v5774_v6 = vunpack.i.h.bf16 %v5772_v13  ;;  %v5773_v8 = vunpack.i.l.bf16 %v5772_v13  ;;  %v8515_v11 = vpop.permute.xlu0 %3084  ;;  %v9189_v61 = vld [vmem:[#allocation23_spill] sm:$0xff]  ;;  %v6313_v13 = vld [vmem:[%s6695_s28 + $0xd8] sm:$0xff] }
 0x400   : > { %5550 = vmatprep.subr.msk.bf16.mxu0 %vm8104_vm3, %v5548_v18  ;;  %v3115_v18 = vmul.f32 %v6312_v24, %v9189_v61  ;;  %v6320_v61 = vld [vmem:[%s6695_s28 + $0x110] sm:$0xff] }
 0x401   : > { %v3918_v7 = vsel %vm3870_vm1, %v9185_v53, %v5774_v6  ;;  %v3917_v34 = vsel %vm3870_vm1, %v9186_v1, %v5773_v8  ;;  %v6314_v53 = vld [vmem:[%s6695_s28 + $0xc0] sm:$0xff] }
 0x402   : > { %v5551_v36 = vpack.c.bf16 %v3918_v7, %v3917_v34  ;;  %v3224_v25 = vpop.permute.xlu1 %3223  ;;  %v9190_v7 = vld [vmem:[#allocation52_spill] sm:$0xff] }
 0x403   : > { %v3497_v23 = vmul.f32 %v6309_v38, %v3224_v25  ;;  %v3219_v30 = vpop.permute.xlu0 %3218  ;;  %v3114_v1 = vmul.f32 %v6314_v53, %v9190_v7  ;;  %v6322_v53 = vld [vmem:[%s6695_s28 + $0x100] sm:$0xff]  ;;  %v9194_v7 = vld [vmem:[#allocation35_spill] sm:$0xff] }
 0x404   : > { %v3496_v56 = vmul.f32 %v6311_v14, %v3219_v30  ;;  %5553 = vmatpush3.bf16.xpose.msk.msra.mxu0 %vm8104_vm3, %v5551_v36 }
 0x405   : > { %v3561_v41 = vadd.f32 %v3497_v23, %v3113_v57  ;;  %v9191_v57 = vld [vmem:[#allocation24_spill] sm:$0xff] }
 0x406   : > { %v3560_v32 = vadd.f32 %v3496_v56, %v3112_v29  ;;  %v3234_v44 = vpop.permute.xlu1 %3233  ;;  %v3117_v38 = vmul.f32 %v6316_v39, %v9191_v57  ;;  %v6317_v23 = vld [vmem:[%s6695_s28 + $0xf8] sm:$0xff]  ;;  %v9192_v29 = vld [vmem:[#allocation54_spill] sm:$0xff]  ;;  %v6324_v39 = vld [vmem:[%s6695_s28 + $0x130] sm:$0xff] }
 0x407   : > { %3625 = vst [vmem:[%s7869_s12 + $0x58] sm:$0xff] %v3561_v41  ;;  %v3499_v6 = vmul.f32 %v6313_v13, %v3234_v44  ;;  %v3229_v8 = vpop.permute.xlu0 %3228  ;;  %v3116_v14 = vmul.f32 %v6318_v21, %v9192_v29  ;;  %v6319_v56 = vld [vmem:[%s6695_s28 + $0xe8] sm:$0xff]  ;;  %v6326_v21 = vld [vmem:[%s6695_s28 + $0x120] sm:$0xff] }
 0x408   : > { %3624 = vst [vmem:[%s7869_s12 + $0x50] sm:$0xff] %v3560_v32  ;;  %v3498_v34 = vmul.f32 %v6315_v27, %v3229_v8  ;;  %v6323_v27 = vld [vmem:[%s6695_s28 + $0x108] sm:$0xff]  ;;  %v3120_v29 = vmul.f32 %v6326_v21, %v8145_v52 }
 0x409   : > { %v3563_v36 = vadd.f32 %v3499_v6, %v3115_v18  ;;  %v9193_v18 = vld [vmem:[#allocation41_spill] sm:$0xff]  ;;  %v6321_v6 = vld [vmem:[%s6695_s28 + $0x118] sm:$0xff]  ;;  %v9195_v57 = vld [vmem:[#allocation42_spill] sm:$0xff] }
 0x40a   : > { %v3562_v25 = vadd.f32 %v3498_v34, %v3114_v1  ;;  %v3244_v40 = vpop.permute.xlu1 %3243  ;;  %v3119_v13 = vmul.f32 %v6320_v61, %v9193_v18  ;;  %v3118_v1 = vmul.f32 %v6322_v53, %v9194_v7  ;;  %v9196_v61 = vld [vmem:[#allocation45_spill] sm:$0xff]  ;;  %v6331_v53 = vld [vmem:[%s6695_s28 + $0x148] sm:$0xff] }
 0x40b   : > { %3627 = vst [vmem:[%s7869_s12 + $0x68] sm:$0xff] %v3563_v36  ;;  %v3501_v30 = vmul.f32 %v6317_v23, %v3244_v40  ;;  %v3239_v42 = vpop.permute.xlu0 %3238  ;;  %5001 = vmatmul.mubr.msk.f32.vlgmr.msra.gmra.mrb[128].mxu0 %vm3942_vm2, %v8124_v47  ;;  %v6325_v23 = vld [vmem:[%s6695_s28 + $0x138] sm:$0xff] }
 0x40c   : > { %3626 = vst [vmem:[%s7869_s12 + $0x60] sm:$0xff] %v3562_v25  ;;  %v3500_v41 = vmul.f32 %v6319_v56, %v3239_v42 }
 0x40d   : > { %v3565_v32 = vadd.f32 %v3501_v30, %v3117_v38  ;;  %v3121_v38 = vmul.f32 %v6324_v39, %v9195_v57  ;;  %v6333_v39 = vld [vmem:[%s6695_s28 + $0x178] sm:$0xff] }
 0x40e   : > { %v3564_v44 = vadd.f32 %v3500_v41, %v3116_v14  ;;  %v3254_v24 = vpop.permute.xlu1 %3253  ;;  %v6327_v14 = vld [vmem:[%s6695_s28 + $0x128] sm:$0xff] }
 0x40f   : > { %3629 = vst [vmem:[%s7869_s12 + $0x78] sm:$0xff] %v3565_v32  ;;  %v3503_v47 = vmul.f32 %v6321_v6, %v3254_v24  ;;  %v3249_v8 = vpop.permute.xlu0 %3248  ;;  %v6328_v24 = vld [vmem:[%s6695_s28 + $0x150] sm:$0xff] }
 0x410   : > { %3628 = vst [vmem:[%s7869_s12 + $0x70] sm:$0xff] %v3564_v44  ;;  %v3502_v34 = vmul.f32 %v6323_v27, %v3249_v8  ;;  %v3123_v18 = vmul.f32 %v6328_v24, %v9196_v61  ;;  %v6330_v8 = vld [vmem:[%s6695_s28 + $0x140] sm:$0xff] }
 0x411   : > { %v3567_v36 = vadd.f32 %v3503_v47, %v3119_v13  ;;  %v6329_v13 = vld [vmem:[%s6695_s28 + $0x158] sm:$0xff]  ;;  %v3122_v52 = vmul.f32 %v6330_v8, %v8173_v12 }
 0x412   : > { %v3566_v25 = vadd.f32 %v3502_v34, %v3118_v1  ;;  %v3264_v40 = vpop.permute.xlu1 %3263 }
 0x413   : > { %3631 = vst [vmem:[%s7869_s12 + $0x88] sm:$0xff] %v3567_v36  ;;  %v3505_v30 = vmul.f32 %v6325_v23, %v3264_v40  ;;  %v3259_v42 = vpop.permute.xlu0 %3258  ;;  %v6332_v36 = vld [vmem:[%s6695_s28 + $0x170] sm:$0xff]  ;;  %v6334_v23 = vld [vmem:[%s6695_s28 + $0x160] sm:$0xff] }
 0x414   : > { %3630 = vst [vmem:[%s7869_s12 + $0x80] sm:$0xff] %v3566_v25  ;;  %v3504_v56 = vmul.f32 %v6327_v14, %v3259_v42  ;;  %v9197_v25 = vld [vmem:[#allocation46_spill] sm:$0xff]  ;;  %v3124_v12 = vmul.f32 %v6334_v23, %v8201_v46 }
 0x415   : > { %v3569_v41 = vadd.f32 %v3505_v30, %v3121_v38  ;;  %v3125_v40 = vmul.f32 %v6332_v36, %v9197_v25  ;;  %v6335_v30 = vld [vmem:[%s6695_s28 + $0x168] sm:$0xff]  ;;  %v6342_v25 = vld [vmem:[%s6695_s28 + $0x1a0] sm:$0xff] }
 0x416   : > { %v3568_v32 = vadd.f32 %v3504_v56, %v3120_v29  ;;  %v3274_v44 = vpop.permute.xlu1 %3273  ;;  %v6336_v56 = vld [vmem:[%s6695_s28 + $0x190] sm:$0xff] }
 0x417   : > { %3633 = vst [vmem:[%s7869_s12 + $0x98] sm:$0xff] %v3569_v41  ;;  %v3507_v6 = vmul.f32 %v6329_v13, %v3274_v44  ;;  %v3269_v47 = vpop.permute.xlu0 %3268  ;;  %v9198_v41 = vld [vmem:[#allocation50_spill] sm:$0xff]  ;;  %v6337_v44 = vld [vmem:[%s6695_s28 + $0x198] sm:$0xff] }
 0x418   : > { %3632 = vst [vmem:[%s7869_s12 + $0x90] sm:$0xff] %v3568_v32  ;;  %v3506_v7 = vmul.f32 %v6331_v53, %v3269_v47  ;;  %v3127_v32 = vmul.f32 %v6336_v56, %v9198_v41  ;;  %v6339_v13 = vld [vmem:[%s6695_s28 + $0x188] sm:$0xff]  ;;  %v6340_v53 = vld [vmem:[%s6695_s28 + $0x1b0] sm:$0xff]  ;;  %v6346_v56 = vld [vmem:[%s6695_s28 + $0x1c0] sm:$0xff] }
 0x419   : > { %v3571_v1 = vadd.f32 %v3507_v6, %v3123_v18  ;;  %v6338_v18 = vld [vmem:[%s6695_s28 + $0x180] sm:$0xff]  ;;  %v6347_v41 = vld [vmem:[%s6695_s28 + $0x1c8] sm:$0xff] }
 0x41a   : > { %v3570_v27 = vadd.f32 %v3506_v7, %v3122_v52  ;;  %v3284_v34 = vpop.permute.xlu1 %3283  ;;  %v3126_v46 = vmul.f32 %v6338_v18, %v8229_v9  ;;  %v9199_v7 = vld [vmem:[#allocation51_spill] sm:$0xff]  ;;  %v3128_v9 = vmul.f32 %v6342_v25, %v8257_v20  ;;  %v3130_v20 = vmul.f32 %v6346_v56, %v8285_v35  ;;  %v9202_v25 = vld [vmem:[#allocation25_spill] sm:$0xff]  ;;  %v6357_v56 = vld [vmem:[%s6695_s28 + $0x238] sm:$0xff] }
 0x41b   : > { %3635 = vst [vmem:[%s7869_s12 + $0xa8] sm:$0xff] %v3571_v1  ;;  %v3509_v57 = vmul.f32 %v6333_v39, %v3284_v34  ;;  %v3279_v38 = vpop.permute.xlu0 %3278  ;;  %v3129_v1 = vmul.f32 %v6340_v53, %v9199_v7  ;;  %v6348_v18 = vld [vmem:[%s6695_s28 + $0x1f0] sm:$0xff]  ;;  %v6351_v53 = vld [vmem:[%s6695_s28 + $0x1e8] sm:$0xff] }
 0x41c   : > { %3634 = vst [vmem:[%s7869_s12 + $0xa0] sm:$0xff] %v3570_v27  ;;  %v3508_v42 = vmul.f32 %v6335_v30, %v3279_v38  ;;  %v6341_v27 = vld [vmem:[%s6695_s28 + $0x1b8] sm:$0xff]  ;;  %v9200_v30 = vld [vmem:[#allocation53_spill] sm:$0xff] }
 0x41d   : > { %v3573_v21 = vadd.f32 %v3509_v57, %v3125_v40  ;;  %v6343_v40 = vld [vmem:[%s6695_s28 + $0x1a8] sm:$0xff] }
 0x41e   : > { %v3572_v29 = vadd.f32 %v3508_v42, %v3124_v12  ;;  %v3294_v14 = vpop.permute.xlu1 %3293  ;;  %v6344_v12 = vld [vmem:[%s6695_s28 + $0x1d0] sm:$0xff] }
 0x41f   : > { %3637 = vst [vmem:[%s7869_s12 + $0xb8] sm:$0xff] %v3573_v21  ;;  %v3511_v24 = vmul.f32 %v6337_v44, %v3294_v14  ;;  %v3289_v61 = vpop.permute.xlu0 %3288  ;;  %v3131_v42 = vmul.f32 %v6344_v12, %v9200_v30  ;;  %v6345_v21 = vld [vmem:[%s6695_s28 + $0x1d8] sm:$0xff] }
 0x420   : > { %3636 = vst [vmem:[%s7869_s12 + $0xb0] sm:$0xff] %v3572_v29  ;;  %v3510_v6 = vmul.f32 %v6339_v13, %v3289_v61 }
 0x421   : > { %v3575_v47 = vadd.f32 %v3511_v24, %v3127_v32 }
 0x422   : > { %v3574_v8 = vadd.f32 %v3510_v6, %v3126_v46  ;;  %v3304_v52 = vpop.permute.xlu1 %3303  ;;  %v9201_v46 = vld [vmem:[#allocation55_spill] sm:$0xff]  ;;  %v6349_v6 = vld [vmem:[%s6695_s28 + $0x1f8] sm:$0xff] }
 0x423   : > { %3639 = vst [vmem:[%s7869_s12 + $0xc8] sm:$0xff] %v3575_v47  ;;  %v3513_v34 = vmul.f32 %v6341_v27, %v3304_v52  ;;  %v3299_v36 = vpop.permute.xlu0 %3298  ;;  %v3133_v13 = vmul.f32 %v6348_v18, %v9201_v46  ;;  %v6350_v52 = vld [vmem:[%s6695_s28 + $0x1e0] sm:$0xff] }
 0x424   : > { %3638 = vst [vmem:[%s7869_s12 + $0xc0] sm:$0xff] %v3574_v8  ;;  %v3512_v39 = vmul.f32 %v6343_v40, %v3299_v36  ;;  %v3132_v35 = vmul.f32 %v6350_v52, %v8317_v45  ;;  %v6352_v36 = vld [vmem:[%s6695_s28 + $0x210] sm:$0xff]  ;;  %v6353_v40 = vld [vmem:[%s6695_s28 + $0x218] sm:$0xff]  ;;  %v6362_v52 = vld [vmem:[%s6695_s28 + $0x240] sm:$0xff] }
 0x425   : > { %v3577_v57 = vadd.f32 %v3513_v34, %v3129_v1 }
 0x426   : > { %v3576_v38 = vadd.f32 %v3512_v39, %v3128_v9  ;;  %v3314_v23 = vpop.permute.xlu1 %3313  ;;  %v3135_v9 = vmul.f32 %v6352_v36, %v9202_v25  ;;  %v6365_v36 = vld [vmem:[%s6695_s28 + $0x278] sm:$0xff] }
 0x427   : > { %3641 = vst [vmem:[%s7869_s12 + $0xd8] sm:$0xff] %v3577_v57  ;;  %v3515_v29 = vmul.f32 %v6345_v21, %v3314_v23  ;;  %v3309_v14 = vpop.permute.xlu0 %3308  ;;  %v6355_v23 = vld [vmem:[%s6695_s28 + $0x208] sm:$0xff] }
 0x428   : > { %3640 = vst [vmem:[%s7869_s12 + $0xd0] sm:$0xff] %v3576_v38  ;;  %v3514_v32 = vmul.f32 %v6347_v41, %v3309_v14  ;;  %v6354_v38 = vld [vmem:[%s6695_s28 + $0x200] sm:$0xff] }
 0x429   : > { %v3579_v44 = vadd.f32 %v3515_v29, %v3131_v42  ;;  %v3134_v45 = vmul.f32 %v6354_v38, %v8337_v19  ;;  %v6356_v29 = vld [vmem:[%s6695_s28 + $0x230] sm:$0xff] }
 0x42a   : > { %v3578_v24 = vadd.f32 %v3514_v32, %v3130_v20  ;;  %v3324_v61 = vpop.permute.xlu1 %3323  ;;  %v3137_v14 = vmul.f32 %v6356_v29, %v8155_v62  ;;  %v6358_v32 = vld [vmem:[%s6695_s28 + $0x220] sm:$0xff] }
 0x42b   : > { %3643 = vst [vmem:[%s7869_s12 + $0xe8] sm:$0xff] %v3579_v44  ;;  %v3517_v47 = vmul.f32 %v6349_v6, %v3324_v61  ;;  %v3319_v8 = vpop.permute.xlu0 %3318  ;;  %v3136_v19 = vmul.f32 %v6358_v32, %v8347_v33  ;;  %v6359_v44 = vld [vmem:[%s6695_s28 + $0x228] sm:$0xff]  ;;  %v6361_v6 = vld [vmem:[%s6695_s28 + $0x258] sm:$0xff]  ;;  %v3138_v33 = vmul.f32 %v6362_v52, %v8367_v26  ;;  %v6370_v29 = vld [vmem:[%s6695_s28 + $0x280] sm:$0xff] }
 0x42c   : > { %3642 = vst [vmem:[%s7869_s12 + $0xe0] sm:$0xff] %v3578_v24  ;;  %v3516_v7 = vmul.f32 %v6351_v53, %v3319_v8  ;;  %v6377_v52 = vld [vmem:[%s6695_s28 + $0x2d8] sm:$0xff] }
 0x42d   : > { %v3581_v1 = vadd.f32 %v3517_v47, %v3133_v13  ;;  %v6360_v13 = vld [vmem:[%s6695_s28 + $0x250] sm:$0xff] }
 0x42e   : > { %v3580_v27 = vadd.f32 %v3516_v7, %v3132_v35  ;;  %v3334_v34 = vpop.permute.xlu1 %3333  ;;  %v3139_v62 = vmul.f32 %v6360_v13, %v8183_v59  ;;  %v6363_v35 = vld [vmem:[%s6695_s28 + $0x248] sm:$0xff] }
 0x42f   : > { %3645 = vst [vmem:[%s7869_s12 + $0xf8] sm:$0xff] %v3581_v1  ;;  %v3519_v39 = vmul.f32 %v6353_v40, %v3334_v34  ;;  %v3329_v57 = vpop.permute.xlu0 %3328  ;;  %v6364_v34 = vld [vmem:[%s6695_s28 + $0x270] sm:$0xff]  ;;  %v6366_v40 = vld [vmem:[%s6695_s28 + $0x260] sm:$0xff] }
 0x430   : > { %3644 = vst [vmem:[%s7869_s12 + $0xf0] sm:$0xff] %v3580_v27  ;;  %v3518_v12 = vmul.f32 %v6355_v23, %v3329_v57  ;;  %v3141_v59 = vmul.f32 %v6364_v34, %v8211_v54  ;;  %v3140_v26 = vmul.f32 %v6366_v40, %v8377_v37  ;;  %v3142_v37 = vmul.f32 %v6370_v29, %v8395_v48  ;;  %v6387_v29 = vld [vmem:[%s6695_s28 + $0x308] sm:$0xff] }
 0x431   : > { %v3583_v30 = vadd.f32 %v3519_v39, %v3135_v9  ;;  %v6367_v39 = vld [vmem:[%s6695_s28 + $0x268] sm:$0xff] }
 0x432   : > { %v3582_v42 = vadd.f32 %v3518_v12, %v3134_v45  ;;  %v3344_v21 = vpop.permute.xlu1 %3343  ;;  %v6368_v12 = vld [vmem:[%s6695_s28 + $0x290] sm:$0xff] }
 0x433   : > { %3647 = vst [vmem:[%s7869_s12 + $0x108] sm:$0xff] %v3583_v30  ;;  %v3521_v20 = vmul.f32 %v6357_v56, %v3344_v21  ;;  %v3339_v41 = vpop.permute.xlu0 %3338  ;;  %v3143_v54 = vmul.f32 %v6368_v12, %v8239_v0  ;;  %v6369_v30 = vld [vmem:[%s6695_s28 + $0x298] sm:$0xff]  ;;  %v6384_v12 = vld [vmem:[%s6695_s28 + $0x310] sm:$0xff] }
 0x434   : > { %3646 = vst [vmem:[%s7869_s12 + $0x100] sm:$0xff] %v3582_v42  ;;  %v3520_v24 = vmul.f32 %v6359_v44, %v3339_v41  ;;  %v6373_v44 = vld [vmem:[%s6695_s28 + $0x2b8] sm:$0xff] }
 0x435   : > { %v3585_v61 = vadd.f32 %v3521_v20, %v3137_v14  ;;  %v6371_v14 = vld [vmem:[%s6695_s28 + $0x288] sm:$0xff] }
 0x436   : > { %v3584_v18 = vadd.f32 %v3520_v24, %v3136_v19  ;;  %v3354_v46 = vpop.permute.xlu1 %3353  ;;  %v6372_v19 = vld [vmem:[%s6695_s28 + $0x2b0] sm:$0xff] }
 0x437   : > { %3649 = vst [vmem:[%s7869_s12 + $0x118] sm:$0xff] %v3585_v61  ;;  %v3523_v47 = vmul.f32 %v6361_v6, %v3354_v46  ;;  %v3349_v8 = vpop.permute.xlu0 %3348  ;;  %v3145_v0 = vmul.f32 %v6372_v19, %v8267_v43  ;;  %v6375_v46 = vld [vmem:[%s6695_s28 + $0x2a8] sm:$0xff] }
 0x438   : > { %3648 = vst [vmem:[%s7869_s12 + $0x110] sm:$0xff] %v3584_v18  ;;  %v3522_v53 = vmul.f32 %v6363_v35, %v3349_v8  ;;  %v6374_v18 = vld [vmem:[%s6695_s28 + $0x2a0] sm:$0xff]  ;;  %v6376_v8 = vld [vmem:[%s6695_s28 + $0x2d0] sm:$0xff] }
 0x439   : > { %v3587_v7 = vadd.f32 %v3523_v47, %v3139_v62  ;;  %v3144_v48 = vmul.f32 %v6374_v18, %v8405_v10  ;;  %v3147_v43 = vmul.f32 %v6376_v8, %v8293_v58  ;;  %v6394_v8 = vld [vmem:[%s6695_s28 + $0x340] sm:$0xff] }
 0x43a   : > { %v3586_v1 = vadd.f32 %v3522_v53, %v3138_v33  ;;  %v3364_v27 = vpop.permute.xlu1 %3363  ;;  %v6378_v53 = vld [vmem:[%s6695_s28 + $0x2c0] sm:$0xff] }
 0x43b   : > { %3651 = vst [vmem:[%s7869_s12 + $0x128] sm:$0xff] %v3587_v7  ;;  %v3525_v25 = vmul.f32 %v6365_v36, %v3364_v27  ;;  %v3359_v9 = vpop.permute.xlu0 %3358  ;;  %v3146_v10 = vmul.f32 %v6378_v53, %v8423_v50  ;;  %v6379_v7 = vld [vmem:[%s6695_s28 + $0x2c8] sm:$0xff]  ;;  %v6380_v36 = vld [vmem:[%s6695_s28 + $0x2f0] sm:$0xff] }
 0x43c   : > { %3650 = vst [vmem:[%s7869_s12 + $0x120] sm:$0xff] %v3586_v1  ;;  %v3524_v57 = vmul.f32 %v6367_v39, %v3359_v9  ;;  %v3149_v58 = vmul.f32 %v6380_v36, %v8303_v51  ;;  %v6383_v39 = vld [vmem:[%s6695_s28 + $0x2e8] sm:$0xff]  ;;  %v3151_v51 = vmul.f32 %v6384_v12, %v8335_v3 }
 0x43d   : > { %v3589_v38 = vadd.f32 %v3525_v25, %v3141_v59  ;;  %v6381_v25 = vld [vmem:[%s6695_s28 + $0x2f8] sm:$0xff] }
 0x43e   : > { %v3588_v45 = vadd.f32 %v3524_v57, %v3140_v26  ;;  %v3374_v23 = vpop.permute.xlu1 %3373  ;;  %v6382_v26 = vld [vmem:[%s6695_s28 + $0x2e0] sm:$0xff] }
 0x43f   : > { %3653 = vst [vmem:[%s7869_s12 + $0x138] sm:$0xff] %v3589_v38  ;;  %v3527_v42 = vmul.f32 %v6369_v30, %v3374_v23  ;;  %v3369_v21 = vpop.permute.xlu0 %3368  ;;  %v3148_v50 = vmul.f32 %v6382_v26, %v8433_v17  ;;  %v6401_v26 = vld [vmem:[%s6695_s28 + $0x398] sm:$0xff] }
 0x440   : > { %3652 = vst [vmem:[%s7869_s12 + $0x130] sm:$0xff] %v3588_v45  ;;  %v3526_v56 = vmul.f32 %v6371_v14, %v3369_v21  ;;  %v6386_v21 = vld [vmem:[%s6695_s28 + $0x300] sm:$0xff] }
 0x441   : > { %v3591_v20 = vadd.f32 %v3527_v42, %v3143_v54  ;;  %v6385_v54 = vld [vmem:[%s6695_s28 + $0x318] sm:$0xff]  ;;  %v3150_v17 = vmul.f32 %v6386_v21, %v8451_v5 }
 0x442   : > { %v3590_v41 = vadd.f32 %v3526_v56, %v3142_v37  ;;  %v3384_v32 = vpop.permute.xlu1 %3383 }
 0x443   : > { %3655 = vst [vmem:[%s7869_s12 + $0x148] sm:$0xff] %v3591_v20  ;;  %v3529_v24 = vmul.f32 %v6373_v44, %v3384_v32  ;;  %v3379_v61 = vpop.permute.xlu0 %3378  ;;  %v6389_v32 = vld [vmem:[%s6695_s28 + $0x338] sm:$0xff]  ;;  %v6390_v44 = vld [vmem:[%s6695_s28 + $0x320] sm:$0xff] }
 0x444   : > { %3654 = vst [vmem:[%s7869_s12 + $0x140] sm:$0xff] %v3590_v41  ;;  %v3528_v13 = vmul.f32 %v6375_v46, %v3379_v61  ;;  %v6388_v41 = vld [vmem:[%s6695_s28 + $0x330] sm:$0xff]  ;;  %v3152_v5 = vmul.f32 %v6390_v44, %v8463_v31  ;;  %v3154_v31 = vmul.f32 %v6394_v8, %v8479_v15  ;;  %v6411_v44 = vld [vmem:[%s6695_s28 + $0x3c8] sm:$0xff] }
 0x445   : > { %v3593_v62 = vadd.f32 %v3529_v24, %v3145_v0  ;;  %v3153_v3 = vmul.f32 %v6388_v41, %v8365_v60  ;;  %v6391_v24 = vld [vmem:[%s6695_s28 + $0x328] sm:$0xff]  ;;  %v6408_v41 = vld [vmem:[%s6695_s28 + $0x3d0] sm:$0xff] }
 0x446   : > { %v3592_v6 = vadd.f32 %v3528_v13, %v3144_v48  ;;  %v3394_v47 = vpop.permute.xlu1 %3393  ;;  %v6392_v13 = vld [vmem:[%s6695_s28 + $0x350] sm:$0xff]  ;;  %v6415_v8 = vld [vmem:[%s6695_s28 + $0x3e8] sm:$0xff] }
 0x447   : > { %3657 = vst [vmem:[%s7869_s12 + $0x158] sm:$0xff] %v3593_v62  ;;  %v3531_v33 = vmul.f32 %v6377_v52, %v3394_v47  ;;  %v3389_v35 = vpop.permute.xlu0 %3388  ;;  %v3155_v60 = vmul.f32 %v6392_v13, %v8393_v4  ;;  %v6393_v62 = vld [vmem:[%s6695_s28 + $0x358] sm:$0xff] }
 0x448   : > { %3656 = vst [vmem:[%s7869_s12 + $0x150] sm:$0xff] %v3592_v6  ;;  %v3530_v1 = vmul.f32 %v6379_v7, %v3389_v35  ;;  %v6397_v7 = vld [vmem:[%s6695_s28 + $0x378] sm:$0xff] }
 0x449   : > { %v3595_v27 = vadd.f32 %v3531_v33, %v3147_v43  ;;  %v6395_v43 = vld [vmem:[%s6695_s28 + $0x348] sm:$0xff] }
 0x44a   : > { %v3594_v34 = vadd.f32 %v3530_v1, %v3146_v10  ;;  %v3404_v59 = vpop.permute.xlu1 %3403  ;;  %v6396_v10 = vld [vmem:[%s6695_s28 + $0x370] sm:$0xff] }
 0x44b   : > { %3659 = vst [vmem:[%s7869_s12 + $0x168] sm:$0xff] %v3595_v27  ;;  %v3533_v9 = vmul.f32 %v6381_v25, %v3404_v59  ;;  %v3399_v40 = vpop.permute.xlu0 %3398  ;;  %v3157_v4 = vmul.f32 %v6396_v10, %v8421_v28  ;;  %v6399_v59 = vld [vmem:[%s6695_s28 + $0x368] sm:$0xff] }
 0x44c   : > { %3658 = vst [vmem:[%s7869_s12 + $0x160] sm:$0xff] %v3594_v34  ;;  %v3532_v57 = vmul.f32 %v6383_v39, %v3399_v40  ;;  %v6398_v34 = vld [vmem:[%s6695_s28 + $0x360] sm:$0xff]  ;;  %v6400_v40 = vld [vmem:[%s6695_s28 + $0x390] sm:$0xff] }
 0x44d   : > { %v3597_v38 = vadd.f32 %v3533_v9, %v3149_v58  ;;  %v3156_v15 = vmul.f32 %v6398_v34, %v8489_v63  ;;  %v3159_v28 = vmul.f32 %v6400_v40, %v8449_v16 }
 0x44e   : > { %v3596_v45 = vadd.f32 %v3532_v57, %v3148_v50  ;;  %v3414_v23 = vpop.permute.xlu1 %3413  ;;  %v6402_v57 = vld [vmem:[%s6695_s28 + $0x380] sm:$0xff] }
 0x44f   : > { %3661 = vst [vmem:[%s7869_s12 + $0x178] sm:$0xff] %v3597_v38  ;;  %v3535_v30 = vmul.f32 %v6385_v54, %v3414_v23  ;;  %v3409_v42 = vpop.permute.xlu0 %3408  ;;  %v3158_v63 = vmul.f32 %v6402_v57, %v8505_v55  ;;  %v6403_v38 = vld [vmem:[%s6695_s28 + $0x388] sm:$0xff]  ;;  %v6404_v54 = vld [vmem:[%s6695_s28 + $0x3b0] sm:$0xff] }
 0x450   : > { %3660 = vst [vmem:[%s7869_s12 + $0x170] sm:$0xff] %v3596_v45  ;;  %v3534_v37 = vmul.f32 %v6387_v29, %v3409_v42  ;;  %v3161_v16 = vmul.f32 %v6404_v54, %v8477_v2  ;;  %v6407_v29 = vld [vmem:[%s6695_s28 + $0x3a8] sm:$0xff]  ;;  %v3163_v2 = vmul.f32 %v6408_v41, %v8503_v22 }
 0x451   : > { %v3599_v14 = vadd.f32 %v3535_v30, %v3151_v51  ;;  %v6405_v30 = vld [vmem:[%s6695_s28 + $0x3b8] sm:$0xff] }
 0x452   : > { %v3598_v56 = vadd.f32 %v3534_v37, %v3150_v17  ;;  %v3424_v20 = vpop.permute.xlu1 %3423  ;;  %v6406_v17 = vld [vmem:[%s6695_s28 + $0x3a0] sm:$0xff] }
 0x453   : > { %3663 = vst [vmem:[%s7869_s12 + $0x188] sm:$0xff] %v3599_v14  ;;  %v3537_v19 = vmul.f32 %v6389_v32, %v3424_v20  ;;  %v3419_v0 = vpop.permute.xlu0 %3418  ;;  %v3160_v55 = vmul.f32 %v6406_v17, %v8511_v49  ;;  %v6410_v49 = vld [vmem:[%s6695_s28 + $0x3c0] sm:$0xff] }
 0x454   : > { %3662 = vst [vmem:[%s7869_s12 + $0x180] sm:$0xff] %v3598_v56  ;;  %v3536_v61 = vmul.f32 %v6391_v24, %v3419_v0  ;;  %v3162_v0 = vmul.f32 %v6410_v49, %v8515_v11  ;;  %v6413_v11 = vld [vmem:[%s6695_s28 + $0x3f8] sm:$0xff] }
 0x455   : > { %v3601_v18 = vadd.f32 %v3537_v19, %v3153_v3  ;;  %v6409_v3 = vld [vmem:[%s6695_s28 + $0x3d8] sm:$0xff] }
 0x456   : > { %v3600_v48 = vadd.f32 %v3536_v61, %v3152_v5  ;;  %v3434_v46 = vpop.permute.xlu1 %3433 }
 0x457   : > { %3665 = vst [vmem:[%s7869_s12 + $0x198] sm:$0xff] %v3601_v18  ;;  %v3539_v6 = vmul.f32 %v6393_v62, %v3434_v46  ;;  %v3429_v47 = vpop.permute.xlu0 %3428  ;;  %v6412_v46 = vld [vmem:[%s6695_s28 + $0x3f0] sm:$0xff] }
 0x458   : > { %3664 = vst [vmem:[%s7869_s12 + $0x190] sm:$0xff] %v3600_v48  ;;  %v3538_v52 = vmul.f32 %v6395_v43, %v3429_v47 }
 0x459   : > { %v3603_v33 = vadd.f32 %v3539_v6, %v3155_v60  ;;  %v6414_v6 = vld [vmem:[%s6695_s28 + $0x3e0] sm:$0xff]  ;;  %s6552_s28 = smov [#allocation5]  }
 0x45a   : > { %v3602_v35 = vadd.f32 %v3538_v52, %v3154_v31  ;;  %v3444_v53 = vpop.permute.xlu1 %3443  ;;  %s6450_s29 = sshll.u32 %s6552_s28, 4  ;;  %s6451_s29 = int_to_ptr.vmem [resolvable:$false] %s6450_s29 }
 0x45b   : > { %3667 = vst [vmem:[%s7869_s12 + $0x1a8] sm:$0xff] %v3603_v33  ;;  %v3541_v1 = vmul.f32 %v6397_v7, %v3444_v53  ;;  %v3439_v27 = vpop.permute.xlu0 %3438  ;;  %s6452_s11 = scalar_lea.vmem %s6451_s29, 16384  ;;  %p6453_p8 = scmp.lt.s32.totalorder %s8748_s15, %s6451_s29 }
 0x45c   : > { %3666 = vst [vmem:[%s7869_s12 + $0x1a0] sm:$0xff] %v3602_v35  ;;  %v3540_v36 = vmul.f32 %v6399_v59, %v3439_v27  ;;  %p6454_p10 = scmp.lt.s32.totalorder %s6452_s11, %s6446_s10 }
 0x45d   : > { %v3605_v58 = vadd.f32 %v3541_v1, %v3157_v4 }
 0x45e   : > { %v3604_v25 = vadd.f32 %v3540_v36, %v3156_v15  ;;  %v3454_v9 = vpop.permute.xlu1 %3453  ;;  %p6455_p0 = por %p6454_p10, %p6453_p8 }
 0x45f   : > { %3669 = vst [vmem:[%s7869_s12 + $0x1b8] sm:$0xff] %v3605_v58  ;;  %v3543_v50 = vmul.f32 %v6401_v26, %v3454_v9  ;;  %v3449_v39 = vpop.permute.xlu0 %3448 }
 0x460   : > { %3668 = vst [vmem:[%s7869_s12 + $0x1b0] sm:$0xff] %v3604_v25  ;;  %v3542_v45 = vmul.f32 %v6403_v38, %v3449_v39  ;;  %p6456_p2 = pnand %p6455_p0, %p6449_p13 }
 0x461   : > { %v3607_v23 = vadd.f32 %v3543_v50, %v3159_v28 }
 0x462   : > { %v3606_v12 = vadd.f32 %v3542_v45, %v3158_v63  ;;  %v3464_v51 = vpop.permute.xlu1 %3463 }
 0x463   : > { %3671 = vst [vmem:[%s7869_s12 + $0x1c8] sm:$0xff] %v3607_v23  ;;  %v3545_v42 = vmul.f32 %v6405_v30, %v3464_v51  ;;  %v3459_v21 = vpop.permute.xlu0 %3458 }
 0x464   : > { %3670 = vst [vmem:[%s7869_s12 + $0x1c0] sm:$0xff] %v3606_v12  ;;  %v3544_v37 = vmul.f32 %v6407_v29, %v3459_v21 }
 0x465   : > { %v3609_v14 = vadd.f32 %v3545_v42, %v3161_v16 }
 0x466   : > { %v3608_v56 = vadd.f32 %v3544_v37, %v3160_v55  ;;  %v3474_v20 = vpop.permute.xlu1 %3473 }
 0x467   : > { %3673 = vst [vmem:[%s7869_s12 + $0x1d8] sm:$0xff] %v3609_v14  ;;  %v3547_v32 = vmul.f32 %v6409_v3, %v3474_v20  ;;  %v3469_v19 = vpop.permute.xlu0 %3468 }
 0x468   : > { %3672 = vst [vmem:[%s7869_s12 + $0x1d0] sm:$0xff] %v3608_v56  ;;  %v3546_v5 = vmul.f32 %v6411_v44, %v3469_v19 }
 0x469   : > { %v3611_v24 = vadd.f32 %v3547_v32, %v3163_v2 }
 0x46a   : > { %v3610_v61 = vadd.f32 %v3546_v5, %v3162_v0  ;;  %v3100_v18 = vpop.permute.xlu1 %3099 }
 0x46b   : > { %3675 = vst [vmem:[%s7869_s12 + $0x1e8] sm:$0xff] %v3611_v24  ;;  %v3095_v22 = vpop.permute.xlu0 %3094  ;;  %v3165_v13 = vmul.f32 %v6412_v46, %v3100_v18 }
 0x46c   : > { %3674 = vst [vmem:[%s7869_s12 + $0x1e0] sm:$0xff] %v3610_v61  ;;  %v3164_v47 = vmul.f32 %v6414_v6, %v3095_v22 }
 0x46e   : > { %v3484_v48 = vpop.permute.xlu1 %3483 }
 0x46f   : > { %v3549_v60 = vmul.f32 %v6413_v11, %v3484_v48  ;;  %v3479_v62 = vpop.permute.xlu0 %3478 }
 0x470   : > { %v3548_v31 = vmul.f32 %v6415_v8, %v3479_v62 }
 0x471   : > { %v3613_v43 = vadd.f32 %v3549_v60, %v3165_v13 }
 0x472   : > { %v3612_v52 = vadd.f32 %v3548_v31, %v3164_v47 }
 0x473   : > { %3677 = vst [vmem:[%s7869_s12 + $0x1f8] sm:$0xff] %v3613_v43 }
 0x474   : > { %3676 = vst [vmem:[%s7869_s12 + $0x1f0] sm:$0xff] %v3612_v52 }
 0x475   : > { %6459 = shalt.err (!%p6456_p2)
}
 0x476   : > { %s6460_s13 = scalar_lea.hbm %s8746_s7, 8192  ;;  %s6464_s26 = scalar_lea.hbm %s8830_s4, 16384 }
 0x477   : > { %p6461_p4 = scmp.ne.s32.totalorder %s8746_s7, %s6460_s13  ;;  %p6465_p9 = scmp.lt.u32.totalorder %s8746_s7, %s8830_s4 }
 0x478   : > { %p6466_p1 = scmp.lt.u32.totalorder %s6464_s26, %s6460_s13  ;;  %p6468_p6 = scmp.lt.u32.totalorder %s6460_s13, %s8746_s7 }
 0x479   : > { %p6462_p5 = pnand %p6461_p4, %p9203_p11 }
 0x47a   : > { %p6467_p3 = por %p6466_p1, %p6465_p9 }
 0x47b   : > { %p6463_p7 = pneg %p6462_p5 }
 0x47c   : > { %p6469_p12 = por %p6468_p6, %p6467_p3 }
 0x47e   : > { %p6470_p13 = pnand %p6469_p12, %p6463_p7 }
 0x480   : > { %6473 = shalt.err (!%p6470_p13)
}
 0x481   : > { %s6553_s16 = smov 128   ;;  %s6554_s8 = smov 8   ;;  %v6555_v10 = vmov 1983009808   ;;  %v9204_v1 = vld [vmem:[#allocation39_spill] sm:$0xff] }
 0x482   : > { %5556 = dma.vmem_to_hbm [thread:$0]  (%p9203_p11), %s8748_s15, 8192, %s8746_s7, %s4304_s9, %s6553_s16, %s6553_s16, %s6554_s8   ;;  %v4287_v4 = vunpack.c.l.s4 %v6555_v10 }
 0x483   : > { %s4451_s10 = sshll.u32 %s6691_s23, 3  ;;  %s4659_s28 = sshll.u32 %s6608_s22, 7 }
 0x484   : > { %v4288_v7 = vunpack.c.0.s8 %v4287_v4  ;;  %s254_s29 = scalar_lea.vmem [#allocation6], %s4451_s10  ;;  %s8782_s9 = scalar_lea.hbm %s8831_s5, %s4659_s28 }
 0x485   : > { %s4339_s11 = sshll.u32 %s254_s29, 4  ;;  %s4309_s13 = scalar_lea.sflag [#allocation7], %s6691_s23  ;;  %s8784_s11 = int_to_ptr.vmem [resolvable:$true] %s4339_s11 }
 0x486   : > { %v4291_v27 = vsub.s32 %v4288_v7, %v9204_v1  ;;  %s6474_s17 = scalar_lea.vmem %s8784_s11, 128  ;;  %s6556_s22 = smov [#allocation6]  }
 0x487   : > { %p6475_p8 = scmp.ne.s32.totalorder %s8784_s11, %s6474_s17  ;;  %s6478_s25 = sshll.u32 %s6556_s22, 4  ;;  %s6479_s25 = int_to_ptr.vmem [resolvable:$false] %s6478_s25 }
 0x488   : > { %s6480_s26 = scalar_lea.vmem %s6479_s25, 256  ;;  %p6481_p2 = scmp.lt.s32.totalorder %s8784_s11, %s6479_s25 }
 0x489   : > { %p6476_p10 = pnand %p6475_p8, %p9203_p11  ;;  %p6482_p4 = scmp.lt.s32.totalorder %s6480_s26, %s6474_s17 }
 0x48b   : > { %p6477_p0 = pneg %p6476_p10  ;;  %p6483_p5 = por %p6482_p4, %p6481_p2 }
 0x48d   : > { %p6484_p7 = pnand %p6483_p5, %p6477_p0 }
 0x49f   : > { %v4204_v33 = vpop.f32.mrb[128].mxu1 }
 0x4a0   : > { %v4206_v35 = vpop.f32.mrb[129].mxu1 }
 0x4a1   : > { %v4284_v53 = vcombine.low %v4204_v33, %v4206_v35 }
 0x4a3   : > { %v4292_v59 = vrot.slane %v4284_v53, %v4291_v27 }
 0x4de   : > { %v4275_v34 = vpop.f32.mrb[128].mxu0 }
 0x4df   : > { %v4277_v15 = vpop.f32.mrb[129].mxu0 }
 0x4e0   : > { %v4285_v36 = vcombine.low %v4275_v34, %v4277_v15 }
 0x4e2   : > { %v4299_v58 = vrot.slane %v4285_v36, %v4291_v27 }
 0x4e4   : > { %v4300_v25 = vcombine.low %v4292_v59, %v4299_v58 }
 0x4e6   : > { %4302 = vst [vmem:[%s254_s29] sm:$0xff] %v4300_v25 }
 0x4e7   : > { %6487 = shalt.err (!%p6484_p7)
}
 0x4e8   : > { %s6488_s23 = scalar_lea.hbm %s8782_s9, 128  ;;  %s6492_s16 = scalar_lea.hbm %s8831_s5, 256 }
 0x4e9   : > { %p6489_p9 = scmp.ne.s32.totalorder %s8782_s9, %s6488_s23  ;;  %p6493_p6 = scmp.lt.u32.totalorder %s8782_s9, %s8831_s5 }
 0x4ea   : > { %p6494_p12 = scmp.lt.u32.totalorder %s6492_s16, %s6488_s23  ;;  %p6496_p8 = scmp.lt.u32.totalorder %s6488_s23, %s8782_s9 }
 0x4eb   : > { %p6490_p1 = pnand %p6489_p9, %p9203_p11 }
 0x4ec   : > { %p6495_p13 = por %p6494_p12, %p6493_p6 }
 0x4ed   : > { %p6491_p3 = pneg %p6490_p1 }
 0x4ee   : > { %p6497_p10 = por %p6496_p8, %p6495_p13 }
 0x4f0   : > { %p6498_p0 = pnand %p6497_p10, %p6491_p3 }
 0x4f2   : > { %6501 = shalt.err (!%p6498_p0)
}
 0x4f3   : > { %5557 = dma.vmem_to_hbm [thread:$0]  (%p9203_p11), %s8784_s11, 128, %s8782_s9, %s4309_s13  }
 0x4f4 PF: > { %s4351_s28 = sand.u32 1, %s6532_s18   ;;  %p9205_p2 = scmp.ne.s32.totalorder %s8968_s6, 0 }
 0x4f5   : > { %p9206_p4 = scmp.ge.s32.totalorder %s6544_s21, 2  ;;  %s4352_s29 = scalar_lea.sflag [#allocation4], %s4351_s28 }
 0x4f7   : > { %p5565_p5 = pnand %p9206_p4, %p9205_p2 }
 0x4f9   : > { %6523 = dma.done.wait (!%p5565_p5), %s4352_s29, 8192  }
 0x4fa   : > { %6525 = vsyncadd (!%p5565_p5), %s4352_s29, 4294959104  ;;  %s4361_s15 = scalar_lea.sflag [#allocation7], %s4351_s28 }
 0x4fb   : > { %6527 = dma.done.wait (!%p5565_p5), %s4361_s15, 128  }
 0x4fc   : > { %6529 = vsyncadd (!%p5565_p5), %s4361_s15, 4294967168  ;;  %p22_p11 = scmp.ge.s32.totalorder %s6612_s24, 4   ;;  %s9207_s18 = smov %s6536_s19 }
 0x4fd   : > { %s9208_s19 = smov %s6540_s20  ;;  %s9209_s20 = smov %s6624_s27 }
 0x4fe   : > { %s9210_s21 = smov %s6612_s24  ;;  %24 = sbr.rel (!%p22_p11) target bundleno = 7 (0x7), region = 98 }
 0x505   :  { %4366 = vsyncpa [#allocation3], 1 }
 0x506   :  { %4368 = vsyncpa [#allocation3 + $0x1], 1 }
 0x507   :  { %4369 = vsyncpa [#allocation4], 1 }
 0x508   :  { %4371 = vsyncpa [#allocation4 + $0x1], 1 }
 0x509   :  { %4372 = vsyncpa [#allocation7], 1 }
 0x50a   :  { %4374 = vsyncpa [#allocation7 + $0x1], 1 }

</bundles_post_ra>
